<compile_context>
chip_gen: v7x
topology: tpu7x:2x2x1
jax: 0.10.0
libtpu: 0.0.40
codegen_flags: <defaults>
</compile_context>

<pallas_src>
import functools

import jax
import jax.numpy as jnp
from jax.experimental import pallas as pl
from jax.experimental.pallas import tpu as pltpu

EPS = 1e-5


# ----------------------------------------------------------------------------
# Kernels
# ----------------------------------------------------------------------------
def _conv3x3_kernel(x_ref, s_ref, b_ref, w_ref, y_ref, stats_ref, buf_ref, *,
                    apply_input_act):
    """3x3 conv (padding=1, bias=False) on one batch element, NHWC.

    x_ref     : (1, H, W, Cin)     f32   input feature map (pre-BN for layer 2)
    s_ref,b_ref: (1, Cin)          f32   folded BN scale/shift applied to the
                                         *input* (only if apply_input_act)
    w_ref     : (3, 3*Cin, Cout)   bf16  kx-folded weights: w[ky, kx*Cin+ci, co]
    y_ref     : (1, H, W, Cout)    f32   raw conv output (pre-BN)
    stats_ref : (1, 2, Cout)       f32   per-image [sum, sum_of_squares] of y
    buf_ref   : (1, H+2, W, 3*Cin) f32   scratch: kx-folded, H-padded patches
    """
    _, H, W, Cin = x_ref.shape
    C3 = 3 * Cin
    Cout = w_ref.shape[2]

    if apply_input_act:
        s = s_ref[...]                       # (1, Cin) broadcasts over (H, W', Cin)
        b = b_ref[...]

        def pre(v):                          # BN affine + ReLU fused into the copy
            return jnp.maximum(v * s + b, 0.0)
    else:
        def pre(v):                          # layer 1: raw input, no activation
            return v

    # ---- build kx-folded patch buffer; zero ONLY the 1-wide borders ---------
    buf_ref[0, 0:1, :, :] = jnp.zeros((1, W, C3), jnp.float32)            # top pad row
    buf_ref[0, H + 1:H + 2, :, :] = jnp.zeros((1, W, C3), jnp.float32)    # bottom pad row
    buf_ref[0, 1:H + 1, 0:1, 0:Cin] = jnp.zeros((H, 1, Cin), jnp.float32)          # left pad (kx=0)
    buf_ref[0, 1:H + 1, W - 1:W, 2 * Cin:C3] = jnp.zeros((H, 1, Cin), jnp.float32)  # right pad (kx=2)
    # interiors: buf[h+1, w, kx*Cin + ci] = pre(x[h, w + kx - 1, ci])
    buf_ref[0, 1:H + 1, 1:W, 0:Cin] = pre(x_ref[0, :, 0:W - 1, :])        # kx = 0
    buf_ref[0, 1:H + 1, :, Cin:2 * Cin] = pre(x_ref[0])                   # kx = 1
    buf_ref[0, 1:H + 1, 0:W - 1, 2 * Cin:C3] = pre(x_ref[0, :, 1:W, :])   # kx = 2

    # ---- conv: 3 MXU matmuls (one per ky), K = 3*Cin, bf16 in / f32 acc -----
    for ky in range(3):
        patch = buf_ref[0, ky:ky + H, :, :].reshape(H * W, C3).astype(jnp.bfloat16)
        d = jnp.dot(patch, w_ref[ky], preferred_element_type=jnp.float32)
        d = d.reshape(1, H, W, Cout)
        if ky == 0:
            y_ref[...] = d                   # accumulate into the VMEM output block
        else:
            y_ref[...] += d

    # ---- BN partial statistics (single pass: sum and sum of squares) --------
    a = y_ref[...].reshape(H * W, Cout)
    stats_ref[0, 0:1, :] = jnp.sum(a, axis=0, keepdims=True)
    stats_ref[0, 1:2, :] = jnp.sum(a * a, axis=0, keepdims=True)


def _bn_relu_kernel(y_ref, s_ref, b_ref, o_ref):
    """Final BN2 + ReLU epilogue (per-channel affine already folded)."""
    o_ref[...] = jnp.maximum(y_ref[...] * s_ref[...] + b_ref[...], 0.0)


# ----------------------------------------------------------------------------
# Wrappers
# ----------------------------------------------------------------------------
def _vmem_budget(H, W, Cin, Cout):
    """Scoped-VMEM request sized to the actual buffers (+ headroom)."""
    blk = 4 * (H * W * Cin + H * W * Cout + 2 * Cout + 2 * Cin)   # f32 grid blocks
    blk += 2 * (3 * 3 * Cin * Cout)                               # bf16 folded weights
    scratch = 4 * (H + 2) * W * 3 * Cin                           # f32 kx-folded buffer
    est = 2 * blk + scratch + (8 << 20)                           # 2x: double buffering
    return int(min(max(est, 16 << 20), 48 << 20))                 # fits v7x's 64 MiB


def _conv_layer(x, scale, shift, w_folded, apply_input_act):
    """One conv pass: returns raw conv output + per-image BN partial stats."""
    N, H, W, Cin = x.shape
    Cout = w_folded.shape[2]
    kernel = functools.partial(_conv3x3_kernel, apply_input_act=apply_input_act)
    y, stats = pl.pallas_call(
        kernel,
        out_shape=(jax.ShapeDtypeStruct((N, H, W, Cout), jnp.float32),
                   jax.ShapeDtypeStruct((N, 2, Cout), jnp.float32)),
        grid_spec=pltpu.PrefetchScalarGridSpec(
            num_scalar_prefetch=0,
            grid=(N,),
            in_specs=[
                pl.BlockSpec((1, H, W, Cin), lambda i: (i, 0, 0, 0)),
                pl.BlockSpec((1, Cin), lambda i: (0, 0)),
                pl.BlockSpec((1, Cin), lambda i: (0, 0)),
                pl.BlockSpec((3, 3 * Cin, Cout), lambda i: (0, 0, 0)),
            ],
            out_specs=[
                pl.BlockSpec((1, H, W, Cout), lambda i: (i, 0, 0, 0)),
                pl.BlockSpec((1, 2, Cout), lambda i: (i, 0, 0)),
            ],
            scratch_shapes=[pltpu.VMEM((1, H + 2, W, 3 * Cin), jnp.float32)],
        ),
        compiler_params=pltpu.CompilerParams(
            dimension_semantics=("parallel",),
            vmem_limit_bytes=_vmem_budget(H, W, Cin, Cout)),
    )(x, scale, shift, w_folded)
    return y, stats


def _bn_fold(stats, gamma, beta, count):
    """Finalize two-pass BN: partial sums -> per-channel scale/shift (tiny)."""
    total = jnp.sum(stats, axis=0)                                 # (2, C)
    mean = total[0] / count
    var = jnp.maximum(total[1] / count - mean * mean, 0.0)         # clamp cancellation
    scale = gamma * jax.lax.rsqrt(var + EPS)
    shift = beta - mean * scale
    return scale[None, :], shift[None, :]                          # (1, C) each


@jax.jit
def double_conv_forward(x_nchw, w1_oihw, g1, b1, w2_oihw, g2, b2):
    """DoubleConv forward: (N, Cin, H, W) f32 -> (N, Cout, H, W) f32."""
    N, Cin, H, W = x_nchw.shape
    Cout = w2_oihw.shape[0]
    count = float(N * H * W)

    x = jnp.transpose(x_nchw, (0, 2, 3, 1))            # single NCHW -> NHWC relayout

    def fold_w(w):                                     # OIHW -> (ky, kx*Cin+ci, Cout), bf16
        wt = jnp.transpose(w, (2, 3, 1, 0))            # (ky, kx, Cin, Cout)
        return wt.reshape(3, 3 * w.shape[1], w.shape[0]).astype(jnp.bfloat16)

    ones1 = jnp.ones((1, Cin), jnp.float32)
    zeros1 = jnp.zeros((1, Cin), jnp.float32)

    # conv1 (raw input) + BN1 partial stats
    y1, st1 = _conv_layer(x, ones1, zeros1, fold_w(w1_oihw), apply_input_act=False)
    s1, t1 = _bn_fold(st1, g1, b1, count)
    # BN1+ReLU fused into conv2's patch formation; conv2 + BN2 partial stats
    y2, st2 = _conv_layer(y1, s1, t1, fold_w(w2_oihw), apply_input_act=True)
    s2, t2 = _bn_fold(st2, g2, b2, count)

    # BN2 + ReLU epilogue
    out = pl.pallas_call(
        _bn_relu_kernel,
        out_shape=jax.ShapeDtypeStruct((N, H, W, Cout), jnp.float32),
        grid_spec=pltpu.PrefetchScalarGridSpec(
            num_scalar_prefetch=0,
            grid=(N,),
            in_specs=[
                pl.BlockSpec((1, H, W, Cout), lambda i: (i, 0, 0, 0)),
                pl.BlockSpec((1, Cout), lambda i: (0, 0)),
                pl.BlockSpec((1, Cout), lambda i: (0, 0)),
            ],
            out_specs=pl.BlockSpec((1, H, W, Cout), lambda i: (i, 0, 0, 0)),
        ),
        compiler_params=pltpu.CompilerParams(
            dimension_semantics=("parallel",),
            vmem_limit_bytes=_vmem_budget(H, W, Cout, Cout)),
    )(y2, s2, t2)

    return jnp.transpose(out, (0, 3, 1, 2))            # back to NCHW


# ----------------------------------------------------------------------------
# Pure-JAX reference (same math: bf16 conv inputs, f32 accumulation, train BN)
# ----------------------------------------------------------------------------
def _ref_forward(x, w1, g1, b1, w2, g2, b2):
    def conv_bn_relu(h, w, g, b):
        hb = h.astype(jnp.bfloat16).astype(jnp.float32)
        wb = w.astype(jnp.bfloat16).astype(jnp.float32)
        y = jax.lax.conv_general_dilated(
            hb, wb, window_strides=(1, 1), padding=((1, 1), (1, 1)),
            dimension_numbers=("NCHW", "OIHW", "NCHW"),
            precision=jax.lax.Precision.HIGHEST)
        mean = y.mean(axis=(0, 2, 3), keepdims=True)
        var = ((y - mean) ** 2).mean(axis=(0, 2, 3), keepdims=True)
        yn = (y - mean) * jax.lax.rsqrt(var + EPS)
        return jnp.maximum(yn * g.reshape(1, -1, 1, 1) + b.reshape(1, -1, 1, 1), 0.0)

    h = conv_bn_relu(x, w1, g1, b1)
    return conv_bn_relu(h, w2, g2, b2)


if __name__ == "__main__":
    # small shapes consistent with DoubleConv(in_channels=4, out_channels=8)
    N, Cin, H, W = 2, 4, 16, 16
    Cmid = Cout = 8

    key = jax.random.PRNGKey(0)
    ks = jax.random.split(key, 7)
    x = jax.random.normal(ks[0], (N, Cin, H, W), jnp.float32)

    # PyTorch parameter layouts: conv OIHW (bias=False), BN weight/bias (C,)
    w1_oihw = 0.1 * jax.random.normal(ks[1], (Cmid, Cin, 3, 3), jnp.float32)
    w2_oihw = 0.1 * jax.random.normal(ks[2], (Cout, Cmid, 3, 3), jnp.float32)
    g1 = 1.0 + 0.1 * jax.random.normal(ks[3], (Cmid,), jnp.float32)
    b1 = 0.1 * jax.random.normal(ks[4], (Cmid,), jnp.float32)
    g2 = 1.0 + 0.1 * jax.random.normal(ks[5], (Cout,), jnp.float32)
    b2 = 0.1 * jax.random.normal(ks[6], (Cout,), jnp.float32)

    out = double_conv_forward(x, w1_oihw, g1, b1, w2_oihw, g2, b2)
    out = jax.block_until_ready(out)

    ref = _ref_forward(x, w1_oihw, g1, b1, w2_oihw, g2, b2)
    assert out.shape == (N, Cout, H, W), out.shape
    max_diff = float(jnp.max(jnp.abs(out - ref)))
    assert max_diff < 5e-3, f"max diff {max_diff}"

    print("KERNEL_OK")
</pallas_src>

<mosaic_0001>
module attributes {stable_mosaic.version = 11 : i64} {
  func.func @_bn_relu_kernel(%arg0: i32, %arg1: memref<1x16x16x8xf32, #tpu.memory_space<vmem>>, %arg2: memref<1x8xf32, #tpu.memory_space<vmem>>, %arg3: memref<1x8xf32, #tpu.memory_space<vmem>>, %arg4: memref<1x16x16x8xf32, #tpu.memory_space<vmem>>) attributes {dimension_semantics = [#tpu.dimension_semantics<parallel>], iteration_bounds = array<i64: 2>, scalar_prefetch = 0 : i64, scratch_operands = 0 : i64, tpu.core_type = #tpu.core_type<tc>, window_params = [{transform_indices = @transform_0, window_bounds = array<i64: 1, 16, 16, 8>}, {pipeline_mode = #tpu.pipeline_mode<synchronous>, transform_indices = @transform_1, window_bounds = array<i64: 1, 8>}, {pipeline_mode = #tpu.pipeline_mode<synchronous>, transform_indices = @transform_2, window_bounds = array<i64: 1, 8>}, {transform_indices = @transform_3, window_bounds = array<i64: 1, 16, 16, 8>}]} {
    %c0 = arith.constant 0 : index
    %c0_0 = arith.constant 0 : index
    %c0_1 = arith.constant 0 : index
    %c0_2 = arith.constant 0 : index
    %0 = vector.load %arg1[%c0, %c0_0, %c0_1, %c0_2] : memref<1x16x16x8xf32, #tpu.memory_space<vmem>>, vector<1x16x16x8xf32>
    %c0_3 = arith.constant 0 : index
    %c0_4 = arith.constant 0 : index
    %1 = vector.load %arg2[%c0_3, %c0_4] : memref<1x8xf32, #tpu.memory_space<vmem>>, vector<1x8xf32>
    %2 = vector.shape_cast %1 : vector<1x8xf32> to vector<1x1x1x8xf32>
    %3 = vector.broadcast %2 : vector<1x1x1x8xf32> to vector<1x16x16x8xf32>
    %4 = arith.mulf %0, %3 : vector<1x16x16x8xf32>
    %c0_5 = arith.constant 0 : index
    %c0_6 = arith.constant 0 : index
    %5 = vector.load %arg3[%c0_5, %c0_6] : memref<1x8xf32, #tpu.memory_space<vmem>>, vector<1x8xf32>
    %6 = vector.shape_cast %5 : vector<1x8xf32> to vector<1x1x1x8xf32>
    %7 = vector.broadcast %6 : vector<1x1x1x8xf32> to vector<1x16x16x8xf32>
    %8 = arith.addf %4, %7 : vector<1x16x16x8xf32>
    %cst = arith.constant 0.000000e+00 : f32
    %9 = vector.broadcast %cst : f32 to vector<1x16x16x8xf32>
    %10 = arith.maximumf %8, %9 : vector<1x16x16x8xf32>
    %c0_7 = arith.constant 0 : index
    %c0_8 = arith.constant 0 : index
    %c0_9 = arith.constant 0 : index
    %c0_10 = arith.constant 0 : index
    %11 = vector.load %arg4[%c0_7, %c0_8, %c0_9, %c0_10] : memref<1x16x16x8xf32, #tpu.memory_space<vmem>>, vector<1x16x16x8xf32>
    tpu.vector_store %arg4[%c0_7, %c0_8, %c0_9, %c0_10], %10 {strides = array<i32>} : memref<1x16x16x8xf32, #tpu.memory_space<vmem>>, vector<1x16x16x8xf32>,
    return
  }
  func.func @transform_0(%arg0: i32) -> (i32, i32, i32, i32) {
    %c0_i32 = arith.constant 0 : i32
    %c0_i32_0 = arith.constant 0 : i32
    %c0_i32_1 = arith.constant 0 : i32
    %c0_i32_2 = arith.constant 0 : i32
    return %arg0, %c0_i32, %c0_i32_0, %c0_i32_1 : i32, i32, i32, i32
  }
  func.func @transform_1(%arg0: i32) -> (i32, i32) {
    %c0_i32 = arith.constant 0 : i32
    %c0_i32_0 = arith.constant 0 : i32
    %c0_i32_1 = arith.constant 0 : i32
    return %c0_i32, %c0_i32_0 : i32, i32
  }
  func.func @transform_2(%arg0: i32) -> (i32, i32) {
    %c0_i32 = arith.constant 0 : i32
    %c0_i32_0 = arith.constant 0 : i32
    %c0_i32_1 = arith.constant 0 : i32
    return %c0_i32, %c0_i32_0 : i32, i32
  }
  func.func @transform_3(%arg0: i32) -> (i32, i32, i32, i32) {
    %c0_i32 = arith.constant 0 : i32
    %c0_i32_0 = arith.constant 0 : i32
    %c0_i32_1 = arith.constant 0 : i32
    %c0_i32_2 = arith.constant 0 : i32
    return %arg0, %c0_i32, %c0_i32_0, %c0_i32_1 : i32, i32, i32, i32
  }
}

module attributes {stable_mosaic.version = 11 : i64} {
  func.func @_conv3x3_kernel(%arg0: i32, %arg1: memref<1x16x16x4xf32, #tpu.memory_space<vmem>>, %arg2: memref<1x4xf32, #tpu.memory_space<vmem>>, %arg3: memref<1x4xf32, #tpu.memory_space<vmem>>, %arg4: memref<3x12x8xbf16, #tpu.memory_space<vmem>>, %arg5: memref<1x16x16x8xf32, #tpu.memory_space<vmem>>, %arg6: memref<1x2x8xf32, #tpu.memory_space<vmem>>, %arg7: memref<1x18x16x12xf32, #tpu.memory_space<vmem>>) attributes {dimension_semantics = [#tpu.dimension_semantics<parallel>], iteration_bounds = array<i64: 2>, scalar_prefetch = 0 : i64, scratch_operands = 1 : i64, tpu.core_type = #tpu.core_type<tc>, window_params = [{transform_indices = @transform_0, window_bounds = array<i64: 1, 16, 16, 4>}, {pipeline_mode = #tpu.pipeline_mode<synchronous>, transform_indices = @transform_1, window_bounds = array<i64: 1, 4>}, {pipeline_mode = #tpu.pipeline_mode<synchronous>, transform_indices = @transform_2, window_bounds = array<i64: 1, 4>}, {pipeline_mode = #tpu.pipeline_mode<synchronous>, transform_indices = @transform_3, window_bounds = array<i64: 3, 12, 8>}, {transform_indices = @transform_4, window_bounds = array<i64: 1, 16, 16, 8>}, {transform_indices = @transform_5, window_bounds = array<i64: 1, 2, 8>}]} {
    %cst = arith.constant 0.000000e+00 : f32
    %0 = vector.broadcast %cst : f32 to vector<1x16x12xf32>
    %c0 = arith.constant 0 : index
    %c0_0 = arith.constant 0 : index
    %c0_1 = arith.constant 0 : index
    %c0_2 = arith.constant 0 : index
    %1 = vector.load %arg7[%c0, %c0_0, %c0_1, %c0_2] : memref<1x18x16x12xf32, #tpu.memory_space<vmem>>, vector<1x1x16x12xf32>
    %2 = vector.shape_cast %1 : vector<1x1x16x12xf32> to vector<1x16x12xf32>
    %3 = vector.shape_cast %0 : vector<1x16x12xf32> to vector<1x1x16x12xf32>
    tpu.vector_store %arg7[%c0, %c0_0, %c0_1, %c0_2], %3 {strides = array<i32>} : memref<1x18x16x12xf32, #tpu.memory_space<vmem>>, vector<1x1x16x12xf32>,
    %cst_3 = arith.constant 0.000000e+00 : f32
    %4 = vector.broadcast %cst_3 : f32 to vector<1x16x12xf32>
    %c0_4 = arith.constant 0 : index
    %c17 = arith.constant 17 : index
    %c0_5 = arith.constant 0 : index
    %c0_6 = arith.constant 0 : index
    %5 = vector.load %arg7[%c0_4, %c17, %c0_5, %c0_6] : memref<1x18x16x12xf32, #tpu.memory_space<vmem>>, vector<1x1x16x12xf32>
    %6 = vector.shape_cast %5 : vector<1x1x16x12xf32> to vector<1x16x12xf32>
    %7 = vector.shape_cast %4 : vector<1x16x12xf32> to vector<1x1x16x12xf32>
    tpu.vector_store %arg7[%c0_4, %c17, %c0_5, %c0_6], %7 {strides = array<i32>} : memref<1x18x16x12xf32, #tpu.memory_space<vmem>>, vector<1x1x16x12xf32>,
    %cst_7 = arith.constant 0.000000e+00 : f32
    %8 = vector.broadcast %cst_7 : f32 to vector<16x1x4xf32>
    %c0_8 = arith.constant 0 : index
    %c1 = arith.constant 1 : index
    %c0_9 = arith.constant 0 : index
    %c0_10 = arith.constant 0 : index
    %9 = vector.load %arg7[%c0_8, %c1, %c0_9, %c0_10] : memref<1x18x16x12xf32, #tpu.memory_space<vmem>>, vector<1x16x1x4xf32>
    %10 = vector.shape_cast %9 : vector<1x16x1x4xf32> to vector<16x1x4xf32>
    %11 = vector.shape_cast %8 : vector<16x1x4xf32> to vector<1x16x1x4xf32>
    tpu.vector_store %arg7[%c0_8, %c1, %c0_9, %c0_10], %11 {strides = array<i32>} : memref<1x18x16x12xf32, #tpu.memory_space<vmem>>, vector<1x16x1x4xf32>,
    %cst_11 = arith.constant 0.000000e+00 : f32
    %12 = vector.broadcast %cst_11 : f32 to vector<16x1x4xf32>
    %c0_12 = arith.constant 0 : index
    %c1_13 = arith.constant 1 : index
    %c15 = arith.constant 15 : index
    %c8 = arith.constant 8 : index
    %13 = vector.load %arg7[%c0_12, %c1_13, %c15, %c8] : memref<1x18x16x12xf32, #tpu.memory_space<vmem>>, vector<1x16x1x4xf32>
    %14 = vector.shape_cast %13 : vector<1x16x1x4xf32> to vector<16x1x4xf32>
    %15 = vector.shape_cast %12 : vector<16x1x4xf32> to vector<1x16x1x4xf32>
    tpu.vector_store %arg7[%c0_12, %c1_13, %c15, %c8], %15 {strides = array<i32>} : memref<1x18x16x12xf32, #tpu.memory_space<vmem>>, vector<1x16x1x4xf32>,
    %c0_14 = arith.constant 0 : index
    %c0_15 = arith.constant 0 : index
    %c0_16 = arith.constant 0 : index
    %c0_17 = arith.constant 0 : index
    %16 = vector.load %arg1[%c0_14, %c0_15, %c0_16, %c0_17] : memref<1x16x16x4xf32, #tpu.memory_space<vmem>>, vector<1x16x15x4xf32>
    %17 = vector.shape_cast %16 : vector<1x16x15x4xf32> to vector<16x15x4xf32>
    %c0_18 = arith.constant 0 : index
    %c1_19 = arith.constant 1 : index
    %c1_20 = arith.constant 1 : index
    %c0_21 = arith.constant 0 : index
    %18 = vector.load %arg7[%c0_18, %c1_19, %c1_20, %c0_21] : memref<1x18x16x12xf32, #tpu.memory_space<vmem>>, vector<1x16x15x4xf32>
    %19 = vector.shape_cast %18 : vector<1x16x15x4xf32> to vector<16x15x4xf32>
    %20 = vector.shape_cast %17 : vector<16x15x4xf32> to vector<1x16x15x4xf32>
    tpu.vector_store %arg7[%c0_18, %c1_19, %c1_20, %c0_21], %20 {strides = array<i32>} : memref<1x18x16x12xf32, #tpu.memory_space<vmem>>, vector<1x16x15x4xf32>,
    %c0_22 = arith.constant 0 : index
    %c0_23 = arith.constant 0 : index
    %c0_24 = arith.constant 0 : index
    %c0_25 = arith.constant 0 : index
    %21 = vector.load %arg1[%c0_22, %c0_23, %c0_24, %c0_25] : memref<1x16x16x4xf32, #tpu.memory_space<vmem>>, vector<1x16x16x4xf32>
    %22 = vector.shape_cast %21 : vector<1x16x16x4xf32> to vector<16x16x4xf32>
    %c0_26 = arith.constant 0 : index
    %c1_27 = arith.constant 1 : index
    %c0_28 = arith.constant 0 : index
    %c4 = arith.constant 4 : index
    %23 = vector.load %arg7[%c0_26, %c1_27, %c0_28, %c4] : memref<1x18x16x12xf32, #tpu.memory_space<vmem>>, vector<1x16x16x4xf32>
    %24 = vector.shape_cast %23 : vector<1x16x16x4xf32> to vector<16x16x4xf32>
    %25 = vector.shape_cast %22 : vector<16x16x4xf32> to vector<1x16x16x4xf32>
    tpu.vector_store %arg7[%c0_26, %c1_27, %c0_28, %c4], %25 {strides = array<i32>} : memref<1x18x16x12xf32, #tpu.memory_space<vmem>>, vector<1x16x16x4xf32>,
    %c0_29 = arith.constant 0 : index
    %c0_30 = arith.constant 0 : index
    %c1_31 = arith.constant 1 : index
    %c0_32 = arith.constant 0 : index
    %26 = vector.load %arg1[%c0_29, %c0_30, %c1_31, %c0_32] : memref<1x16x16x4xf32, #tpu.memory_space<vmem>>, vector<1x16x15x4xf32>
    %27 = vector.shape_cast %26 : vector<1x16x15x4xf32> to vector<16x15x4xf32>
    %c0_33 = arith.constant 0 : index
    %c1_34 = arith.constant 1 : index
    %c0_35 = arith.constant 0 : index
    %c8_36 = arith.constant 8 : index
    %28 = vector.load %arg7[%c0_33, %c1_34, %c0_35, %c8_36] : memref<1x18x16x12xf32, #tpu.memory_space<vmem>>, vector<1x16x15x4xf32>
    %29 = vector.shape_cast %28 : vector<1x16x15x4xf32> to vector<16x15x4xf32>
    %30 = vector.shape_cast %27 : vector<16x15x4xf32> to vector<1x16x15x4xf32>
    tpu.vector_store %arg7[%c0_33, %c1_34, %c0_35, %c8_36], %30 {strides = array<i32>} : memref<1x18x16x12xf32, #tpu.memory_space<vmem>>, vector<1x16x15x4xf32>,
    %c0_37 = arith.constant 0 : index
    %c0_38 = arith.constant 0 : index
    %c0_39 = arith.constant 0 : index
    %c0_40 = arith.constant 0 : index
    %31 = vector.load %arg7[%c0_37, %c0_38, %c0_39, %c0_40] : memref<1x18x16x12xf32, #tpu.memory_space<vmem>>, vector<1x16x16x12xf32>
    %32 = vector.shape_cast %31 : vector<1x16x16x12xf32> to vector<16x16x12xf32>
    %33 = vector.shape_cast %32 : vector<16x16x12xf32> to vector<256x12xf32>
    %34 = arith.truncf %33 : vector<256x12xf32> to vector<256x12xbf16>
    %c0_41 = arith.constant 0 : index
    %c0_42 = arith.constant 0 : index
    %c0_43 = arith.constant 0 : index
    %35 = vector.load %arg4[%c0_41, %c0_42, %c0_43] : memref<3x12x8xbf16, #tpu.memory_space<vmem>>, vector<1x12x8xbf16>
    %36 = vector.shape_cast %35 : vector<1x12x8xbf16> to vector<12x8xbf16>
    %cst_44 = arith.constant dense<0.000000e+00> : vector<256x8xf32>
    %37 = tpu.matmul %34, %36, %cst_44 {dimension_numbers = #tpu.dot_dimension_numbers<[1], [0], [0], [1], [0, 0, 1, 1], [], []>} : vector<256x12xbf16>, vector<12x8xbf16>, vector<256x8xf32> -> vector<256x8xf32>
    %38 = vector.shape_cast %37 : vector<256x8xf32> to vector<1x16x16x8xf32>
    %c0_45 = arith.constant 0 : index
    %c0_46 = arith.constant 0 : index
    %c0_47 = arith.constant 0 : index
    %c0_48 = arith.constant 0 : index
    %39 = vector.load %arg5[%c0_45, %c0_46, %c0_47, %c0_48] : memref<1x16x16x8xf32, #tpu.memory_space<vmem>>, vector<1x16x16x8xf32>
    tpu.vector_store %arg5[%c0_45, %c0_46, %c0_47, %c0_48], %38 {strides = array<i32>} : memref<1x16x16x8xf32, #tpu.memory_space<vmem>>, vector<1x16x16x8xf32>,
    %c0_49 = arith.constant 0 : index
    %c1_50 = arith.constant 1 : index
    %c0_51 = arith.constant 0 : index
    %c0_52 = arith.constant 0 : index
    %40 = vector.load %arg7[%c0_49, %c1_50, %c0_51, %c0_52] : memref<1x18x16x12xf32, #tpu.memory_space<vmem>>, vector<1x16x16x12xf32>
    %41 = vector.shape_cast %40 : vector<1x16x16x12xf32> to vector<16x16x12xf32>
    %42 = vector.shape_cast %41 : vector<16x16x12xf32> to vector<256x12xf32>
    %43 = arith.truncf %42 : vector<256x12xf32> to vector<256x12xbf16>
    %c1_53 = arith.constant 1 : index
    %c0_54 = arith.constant 0 : index
    %c0_55 = arith.constant 0 : index
    %44 = vector.load %arg4[%c1_53, %c0_54, %c0_55] : memref<3x12x8xbf16, #tpu.memory_space<vmem>>, vector<1x12x8xbf16>
    %45 = vector.shape_cast %44 : vector<1x12x8xbf16> to vector<12x8xbf16>
    %cst_56 = arith.constant dense<0.000000e+00> : vector<256x8xf32>
    %46 = tpu.matmul %43, %45, %cst_56 {dimension_numbers = #tpu.dot_dimension_numbers<[1], [0], [0], [1], [0, 0, 1, 1], [], []>} : vector<256x12xbf16>, vector<12x8xbf16>, vector<256x8xf32> -> vector<256x8xf32>
    %47 = vector.shape_cast %46 : vector<256x8xf32> to vector<1x16x16x8xf32>
    %c0_57 = arith.constant 0 : index
    %c0_58 = arith.constant 0 : index
    %c0_59 = arith.constant 0 : index
    %c0_60 = arith.constant 0 : index
    %48 = vector.load %arg5[%c0_57, %c0_58, %c0_59, %c0_60] : memref<1x16x16x8xf32, #tpu.memory_space<vmem>>, vector<1x16x16x8xf32>
    %49 = arith.addf %48, %47 : vector<1x16x16x8xf32>
    %c0_61 = arith.constant 0 : index
    %c0_62 = arith.constant 0 : index
    %c0_63 = arith.constant 0 : index
    %c0_64 = arith.constant 0 : index
    %50 = vector.load %arg5[%c0_61, %c0_62, %c0_63, %c0_64] : memref<1x16x16x8xf32, #tpu.memory_space<vmem>>, vector<1x16x16x8xf32>
    tpu.vector_store %arg5[%c0_61, %c0_62, %c0_63, %c0_64], %49 {strides = array<i32>} : memref<1x16x16x8xf32, #tpu.memory_space<vmem>>, vector<1x16x16x8xf32>,
    %c0_65 = arith.constant 0 : index
    %c2 = arith.constant 2 : index
    %c0_66 = arith.constant 0 : index
    %c0_67 = arith.constant 0 : index
    %51 = vector.load %arg7[%c0_65, %c2, %c0_66, %c0_67] : memref<1x18x16x12xf32, #tpu.memory_space<vmem>>, vector<1x16x16x12xf32>
    %52 = vector.shape_cast %51 : vector<1x16x16x12xf32> to vector<16x16x12xf32>
    %53 = vector.shape_cast %52 : vector<16x16x12xf32> to vector<256x12xf32>
    %54 = arith.truncf %53 : vector<256x12xf32> to vector<256x12xbf16>
    %c2_68 = arith.constant 2 : index
    %c0_69 = arith.constant 0 : index
    %c0_70 = arith.constant 0 : index
    %55 = vector.load %arg4[%c2_68, %c0_69, %c0_70] : memref<3x12x8xbf16, #tpu.memory_space<vmem>>, vector<1x12x8xbf16>
    %56 = vector.shape_cast %55 : vector<1x12x8xbf16> to vector<12x8xbf16>
    %cst_71 = arith.constant dense<0.000000e+00> : vector<256x8xf32>
    %57 = tpu.matmul %54, %56, %cst_71 {dimension_numbers = #tpu.dot_dimension_numbers<[1], [0], [0], [1], [0, 0, 1, 1], [], []>} : vector<256x12xbf16>, vector<12x8xbf16>, vector<256x8xf32> -> vector<256x8xf32>
    %58 = vector.shape_cast %57 : vector<256x8xf32> to vector<1x16x16x8xf32>
    %c0_72 = arith.constant 0 : index
    %c0_73 = arith.constant 0 : index
    %c0_74 = arith.constant 0 : index
    %c0_75 = arith.constant 0 : index
    %59 = vector.load %arg5[%c0_72, %c0_73, %c0_74, %c0_75] : memref<1x16x16x8xf32, #tpu.memory_space<vmem>>, vector<1x16x16x8xf32>
    %60 = arith.addf %59, %58 : vector<1x16x16x8xf32>
    %c0_76 = arith.constant 0 : index
    %c0_77 = arith.constant 0 : index
    %c0_78 = arith.constant 0 : index
    %c0_79 = arith.constant 0 : index
    %61 = vector.load %arg5[%c0_76, %c0_77, %c0_78, %c0_79] : memref<1x16x16x8xf32, #tpu.memory_space<vmem>>, vector<1x16x16x8xf32>
    tpu.vector_store %arg5[%c0_76, %c0_77, %c0_78, %c0_79], %60 {strides = array<i32>} : memref<1x16x16x8xf32, #tpu.memory_space<vmem>>, vector<1x16x16x8xf32>,
    %c0_80 = arith.constant 0 : index
    %c0_81 = arith.constant 0 : index
    %c0_82 = arith.constant 0 : index
    %c0_83 = arith.constant 0 : index
    %62 = vector.load %arg5[%c0_80, %c0_81, %c0_82, %c0_83] : memref<1x16x16x8xf32, #tpu.memory_space<vmem>>, vector<1x16x16x8xf32>
    %63 = vector.shape_cast %62 : vector<1x16x16x8xf32> to vector<256x8xf32>
    %cst_84 = arith.constant dense<0.000000e+00> : vector<8xf32>
    %64 = vector.multi_reduction <add>, %63, %cst_84 [0] : vector<256x8xf32> to vector<8xf32>
    %65 = vector.shape_cast %64 : vector<8xf32> to vector<1x8xf32>
    %c0_85 = arith.constant 0 : index
    %c0_86 = arith.constant 0 : index
    %c0_87 = arith.constant 0 : index
    %66 = vector.load %arg6[%c0_85, %c0_86, %c0_87] : memref<1x2x8xf32, #tpu.memory_space<vmem>>, vector<1x1x8xf32>
    %67 = vector.shape_cast %66 : vector<1x1x8xf32> to vector<1x8xf32>
    %68 = vector.shape_cast %65 : vector<1x8xf32> to vector<1x1x8xf32>
    tpu.vector_store %arg6[%c0_85, %c0_86, %c0_87], %68 {strides = array<i32>} : memref<1x2x8xf32, #tpu.memory_space<vmem>>, vector<1x1x8xf32>,
    %69 = arith.mulf %63, %63 : vector<256x8xf32>
    %cst_88 = arith.constant dense<0.000000e+00> : vector<8xf32>
    %70 = vector.multi_reduction <add>, %69, %cst_88 [0] : vector<256x8xf32> to vector<8xf32>
    %71 = vector.shape_cast %70 : vector<8xf32> to vector<1x8xf32>
    %c0_89 = arith.constant 0 : index
    %c1_90 = arith.constant 1 : index
    %c0_91 = arith.constant 0 : index
    %72 = vector.load %arg6[%c0_89, %c1_90, %c0_91] : memref<1x2x8xf32, #tpu.memory_space<vmem>>, vector<1x1x8xf32>
    %73 = vector.shape_cast %72 : vector<1x1x8xf32> to vector<1x8xf32>
    %74 = vector.shape_cast %71 : vector<1x8xf32> to vector<1x1x8xf32>
    tpu.vector_store %arg6[%c0_89, %c1_90, %c0_91], %74 {strides = array<i32>} : memref<1x2x8xf32, #tpu.memory_space<vmem>>, vector<1x1x8xf32>,
    return
  }
  func.func @transform_0(%arg0: i32) -> (i32, i32, i32, i32) {
    %c0_i32 = arith.constant 0 : i32
    %c0_i32_0 = arith.constant 0 : i32
    %c0_i32_1 = arith.constant 0 : i32
    %c0_i32_2 = arith.constant 0 : i32
    return %arg0, %c0_i32, %c0_i32_0, %c0_i32_1 : i32, i32, i32, i32
  }
  func.func @transform_1(%arg0: i32) -> (i32, i32) {
    %c0_i32 = arith.constant 0 : i32
    %c0_i32_0 = arith.constant 0 : i32
    %c0_i32_1 = arith.constant 0 : i32
    return %c0_i32, %c0_i32_0 : i32, i32
  }
  func.func @transform_2(%arg0: i32) -> (i32, i32) {
    %c0_i32 = arith.constant 0 : i32
    %c0_i32_0 = arith.constant 0 : i32
    %c0_i32_1 = arith.constant 0 : i32
    return %c0_i32, %c0_i32_0 : i32, i32
  }
  func.func @transform_3(%arg0: i32) -> (i32, i32, i32) {
    %c0_i32 = arith.constant 0 : i32
    %c0_i32_0 = arith.constant 0 : i32
    %c0_i32_1 = arith.constant 0 : i32
    %c0_i32_2 = arith.constant 0 : i32
    return %c0_i32, %c0_i32_0, %c0_i32_1 : i32, i32, i32
  }
  func.func @transform_4(%arg0: i32) -> (i32, i32, i32, i32) {
    %c0_i32 = arith.constant 0 : i32
    %c0_i32_0 = arith.constant 0 : i32
    %c0_i32_1 = arith.constant 0 : i32
    %c0_i32_2 = arith.constant 0 : i32
    return %arg0, %c0_i32, %c0_i32_0, %c0_i32_1 : i32, i32, i32, i32
  }
  func.func @transform_5(%arg0: i32) -> (i32, i32, i32) {
    %c0_i32 = arith.constant 0 : i32
    %c0_i32_0 = arith.constant 0 : i32
    %c0_i32_1 = arith.constant 0 : i32
    return %arg0, %c0_i32, %c0_i32_0 : i32, i32, i32
  }
}

module attributes {stable_mosaic.version = 11 : i64} {
  func.func @_conv3x3_kernel(%arg0: i32, %arg1: memref<1x16x16x8xf32, #tpu.memory_space<vmem>>, %arg2: memref<1x8xf32, #tpu.memory_space<vmem>>, %arg3: memref<1x8xf32, #tpu.memory_space<vmem>>, %arg4: memref<3x24x8xbf16, #tpu.memory_space<vmem>>, %arg5: memref<1x16x16x8xf32, #tpu.memory_space<vmem>>, %arg6: memref<1x2x8xf32, #tpu.memory_space<vmem>>, %arg7: memref<1x18x16x24xf32, #tpu.memory_space<vmem>>) attributes {dimension_semantics = [#tpu.dimension_semantics<parallel>], iteration_bounds = array<i64: 2>, scalar_prefetch = 0 : i64, scratch_operands = 1 : i64, tpu.core_type = #tpu.core_type<tc>, window_params = [{transform_indices = @transform_0, window_bounds = array<i64: 1, 16, 16, 8>}, {pipeline_mode = #tpu.pipeline_mode<synchronous>, transform_indices = @transform_1, window_bounds = array<i64: 1, 8>}, {pipeline_mode = #tpu.pipeline_mode<synchronous>, transform_indices = @transform_2, window_bounds = array<i64: 1, 8>}, {pipeline_mode = #tpu.pipeline_mode<synchronous>, transform_indices = @transform_3, window_bounds = array<i64: 3, 24, 8>}, {transform_indices = @transform_4, window_bounds = array<i64: 1, 16, 16, 8>}, {transform_indices = @transform_5, window_bounds = array<i64: 1, 2, 8>}]} {
    %c0 = arith.constant 0 : index
    %c0_0 = arith.constant 0 : index
    %0 = vector.load %arg2[%c0, %c0_0] : memref<1x8xf32, #tpu.memory_space<vmem>>, vector<1x8xf32>
    %c0_1 = arith.constant 0 : index
    %c0_2 = arith.constant 0 : index
    %1 = vector.load %arg3[%c0_1, %c0_2] : memref<1x8xf32, #tpu.memory_space<vmem>>, vector<1x8xf32>
    %cst = arith.constant 0.000000e+00 : f32
    %2 = vector.broadcast %cst : f32 to vector<1x16x24xf32>
    %c0_3 = arith.constant 0 : index
    %c0_4 = arith.constant 0 : index
    %c0_5 = arith.constant 0 : index
    %c0_6 = arith.constant 0 : index
    %3 = vector.load %arg7[%c0_3, %c0_4, %c0_5, %c0_6] : memref<1x18x16x24xf32, #tpu.memory_space<vmem>>, vector<1x1x16x24xf32>
    %4 = vector.shape_cast %3 : vector<1x1x16x24xf32> to vector<1x16x24xf32>
    %5 = vector.shape_cast %2 : vector<1x16x24xf32> to vector<1x1x16x24xf32>
    tpu.vector_store %arg7[%c0_3, %c0_4, %c0_5, %c0_6], %5 {strides = array<i32>} : memref<1x18x16x24xf32, #tpu.memory_space<vmem>>, vector<1x1x16x24xf32>,
    %cst_7 = arith.constant 0.000000e+00 : f32
    %6 = vector.broadcast %cst_7 : f32 to vector<1x16x24xf32>
    %c0_8 = arith.constant 0 : index
    %c17 = arith.constant 17 : index
    %c0_9 = arith.constant 0 : index
    %c0_10 = arith.constant 0 : index
    %7 = vector.load %arg7[%c0_8, %c17, %c0_9, %c0_10] : memref<1x18x16x24xf32, #tpu.memory_space<vmem>>, vector<1x1x16x24xf32>
    %8 = vector.shape_cast %7 : vector<1x1x16x24xf32> to vector<1x16x24xf32>
    %9 = vector.shape_cast %6 : vector<1x16x24xf32> to vector<1x1x16x24xf32>
    tpu.vector_store %arg7[%c0_8, %c17, %c0_9, %c0_10], %9 {strides = array<i32>} : memref<1x18x16x24xf32, #tpu.memory_space<vmem>>, vector<1x1x16x24xf32>,
    %cst_11 = arith.constant 0.000000e+00 : f32
    %10 = vector.broadcast %cst_11 : f32 to vector<16x1x8xf32>
    %c0_12 = arith.constant 0 : index
    %c1 = arith.constant 1 : index
    %c0_13 = arith.constant 0 : index
    %c0_14 = arith.constant 0 : index
    %11 = vector.load %arg7[%c0_12, %c1, %c0_13, %c0_14] : memref<1x18x16x24xf32, #tpu.memory_space<vmem>>, vector<1x16x1x8xf32>
    %12 = vector.shape_cast %11 : vector<1x16x1x8xf32> to vector<16x1x8xf32>
    %13 = vector.shape_cast %10 : vector<16x1x8xf32> to vector<1x16x1x8xf32>
    tpu.vector_store %arg7[%c0_12, %c1, %c0_13, %c0_14], %13 {strides = array<i32>} : memref<1x18x16x24xf32, #tpu.memory_space<vmem>>, vector<1x16x1x8xf32>,
    %cst_15 = arith.constant 0.000000e+00 : f32
    %14 = vector.broadcast %cst_15 : f32 to vector<16x1x8xf32>
    %c0_16 = arith.constant 0 : index
    %c1_17 = arith.constant 1 : index
    %c15 = arith.constant 15 : index
    %c16 = arith.constant 16 : index
    %15 = vector.load %arg7[%c0_16, %c1_17, %c15, %c16] : memref<1x18x16x24xf32, #tpu.memory_space<vmem>>, vector<1x16x1x8xf32>
    %16 = vector.shape_cast %15 : vector<1x16x1x8xf32> to vector<16x1x8xf32>
    %17 = vector.shape_cast %14 : vector<16x1x8xf32> to vector<1x16x1x8xf32>
    tpu.vector_store %arg7[%c0_16, %c1_17, %c15, %c16], %17 {strides = array<i32>} : memref<1x18x16x24xf32, #tpu.memory_space<vmem>>, vector<1x16x1x8xf32>,
    %c0_18 = arith.constant 0 : index
    %c0_19 = arith.constant 0 : index
    %c0_20 = arith.constant 0 : index
    %c0_21 = arith.constant 0 : index
    %18 = vector.load %arg1[%c0_18, %c0_19, %c0_20, %c0_21] : memref<1x16x16x8xf32, #tpu.memory_space<vmem>>, vector<1x16x15x8xf32>
    %19 = vector.shape_cast %18 : vector<1x16x15x8xf32> to vector<16x15x8xf32>
    %20 = vector.shape_cast %0 : vector<1x8xf32> to vector<1x1x8xf32>
    %21 = vector.broadcast %20 : vector<1x1x8xf32> to vector<16x15x8xf32>
    %22 = arith.mulf %19, %21 : vector<16x15x8xf32>
    %23 = vector.shape_cast %1 : vector<1x8xf32> to vector<1x1x8xf32>
    %24 = vector.broadcast %23 : vector<1x1x8xf32> to vector<16x15x8xf32>
    %25 = arith.addf %22, %24 : vector<16x15x8xf32>
    %cst_22 = arith.constant 0.000000e+00 : f32
    %26 = vector.broadcast %cst_22 : f32 to vector<16x15x8xf32>
    %27 = arith.maximumf %25, %26 : vector<16x15x8xf32>
    %c0_23 = arith.constant 0 : index
    %c1_24 = arith.constant 1 : index
    %c1_25 = arith.constant 1 : index
    %c0_26 = arith.constant 0 : index
    %28 = vector.load %arg7[%c0_23, %c1_24, %c1_25, %c0_26] : memref<1x18x16x24xf32, #tpu.memory_space<vmem>>, vector<1x16x15x8xf32>
    %29 = vector.shape_cast %28 : vector<1x16x15x8xf32> to vector<16x15x8xf32>
    %30 = vector.shape_cast %27 : vector<16x15x8xf32> to vector<1x16x15x8xf32>
    tpu.vector_store %arg7[%c0_23, %c1_24, %c1_25, %c0_26], %30 {strides = array<i32>} : memref<1x18x16x24xf32, #tpu.memory_space<vmem>>, vector<1x16x15x8xf32>,
    %c0_27 = arith.constant 0 : index
    %c0_28 = arith.constant 0 : index
    %c0_29 = arith.constant 0 : index
    %c0_30 = arith.constant 0 : index
    %31 = vector.load %arg1[%c0_27, %c0_28, %c0_29, %c0_30] : memref<1x16x16x8xf32, #tpu.memory_space<vmem>>, vector<1x16x16x8xf32>
    %32 = vector.shape_cast %31 : vector<1x16x16x8xf32> to vector<16x16x8xf32>
    %33 = vector.shape_cast %0 : vector<1x8xf32> to vector<1x1x8xf32>
    %34 = vector.broadcast %33 : vector<1x1x8xf32> to vector<16x16x8xf32>
    %35 = arith.mulf %32, %34 : vector<16x16x8xf32>
    %36 = vector.shape_cast %1 : vector<1x8xf32> to vector<1x1x8xf32>
    %37 = vector.broadcast %36 : vector<1x1x8xf32> to vector<16x16x8xf32>
    %38 = arith.addf %35, %37 : vector<16x16x8xf32>
    %cst_31 = arith.constant 0.000000e+00 : f32
    %39 = vector.broadcast %cst_31 : f32 to vector<16x16x8xf32>
    %40 = arith.maximumf %38, %39 : vector<16x16x8xf32>
    %c0_32 = arith.constant 0 : index
    %c1_33 = arith.constant 1 : index
    %c0_34 = arith.constant 0 : index
    %c8 = arith.constant 8 : index
    %41 = vector.load %arg7[%c0_32, %c1_33, %c0_34, %c8] : memref<1x18x16x24xf32, #tpu.memory_space<vmem>>, vector<1x16x16x8xf32>
    %42 = vector.shape_cast %41 : vector<1x16x16x8xf32> to vector<16x16x8xf32>
    %43 = vector.shape_cast %40 : vector<16x16x8xf32> to vector<1x16x16x8xf32>
    tpu.vector_store %arg7[%c0_32, %c1_33, %c0_34, %c8], %43 {strides = array<i32>} : memref<1x18x16x24xf32, #tpu.memory_space<vmem>>, vector<1x16x16x8xf32>,
    %c0_35 = arith.constant 0 : index
    %c0_36 = arith.constant 0 : index
    %c1_37 = arith.constant 1 : index
    %c0_38 = arith.constant 0 : index
    %44 = vector.load %arg1[%c0_35, %c0_36, %c1_37, %c0_38] : memref<1x16x16x8xf32, #tpu.memory_space<vmem>>, vector<1x16x15x8xf32>
    %45 = vector.shape_cast %44 : vector<1x16x15x8xf32> to vector<16x15x8xf32>
    %46 = vector.shape_cast %0 : vector<1x8xf32> to vector<1x1x8xf32>
    %47 = vector.broadcast %46 : vector<1x1x8xf32> to vector<16x15x8xf32>
    %48 = arith.mulf %45, %47 : vector<16x15x8xf32>
    %49 = vector.shape_cast %1 : vector<1x8xf32> to vector<1x1x8xf32>
    %50 = vector.broadcast %49 : vector<1x1x8xf32> to vector<16x15x8xf32>
    %51 = arith.addf %48, %50 : vector<16x15x8xf32>
    %cst_39 = arith.constant 0.000000e+00 : f32
    %52 = vector.broadcast %cst_39 : f32 to vector<16x15x8xf32>
    %53 = arith.maximumf %51, %52 : vector<16x15x8xf32>
    %c0_40 = arith.constant 0 : index
    %c1_41 = arith.constant 1 : index
    %c0_42 = arith.constant 0 : index
    %c16_43 = arith.constant 16 : index
    %54 = vector.load %arg7[%c0_40, %c1_41, %c0_42, %c16_43] : memref<1x18x16x24xf32, #tpu.memory_space<vmem>>, vector<1x16x15x8xf32>
    %55 = vector.shape_cast %54 : vector<1x16x15x8xf32> to vector<16x15x8xf32>
    %56 = vector.shape_cast %53 : vector<16x15x8xf32> to vector<1x16x15x8xf32>
    tpu.vector_store %arg7[%c0_40, %c1_41, %c0_42, %c16_43], %56 {strides = array<i32>} : memref<1x18x16x24xf32, #tpu.memory_space<vmem>>, vector<1x16x15x8xf32>,
    %c0_44 = arith.constant 0 : index
    %c0_45 = arith.constant 0 : index
    %c0_46 = arith.constant 0 : index
    %c0_47 = arith.constant 0 : index
    %57 = vector.load %arg7[%c0_44, %c0_45, %c0_46, %c0_47] : memref<1x18x16x24xf32, #tpu.memory_space<vmem>>, vector<1x16x16x24xf32>
    %58 = vector.shape_cast %57 : vector<1x16x16x24xf32> to vector<16x16x24xf32>
    %59 = vector.shape_cast %58 : vector<16x16x24xf32> to vector<256x24xf32>
    %60 = arith.truncf %59 : vector<256x24xf32> to vector<256x24xbf16>
    %c0_48 = arith.constant 0 : index
    %c0_49 = arith.constant 0 : index
    %c0_50 = arith.constant 0 : index
    %61 = vector.load %arg4[%c0_48, %c0_49, %c0_50] : memref<3x24x8xbf16, #tpu.memory_space<vmem>>, vector<1x24x8xbf16>
    %62 = vector.shape_cast %61 : vector<1x24x8xbf16> to vector<24x8xbf16>
    %cst_51 = arith.constant dense<0.000000e+00> : vector<256x8xf32>
    %63 = tpu.matmul %60, %62, %cst_51 {dimension_numbers = #tpu.dot_dimension_numbers<[1], [0], [0], [1], [0, 0, 1, 1], [], []>} : vector<256x24xbf16>, vector<24x8xbf16>, vector<256x8xf32> -> vector<256x8xf32>
    %64 = vector.shape_cast %63 : vector<256x8xf32> to vector<1x16x16x8xf32>
    %c0_52 = arith.constant 0 : index
    %c0_53 = arith.constant 0 : index
    %c0_54 = arith.constant 0 : index
    %c0_55 = arith.constant 0 : index
    %65 = vector.load %arg5[%c0_52, %c0_53, %c0_54, %c0_55] : memref<1x16x16x8xf32, #tpu.memory_space<vmem>>, vector<1x16x16x8xf32>
    tpu.vector_store %arg5[%c0_52, %c0_53, %c0_54, %c0_55], %64 {strides = array<i32>} : memref<1x16x16x8xf32, #tpu.memory_space<vmem>>, vector<1x16x16x8xf32>,
    %c0_56 = arith.constant 0 : index
    %c1_57 = arith.constant 1 : index
    %c0_58 = arith.constant 0 : index
    %c0_59 = arith.constant 0 : index
    %66 = vector.load %arg7[%c0_56, %c1_57, %c0_58, %c0_59] : memref<1x18x16x24xf32, #tpu.memory_space<vmem>>, vector<1x16x16x24xf32>
    %67 = vector.shape_cast %66 : vector<1x16x16x24xf32> to vector<16x16x24xf32>
    %68 = vector.shape_cast %67 : vector<16x16x24xf32> to vector<256x24xf32>
    %69 = arith.truncf %68 : vector<256x24xf32> to vector<256x24xbf16>
    %c1_60 = arith.constant 1 : index
    %c0_61 = arith.constant 0 : index
    %c0_62 = arith.constant 0 : index
    %70 = vector.load %arg4[%c1_60, %c0_61, %c0_62] : memref<3x24x8xbf16, #tpu.memory_space<vmem>>, vector<1x24x8xbf16>
    %71 = vector.shape_cast %70 : vector<1x24x8xbf16> to vector<24x8xbf16>
    %cst_63 = arith.constant dense<0.000000e+00> : vector<256x8xf32>
    %72 = tpu.matmul %69, %71, %cst_63 {dimension_numbers = #tpu.dot_dimension_numbers<[1], [0], [0], [1], [0, 0, 1, 1], [], []>} : vector<256x24xbf16>, vector<24x8xbf16>, vector<256x8xf32> -> vector<256x8xf32>
    %73 = vector.shape_cast %72 : vector<256x8xf32> to vector<1x16x16x8xf32>
    %c0_64 = arith.constant 0 : index
    %c0_65 = arith.constant 0 : index
    %c0_66 = arith.constant 0 : index
    %c0_67 = arith.constant 0 : index
    %74 = vector.load %arg5[%c0_64, %c0_65, %c0_66, %c0_67] : memref<1x16x16x8xf32, #tpu.memory_space<vmem>>, vector<1x16x16x8xf32>
    %75 = arith.addf %74, %73 : vector<1x16x16x8xf32>
    %c0_68 = arith.constant 0 : index
    %c0_69 = arith.constant 0 : index
    %c0_70 = arith.constant 0 : index
    %c0_71 = arith.constant 0 : index
    %76 = vector.load %arg5[%c0_68, %c0_69, %c0_70, %c0_71] : memref<1x16x16x8xf32, #tpu.memory_space<vmem>>, vector<1x16x16x8xf32>
    tpu.vector_store %arg5[%c0_68, %c0_69, %c0_70, %c0_71], %75 {strides = array<i32>} : memref<1x16x16x8xf32, #tpu.memory_space<vmem>>, vector<1x16x16x8xf32>,
    %c0_72 = arith.constant 0 : index
    %c2 = arith.constant 2 : index
    %c0_73 = arith.constant 0 : index
    %c0_74 = arith.constant 0 : index
    %77 = vector.load %arg7[%c0_72, %c2, %c0_73, %c0_74] : memref<1x18x16x24xf32, #tpu.memory_space<vmem>>, vector<1x16x16x24xf32>
    %78 = vector.shape_cast %77 : vector<1x16x16x24xf32> to vector<16x16x24xf32>
    %79 = vector.shape_cast %78 : vector<16x16x24xf32> to vector<256x24xf32>
    %80 = arith.truncf %79 : vector<256x24xf32> to vector<256x24xbf16>
    %c2_75 = arith.constant 2 : index
    %c0_76 = arith.constant 0 : index
    %c0_77 = arith.constant 0 : index
    %81 = vector.load %arg4[%c2_75, %c0_76, %c0_77] : memref<3x24x8xbf16, #tpu.memory_space<vmem>>, vector<1x24x8xbf16>
    %82 = vector.shape_cast %81 : vector<1x24x8xbf16> to vector<24x8xbf16>
    %cst_78 = arith.constant dense<0.000000e+00> : vector<256x8xf32>
    %83 = tpu.matmul %80, %82, %cst_78 {dimension_numbers = #tpu.dot_dimension_numbers<[1], [0], [0], [1], [0, 0, 1, 1], [], []>} : vector<256x24xbf16>, vector<24x8xbf16>, vector<256x8xf32> -> vector<256x8xf32>
    %84 = vector.shape_cast %83 : vector<256x8xf32> to vector<1x16x16x8xf32>
    %c0_79 = arith.constant 0 : index
    %c0_80 = arith.constant 0 : index
    %c0_81 = arith.constant 0 : index
    %c0_82 = arith.constant 0 : index
    %85 = vector.load %arg5[%c0_79, %c0_80, %c0_81, %c0_82] : memref<1x16x16x8xf32, #tpu.memory_space<vmem>>, vector<1x16x16x8xf32>
    %86 = arith.addf %85, %84 : vector<1x16x16x8xf32>
    %c0_83 = arith.constant 0 : index
    %c0_84 = arith.constant 0 : index
    %c0_85 = arith.constant 0 : index
    %c0_86 = arith.constant 0 : index
    %87 = vector.load %arg5[%c0_83, %c0_84, %c0_85, %c0_86] : memref<1x16x16x8xf32, #tpu.memory_space<vmem>>, vector<1x16x16x8xf32>
    tpu.vector_store %arg5[%c0_83, %c0_84, %c0_85, %c0_86], %86 {strides = array<i32>} : memref<1x16x16x8xf32, #tpu.memory_space<vmem>>, vector<1x16x16x8xf32>,
    %c0_87 = arith.constant 0 : index
    %c0_88 = arith.constant 0 : index
    %c0_89 = arith.constant 0 : index
    %c0_90 = arith.constant 0 : index
    %88 = vector.load %arg5[%c0_87, %c0_88, %c0_89, %c0_90] : memref<1x16x16x8xf32, #tpu.memory_space<vmem>>, vector<1x16x16x8xf32>
    %89 = vector.shape_cast %88 : vector<1x16x16x8xf32> to vector<256x8xf32>
    %cst_91 = arith.constant dense<0.000000e+00> : vector<8xf32>
    %90 = vector.multi_reduction <add>, %89, %cst_91 [0] : vector<256x8xf32> to vector<8xf32>
    %91 = vector.shape_cast %90 : vector<8xf32> to vector<1x8xf32>
    %c0_92 = arith.constant 0 : index
    %c0_93 = arith.constant 0 : index
    %c0_94 = arith.constant 0 : index
    %92 = vector.load %arg6[%c0_92, %c0_93, %c0_94] : memref<1x2x8xf32, #tpu.memory_space<vmem>>, vector<1x1x8xf32>
    %93 = vector.shape_cast %92 : vector<1x1x8xf32> to vector<1x8xf32>
    %94 = vector.shape_cast %91 : vector<1x8xf32> to vector<1x1x8xf32>
    tpu.vector_store %arg6[%c0_92, %c0_93, %c0_94], %94 {strides = array<i32>} : memref<1x2x8xf32, #tpu.memory_space<vmem>>, vector<1x1x8xf32>,
    %95 = arith.mulf %89, %89 : vector<256x8xf32>
    %cst_95 = arith.constant dense<0.000000e+00> : vector<8xf32>
    %96 = vector.multi_reduction <add>, %95, %cst_95 [0] : vector<256x8xf32> to vector<8xf32>
    %97 = vector.shape_cast %96 : vector<8xf32> to vector<1x8xf32>
    %c0_96 = arith.constant 0 : index
    %c1_97 = arith.constant 1 : index
    %c0_98 = arith.constant 0 : index
    %98 = vector.load %arg6[%c0_96, %c1_97, %c0_98] : memref<1x2x8xf32, #tpu.memory_space<vmem>>, vector<1x1x8xf32>
    %99 = vector.shape_cast %98 : vector<1x1x8xf32> to vector<1x8xf32>
    %100 = vector.shape_cast %97 : vector<1x8xf32> to vector<1x1x8xf32>
    tpu.vector_store %arg6[%c0_96, %c1_97, %c0_98], %100 {strides = array<i32>} : memref<1x2x8xf32, #tpu.memory_space<vmem>>, vector<1x1x8xf32>,
    return
  }
  func.func @transform_0(%arg0: i32) -> (i32, i32, i32, i32) {
    %c0_i32 = arith.constant 0 : i32
    %c0_i32_0 = arith.constant 0 : i32
    %c0_i32_1 = arith.constant 0 : i32
    %c0_i32_2 = arith.constant 0 : i32
    return %arg0, %c0_i32, %c0_i32_0, %c0_i32_1 : i32, i32, i32, i32
  }
  func.func @transform_1(%arg0: i32) -> (i32, i32) {
    %c0_i32 = arith.constant 0 : i32
    %c0_i32_0 = arith.constant 0 : i32
    %c0_i32_1 = arith.constant 0 : i32
    return %c0_i32, %c0_i32_0 : i32, i32
  }
  func.func @transform_2(%arg0: i32) -> (i32, i32) {
    %c0_i32 = arith.constant 0 : i32
    %c0_i32_0 = arith.constant 0 : i32
    %c0_i32_1 = arith.constant 0 : i32
    return %c0_i32, %c0_i32_0 : i32, i32
  }
  func.func @transform_3(%arg0: i32) -> (i32, i32, i32) {
    %c0_i32 = arith.constant 0 : i32
    %c0_i32_0 = arith.constant 0 : i32
    %c0_i32_1 = arith.constant 0 : i32
    %c0_i32_2 = arith.constant 0 : i32
    return %c0_i32, %c0_i32_0, %c0_i32_1 : i32, i32, i32
  }
  func.func @transform_4(%arg0: i32) -> (i32, i32, i32, i32) {
    %c0_i32 = arith.constant 0 : i32
    %c0_i32_0 = arith.constant 0 : i32
    %c0_i32_1 = arith.constant 0 : i32
    %c0_i32_2 = arith.constant 0 : i32
    return %arg0, %c0_i32, %c0_i32_0, %c0_i32_1 : i32, i32, i32, i32
  }
  func.func @transform_5(%arg0: i32) -> (i32, i32, i32) {
    %c0_i32 = arith.constant 0 : i32
    %c0_i32_0 = arith.constant 0 : i32
    %c0_i32_1 = arith.constant 0 : i32
    return %arg0, %c0_i32, %c0_i32_0 : i32, i32, i32
  }
}

</mosaic_0001>

<bundles_post_ra>
// kernel: double_conv_forward.5
= control target key start
LH: loop header
LB: loop body
LE: loop exit
PB: predicated region body
PF: predicated region fallthrough
CT: control target
= control target key end

     0   :  { %s452_s12 = smov 0   ;;  %s643_s0 = inlined_call_operand.vmem [shape: f32[2,16,16,8], index: 0, kind: input, shape index: {}]   ;;  %s644_s1 = inlined_call_operand.vmem [shape: f32[1,8], index: 1, kind: input, shape index: {}]   ;;  %s645_s2 = inlined_call_operand.vmem [shape: f32[1,8], index: 2, kind: input, shape index: {}]   ;;  %s646_s3 = inlined_call_operand.vmem [shape: f32[2,16,16,8], index: 3, kind: output, shape index: {}]  }
   0x1 LB: > { %s401_s13 = sadd.s32 4294967295, %s430_s12   ;;  %p405_p0 = scmp.ge.s32.totalorder %s430_s12, 1  ;;  %s430_s12 = sphi %s452_s12, %s13_s12  }
   0x2   : > { %p137_p1 = scmp.lt.s32.totalorder %s430_s12, 3 }
   0x4   : > { %p138_p2 = pnand %p405_p0, %p137_p1 }
   0x5   : > { %p161_p3 = scmp.lt.s32.totalorder (!%p138_p2), %s401_s13, 1  ;;  %v463_v0 = vld [vmem:[%s644_s1] ss:$0 sm:$0xff] (!%p138_p2)  ;;  %vm313_vm0 = vcmask (!%p138_p2), 64512  }
   0x6   : > { %141 = sbr.rel (%p138_p2) target bundleno = 46 (0x2e), region = 32  ;;  %v473_v1 = vld [vmem:[%s645_s2] ss:$0 sm:$0xff] (!%p138_p2) }
   0xd   : > { %s648_s13 = smov (!%p161_p3, %s401_s13), 1 }
   0xe   : > { %s414_s14 = sshll.u32 %s648_s13, 8 }
   0xf   : > { %s468_s19 = scalar_lea.vmem %s643_s0, %s414_s14  ;;  %s496_s24 = scalar_lea.vmem %s646_s3, %s414_s14 }
  0x10   : > { %v171_v2 = vld [vmem:[%s468_s19] sm:$0xff]  ;;  %v172_v3 = vld [vmem:[%s468_s19 + $0x8] sm:$0xff]  ;;  %v173_v4 = vld [vmem:[%s468_s19 + $0x10] sm:$0xff] }
  0x11   : > { %v210_v5 = vmul.f32 %v463_v0, %v171_v2  ;;  %v211_v6 = vmul.f32 %v463_v0, %v172_v3  ;;  %v212_v7 = vmul.f32 %v463_v0, %v173_v4  ;;  %v174_v8 = vld [vmem:[%s468_s19 + $0x18] sm:$0xff]  ;;  %v175_v9 = vld [vmem:[%s468_s19 + $0x20] sm:$0xff]  ;;  %v176_v10 = vld [vmem:[%s468_s19 + $0x28] sm:$0xff] }
  0x12   : > { %v213_v11 = vmul.f32 %v463_v0, %v174_v8  ;;  %v214_v12 = vmul.f32 %v463_v0, %v175_v9  ;;  %v215_v13 = vmul.f32 %v463_v0, %v176_v10  ;;  %v177_v14 = vld [vmem:[%s468_s19 + $0x30] sm:$0xff]  ;;  %v178_v15 = vld [vmem:[%s468_s19 + $0x38] sm:$0xff]  ;;  %v179_v24 = vld [vmem:[%s468_s19 + $0x40] sm:$0xff] }
  0x13   : > { %v249_v16 = vadd.f32 %v473_v1, %v210_v5  ;;  %v250_v17 = vadd.f32 %v473_v1, %v211_v6  ;;  %v251_v18 = vadd.f32 %v473_v1, %v212_v7  ;;  %v216_v19 = vmul.f32 %v463_v0, %v177_v14  ;;  %v180_v25 = vld [vmem:[%s468_s19 + $0x48] sm:$0xff]  ;;  %v181_v26 = vld [vmem:[%s468_s19 + $0x50] sm:$0xff]  ;;  %v182_v31 = vld [vmem:[%s468_s19 + $0x58] sm:$0xff] }
  0x14   : > { %v252_v20 = vadd.f32 %v473_v1, %v213_v11  ;;  %v253_v21 = vadd.f32 %v473_v1, %v214_v12  ;;  %v254_v22 = vadd.f32 %v473_v1, %v215_v13  ;;  %v217_v23 = vmul.f32 %v463_v0, %v178_v15  ;;  %v183_v32 = vld [vmem:[%s468_s19 + $0x60] sm:$0xff]  ;;  %v184_v33 = vld [vmem:[%s468_s19 + $0x68] sm:$0xff]  ;;  %v185_v38 = vld [vmem:[%s468_s19 + $0x70] sm:$0xff] }
  0x15   : > { %v281_v27 = vmax.f32 %v249_v16, 0.0  ;;  %v282_v28 = vmax.f32 %v250_v17, 0.0  ;;  %v283_v29 = vmax.f32 %v251_v18, 0.0  ;;  %v255_v30 = vadd.f32 %v473_v1, %v216_v19  ;;  %v186_v43 = vld [vmem:[%s468_s19 + $0x78] sm:$0xff]  ;;  %v187_v56 = vld [vmem:[%s468_s19 + $0x80] sm:$0xff]  ;;  %v188_v57 = vld [vmem:[%s468_s19 + $0x88] sm:$0xff] }
  0x16   : > { %v284_v34 = vmax.f32 %v252_v20, 0.0  ;;  %v285_v35 = vmax.f32 %v253_v21, 0.0  ;;  %v286_v36 = vmax.f32 %v254_v22, 0.0  ;;  %v256_v37 = vadd.f32 %v473_v1, %v217_v23  ;;  %v189_v58 = vld [vmem:[%s468_s19 + $0x90] sm:$0xff]  ;;  %v190_v63 = vld [vmem:[%s468_s19 + $0x98] sm:$0xff]  ;;  %v191_v2 = vld [vmem:[%s468_s19 + $0xa0] sm:$0xff] }
  0x17   : > { %314 = vst.msk [vmem:[%s496_s24] sm:$0xff] %vm313_vm0, %v281_v27  ;;  %315 = vst.msk [vmem:[%s496_s24 + $0x8] sm:$0xff] %vm313_vm0, %v282_v28  ;;  %v287_v39 = vmax.f32 %v255_v30, 0.0  ;;  %v218_v40 = vmul.f32 %v463_v0, %v179_v24  ;;  %v219_v41 = vmul.f32 %v463_v0, %v180_v25  ;;  %v220_v42 = vmul.f32 %v463_v0, %v181_v26  ;;  %v192_v3 = vld [vmem:[%s468_s19 + $0xa8] sm:$0xff]  ;;  %v193_v8 = vld [vmem:[%s468_s19 + $0xb0] sm:$0xff] }
  0x18   : > { %316 = vst.msk [vmem:[%s496_s24 + $0x10] sm:$0xff] %vm313_vm0, %v283_v29  ;;  %317 = vst.msk [vmem:[%s496_s24 + $0x18] sm:$0xff] %vm313_vm0, %v284_v34  ;;  %v288_v44 = vmax.f32 %v256_v37, 0.0  ;;  %v221_v45 = vmul.f32 %v463_v0, %v182_v31  ;;  %v222_v46 = vmul.f32 %v463_v0, %v183_v32  ;;  %v223_v47 = vmul.f32 %v463_v0, %v184_v33  ;;  %v194_v13 = vld [vmem:[%s468_s19 + $0xb8] sm:$0xff]  ;;  %v195_v26 = vld [vmem:[%s468_s19 + $0xc0] sm:$0xff] }
  0x19   : > { %318 = vst.msk [vmem:[%s496_s24 + $0x20] sm:$0xff] %vm313_vm0, %v285_v35  ;;  %319 = vst.msk [vmem:[%s496_s24 + $0x28] sm:$0xff] %vm313_vm0, %v286_v36  ;;  %v257_v48 = vadd.f32 %v473_v1, %v218_v40  ;;  %v258_v49 = vadd.f32 %v473_v1, %v219_v41  ;;  %v259_v50 = vadd.f32 %v473_v1, %v220_v42  ;;  %v196_v27 = vld [vmem:[%s468_s19 + $0xc8] sm:$0xff]  ;;  %v197_v28 = vld [vmem:[%s468_s19 + $0xd0] sm:$0xff] }
  0x1a   : > { %320 = vst.msk [vmem:[%s496_s24 + $0x30] sm:$0xff] %vm313_vm0, %v287_v39  ;;  %v224_v51 = vmul.f32 %v463_v0, %v185_v38  ;;  %321 = vst.msk [vmem:[%s496_s24 + $0x38] sm:$0xff] %vm313_vm0, %v288_v44  ;;  %v260_v52 = vadd.f32 %v473_v1, %v221_v45  ;;  %v261_v53 = vadd.f32 %v473_v1, %v222_v46  ;;  %v198_v33 = vld [vmem:[%s468_s19 + $0xd8] sm:$0xff]  ;;  %v199_v34 = vld [vmem:[%s468_s19 + $0xe0] sm:$0xff] }
  0x1b   : > { %v262_v54 = vadd.f32 %v473_v1, %v223_v47  ;;  %v225_v55 = vmul.f32 %v463_v0, %v186_v43  ;;  %v289_v59 = vmax.f32 %v257_v48, 0.0  ;;  %v290_v60 = vmax.f32 %v258_v49, 0.0  ;;  %v200_v35 = vld [vmem:[%s468_s19 + $0xe8] sm:$0xff]  ;;  %v201_v40 = vld [vmem:[%s468_s19 + $0xf0] sm:$0xff]  ;;  %v202_v45 = vld [vmem:[%s468_s19 + $0xf8] sm:$0xff] }
  0x1c   : > { %v291_v61 = vmax.f32 %v259_v50, 0.0  ;;  %v263_v62 = vadd.f32 %v473_v1, %v224_v51  ;;  %v292_v4 = vmax.f32 %v260_v52, 0.0  ;;  %v293_v5 = vmax.f32 %v261_v53, 0.0 }
  0x1d   : > { %v294_v6 = vmax.f32 %v262_v54, 0.0  ;;  %v264_v7 = vadd.f32 %v473_v1, %v225_v55  ;;  %322 = vst.msk [vmem:[%s496_s24 + $0x40] sm:$0xff] %vm313_vm0, %v289_v59  ;;  %323 = vst.msk [vmem:[%s496_s24 + $0x48] sm:$0xff] %vm313_vm0, %v290_v60  ;;  %v226_v10 = vmul.f32 %v463_v0, %v187_v56  ;;  %v227_v11 = vmul.f32 %v463_v0, %v188_v57 }
  0x1e   : > { %324 = vst.msk [vmem:[%s496_s24 + $0x50] sm:$0xff] %vm313_vm0, %v291_v61  ;;  %v295_v9 = vmax.f32 %v263_v62, 0.0  ;;  %v228_v12 = vmul.f32 %v463_v0, %v189_v58  ;;  %325 = vst.msk [vmem:[%s496_s24 + $0x58] sm:$0xff] %vm313_vm0, %v292_v4  ;;  %v229_v15 = vmul.f32 %v463_v0, %v190_v63  ;;  %v230_v16 = vmul.f32 %v463_v0, %v191_v2 }
  0x1f   : > { %326 = vst.msk [vmem:[%s496_s24 + $0x60] sm:$0xff] %vm313_vm0, %v293_v5  ;;  %327 = vst.msk [vmem:[%s496_s24 + $0x68] sm:$0xff] %vm313_vm0, %v294_v6  ;;  %v296_v14 = vmax.f32 %v264_v7, 0.0  ;;  %v231_v17 = vmul.f32 %v463_v0, %v192_v3  ;;  %v265_v18 = vadd.f32 %v473_v1, %v226_v10  ;;  %v266_v19 = vadd.f32 %v473_v1, %v227_v11 }
  0x20   : > { %328 = vst.msk [vmem:[%s496_s24 + $0x70] sm:$0xff] %vm313_vm0, %v295_v9  ;;  %v267_v20 = vadd.f32 %v473_v1, %v228_v12  ;;  %v232_v21 = vmul.f32 %v463_v0, %v193_v8  ;;  %v268_v22 = vadd.f32 %v473_v1, %v229_v15  ;;  %v269_v23 = vadd.f32 %v473_v1, %v230_v16 }
  0x21   : > { %329 = vst.msk [vmem:[%s496_s24 + $0x78] sm:$0xff] %vm313_vm0, %v296_v14  ;;  %v270_v24 = vadd.f32 %v473_v1, %v231_v17  ;;  %v233_v25 = vmul.f32 %v463_v0, %v194_v13  ;;  %v297_v29 = vmax.f32 %v265_v18, 0.0  ;;  %v298_v30 = vmax.f32 %v266_v19, 0.0 }
  0x22   : > { %v299_v31 = vmax.f32 %v267_v20, 0.0  ;;  %v271_v32 = vadd.f32 %v473_v1, %v232_v21  ;;  %v300_v36 = vmax.f32 %v268_v22, 0.0  ;;  %v301_v37 = vmax.f32 %v269_v23, 0.0 }
  0x23   : > { %v302_v38 = vmax.f32 %v270_v24, 0.0  ;;  %v272_v39 = vadd.f32 %v473_v1, %v233_v25  ;;  %330 = vst.msk [vmem:[%s496_s24 + $0x80] sm:$0xff] %vm313_vm0, %v297_v29  ;;  %331 = vst.msk [vmem:[%s496_s24 + $0x88] sm:$0xff] %vm313_vm0, %v298_v30  ;;  %v234_v42 = vmul.f32 %v463_v0, %v195_v26  ;;  %v235_v43 = vmul.f32 %v463_v0, %v196_v27 }
  0x24   : > { %332 = vst.msk [vmem:[%s496_s24 + $0x90] sm:$0xff] %vm313_vm0, %v299_v31  ;;  %v303_v41 = vmax.f32 %v271_v32, 0.0  ;;  %v236_v44 = vmul.f32 %v463_v0, %v197_v28  ;;  %333 = vst.msk [vmem:[%s496_s24 + $0x98] sm:$0xff] %vm313_vm0, %v300_v36  ;;  %v237_v47 = vmul.f32 %v463_v0, %v198_v33  ;;  %v238_v48 = vmul.f32 %v463_v0, %v199_v34 }
  0x25   : > { %334 = vst.msk [vmem:[%s496_s24 + $0xa0] sm:$0xff] %vm313_vm0, %v301_v37  ;;  %335 = vst.msk [vmem:[%s496_s24 + $0xa8] sm:$0xff] %vm313_vm0, %v302_v38  ;;  %v304_v46 = vmax.f32 %v272_v39, 0.0  ;;  %v239_v49 = vmul.f32 %v463_v0, %v200_v35  ;;  %v273_v50 = vadd.f32 %v473_v1, %v234_v42  ;;  %v274_v51 = vadd.f32 %v473_v1, %v235_v43 }
  0x26   : > { %336 = vst.msk [vmem:[%s496_s24 + $0xb0] sm:$0xff] %vm313_vm0, %v303_v41  ;;  %v275_v52 = vadd.f32 %v473_v1, %v236_v44  ;;  %v240_v53 = vmul.f32 %v463_v0, %v201_v40  ;;  %v276_v54 = vadd.f32 %v473_v1, %v237_v47  ;;  %v277_v55 = vadd.f32 %v473_v1, %v238_v48 }
  0x27   : > { %337 = vst.msk [vmem:[%s496_s24 + $0xb8] sm:$0xff] %vm313_vm0, %v304_v46  ;;  %v278_v56 = vadd.f32 %v473_v1, %v239_v49  ;;  %v241_v57 = vmul.f32 %v463_v0, %v202_v45  ;;  %v305_v58 = vmax.f32 %v273_v50, 0.0  ;;  %v306_v59 = vmax.f32 %v274_v51, 0.0 }
  0x28   : > { %v307_v60 = vmax.f32 %v275_v52, 0.0  ;;  %v279_v61 = vadd.f32 %v473_v1, %v240_v53  ;;  %v308_v62 = vmax.f32 %v276_v54, 0.0  ;;  %v309_v63 = vmax.f32 %v277_v55, 0.0 }
  0x29   : > { %v310_v2 = vmax.f32 %v278_v56, 0.0  ;;  %v280_v3 = vadd.f32 %v473_v1, %v241_v57  ;;  %338 = vst.msk [vmem:[%s496_s24 + $0xc0] sm:$0xff] %vm313_vm0, %v305_v58  ;;  %339 = vst.msk [vmem:[%s496_s24 + $0xc8] sm:$0xff] %vm313_vm0, %v306_v59 }
  0x2a   : > { %340 = vst.msk [vmem:[%s496_s24 + $0xd0] sm:$0xff] %vm313_vm0, %v307_v60  ;;  %v311_v4 = vmax.f32 %v279_v61, 0.0  ;;  %341 = vst.msk [vmem:[%s496_s24 + $0xd8] sm:$0xff] %vm313_vm0, %v308_v62 }
  0x2b   : > { %342 = vst.msk [vmem:[%s496_s24 + $0xe0] sm:$0xff] %vm313_vm0, %v309_v63  ;;  %343 = vst.msk [vmem:[%s496_s24 + $0xe8] sm:$0xff] %vm313_vm0, %v310_v2  ;;  %v312_v0 = vmax.f32 %v280_v3, 0.0 }
  0x2c   : > { %344 = vst.msk [vmem:[%s496_s24 + $0xf0] sm:$0xff] %vm313_vm0, %v311_v4 }
  0x2d   : > { %345 = vst.msk [vmem:[%s496_s24 + $0xf8] sm:$0xff] %vm313_vm0, %v312_v0 }
  0x2e PF: > { %s13_s12 = sadd.s32 1, %s430_s12  }
  0x2f   : > { %p10_p4 = scmp.ge.s32.totalorder %s13_s12, 4  }
  0x31   :  { %12 = sbr.rel (!%p10_p4) target bundleno = 1 (0x1), region = 62 }

// kernel: double_conv_forward.3
= control target key start
LH: loop header
LB: loop body
LE: loop exit
PB: predicated region body
PF: predicated region fallthrough
CT: control target
= control target key end

     0   :  { %s2335_s18 = smov 0   ;;  %s3175_s0 = inlined_call_operand.vmem [shape: f32[2,16,16,4], index: 0, kind: input, shape index: {}]   ;;  %s3176_s1 = inlined_call_operand.vmem [shape: f32[1,4], index: 1, kind: input, shape index: {}]   ;;  %s3177_s2 = inlined_call_operand.vmem [shape: f32[1,4], index: 2, kind: input, shape index: {}]   ;;  %s3178_s3 = inlined_call_operand.vmem [shape: bf16[3,12,8], index: 3, kind: input, shape index: {}]   ;;  %s3179_s4 = inlined_call_operand.vmem [shape: f32[2,16,16,8], index: 4, kind: output, shape index: {0}]   ;;  %s3180_s5 = inlined_call_operand.vmem [shape: f32[2,2,8], index: 5, kind: output, shape index: {1}]  }
   0x1 LB: > { %s2052_s1 = sadd.s32 4294967295, %s2300_s18   ;;  %p2056_p0 = scmp.ge.s32.totalorder %s2300_s18, 1  ;;  %s2300_s18 = sphi %s2335_s18, %s16_s18  }
   0x2   : > { %p190_p1 = scmp.lt.s32.totalorder %s2300_s18, 3 }
   0x4   : > { %p191_p2 = pnand %p2056_p0, %p190_p1 }
   0x5   : > { %p2343_p3 = scmp.lt.s32.totalorder (!%p191_p2), %s2052_s1, 1  ;;  %vm244_vm0 = vcmask (!%p191_p2), 24576   ;;  %v2302_v0 = vmov (!%p191_p2), 0.0   ;;  %vm261_vm1 = vcmask (!%p191_p2), 90176   ;;  %vm310_vm2 = vcmask (!%p191_p2), 31744   ;;  %s2303_s23 = smov (!%p191_p2), 4  }
   0x6   : > { %194 = sbr.rel (%p191_p2) target bundleno = 570 (0x23a), region = 36  ;;  %253 = vst.msk [vmem:[#allocation2 + $0x90] sm:$0x1] (!%p191_p2), %vm244_vm0, %v2302_v0  ;;  %245 = vst.msk [vmem:[#allocation2 + $0x10] sm:$0x1] (!%p191_p2), %vm244_vm0, %v2302_v0  ;;  %vm237_vm3 = vcmask (!%p191_p2), 97280  }
   0x7   : > { %246 = vst.msk [vmem:[#allocation2 + $0x20] sm:$0x1] (!%p191_p2), %vm244_vm0, %v2302_v0  ;;  %247 = vst.msk [vmem:[#allocation2 + $0x30] sm:$0x1] (!%p191_p2), %vm244_vm0, %v2302_v0  ;;  %s2304_s24 = smov (!%p191_p2), 8   ;;  %vm312_vm4 = vcmask (!%p191_p2), 30720  }
   0x8   : > { %248 = vst.msk [vmem:[#allocation2 + $0x40] sm:$0x1] (!%p191_p2), %vm244_vm0, %v2302_v0  ;;  %249 = vst.msk [vmem:[#allocation2 + $0x50] sm:$0x1] (!%p191_p2), %vm244_vm0, %v2302_v0  ;;  %vm834_vm5 = vcmask (!%p191_p2), 1045504   ;;  %vm504_vm6 = vcmask (!%p191_p2), 64544  }
   0x9   : > { %250 = vst.msk [vmem:[#allocation2 + $0x60] sm:$0x1] (!%p191_p2), %vm244_vm0, %v2302_v0  ;;  %251 = vst.msk [vmem:[#allocation2 + $0x70] sm:$0x1] (!%p191_p2), %vm244_vm0, %v2302_v0  ;;  %v2291_v29 = vld [vmem:[%s3178_s3] sm:$0x3f] (!%p191_p2)  }
   0xa   : > { %252 = vst.msk [vmem:[#allocation2 + $0x80] sm:$0x1] (!%p191_p2), %vm244_vm0, %v2302_v0  ;;  %254 = vst.msk [vmem:[#allocation2 + $0xa0] sm:$0x1] (!%p191_p2), %vm244_vm0, %v2302_v0  ;;  %v836_v33 = vsel (!%p191_p2), %vm834_vm5, %v2291_v29, 0  ;;  %2277 = vmatprep.subr.msk.bf16.mxu1 (!%p191_p2), %vm834_vm5, %v2291_v29  ;;  %2276 = vmatprep.subr.msk.bf16.mxu0 (!%p191_p2), %vm834_vm5, %v2291_v29  ;;  %vm699_vm7 = vcmask (!%p191_p2), 96320  }
   0xb   : > { %255 = vst.msk [vmem:[#allocation2 + $0xb0] sm:$0x1] (!%p191_p2), %vm244_vm0, %v2302_v0  ;;  %256 = vst.msk [vmem:[#allocation2 + $0xc0] sm:$0x1] (!%p191_p2), %vm244_vm0, %v2302_v0  ;;  %2275 = vmatpush3.bf16.msra.mxu1 (!%p191_p2), %v836_v33  ;;  %2173 = vmatpush3.bf16.msra.mxu0 (!%p191_p2), %v836_v33  ;;  %vm697_vm8 = vcmask (!%p191_p2), 97344   ;;  %vm999_vm9 = vcmask (!%p191_p2), 64512  }
   0xc   : > { %257 = vst.msk [vmem:[#allocation2 + $0xd0] sm:$0x1] (!%p191_p2), %vm244_vm0, %v2302_v0  ;;  %258 = vst.msk [vmem:[#allocation2 + $0xe0] sm:$0x1] (!%p191_p2), %vm244_vm0, %v2302_v0  ;;  %vm1862_vm10 = vcmask (!%p191_p2), 57344  }
   0xd   : > { %259 = vst.msk [vmem:[#allocation2 + $0xf0] sm:$0x1] %vm244_vm0, %v2302_v0  ;;  %260 = vst.msk [vmem:[#allocation2 + $0x100] sm:$0x1] %vm244_vm0, %v2302_v0  ;;  %s3183_s1 = smov (!%p2343_p3, %s2052_s1), 1 }
   0xe   : > { %270 = vst.msk [vmem:[#allocation2 + $0x9f] sm:$0x1] %vm261_vm1, %v2302_v0  ;;  %262 = vst.msk [vmem:[#allocation2 + $0x1f] sm:$0x1] %vm261_vm1, %v2302_v0  ;;  %s2119_s19 = sshll.u32 %s3183_s1, 8  ;;  %s2061_s9 = sshll.u32 %s3183_s1, 1 }
   0xf   : > { %263 = vst.msk [vmem:[#allocation2 + $0x2f] sm:$0x1] %vm261_vm1, %v2302_v0  ;;  %264 = vst.msk [vmem:[#allocation2 + $0x3f] sm:$0x1] %vm261_vm1, %v2302_v0  ;;  %s2389_s22 = scalar_lea.vmem %s3175_s0, %s2119_s19  ;;  %s2814_s8 = scalar_lea.vmem %s3179_s4, %s2119_s19 }
  0x10   : > { %265 = vst.msk [vmem:[#allocation2 + $0x4f] sm:$0x1] %vm261_vm1, %v2302_v0  ;;  %266 = vst.msk [vmem:[#allocation2 + $0x5f] sm:$0x1] %vm261_vm1, %v2302_v0  ;;  %v360_v1 = vld [vmem:[%s2389_s22 + $0x80] sm:$0xff]  ;;  %v358_v2 = vld [vmem:[%s2389_s22 + $0x70] sm:$0xff]  ;;  %s235_s12 = scalar_lea.vmem %s3180_s5, %s2061_s9 }
  0x11   : > { %267 = vst.msk [vmem:[#allocation2 + $0x6f] sm:$0x1] %vm261_vm1, %v2302_v0  ;;  %268 = vst.msk [vmem:[#allocation2 + $0x7f] sm:$0x1] %vm261_vm1, %v2302_v0  ;;  %440 = vrot.lane.b32.xlu1 %v360_v1, %s2303_s23  ;;  %436 = vrot.lane.b32.xlu0 %v358_v2, %s2303_s23  ;;  %v361_v3 = vld [vmem:[%s2389_s22 + $0x88] sm:$0xff]  ;;  %v359_v4 = vld [vmem:[%s2389_s22 + $0x78] sm:$0xff] }
  0x12   : > { %269 = vst.msk [vmem:[#allocation2 + $0x8f] sm:$0x1] %vm261_vm1, %v2302_v0  ;;  %271 = vst.msk [vmem:[#allocation2 + $0xaf] sm:$0x1] %vm261_vm1, %v2302_v0  ;;  %v362_v5 = vld [vmem:[%s2389_s22 + $0x90] sm:$0xff]  ;;  %v364_v6 = vld [vmem:[%s2389_s22 + $0xa0] sm:$0xff] }
  0x13   : > { %272 = vst.msk [vmem:[#allocation2 + $0xbf] sm:$0x1] %vm261_vm1, %v2302_v0  ;;  %273 = vst.msk [vmem:[#allocation2 + $0xcf] sm:$0x1] %vm261_vm1, %v2302_v0  ;;  %v552_v7 = vld [vmem:[%s2389_s22 + $0x79] sm:$0x7f] }
  0x14   : > { %274 = vst.msk [vmem:[#allocation2 + $0xdf] sm:$0x1] %vm261_vm1, %v2302_v0  ;;  %275 = vst.msk [vmem:[#allocation2 + $0xef] sm:$0x1] %vm261_vm1, %v2302_v0  ;;  %v551_v8 = vld [vmem:[%s2389_s22 + $0x71] sm:$0xff]  ;;  %v2412_v9 = vld [vmem:[%s2389_s22] sm:$0xff] }
  0x15   : > { %276 = vst.msk [vmem:[#allocation2 + $0xff] sm:$0x1] %vm261_vm1, %v2302_v0  ;;  %277 = vst.msk [vmem:[#allocation2 + $0x10f] sm:$0x1] %vm261_vm1, %v2302_v0  ;;  %442 = vrot.lane.b32.xlu1 %v361_v3, %s2303_s23  ;;  %438 = vrot.lane.b32.xlu0 %v359_v4, %s2303_s23  ;;  %v2415_v10 = vld [vmem:[%s2389_s22 + $0xb0] sm:$0xff]  ;;  %v2420_v11 = vld [vmem:[%s2389_s22 + $0xc0] sm:$0xff] }
  0x16   : > { %328 = vst.msk [vmem:[#allocation2 + $0x91] sm:$0xff] %vm310_vm2, %v360_v1  ;;  %326 = vst.msk [vmem:[#allocation2 + $0x81] sm:$0xff] %vm310_vm2, %v358_v2  ;;  %v554_v12 = vld [vmem:[%s2389_s22 + $0x89] sm:$0x7f]  ;;  %v553_v13 = vld [vmem:[%s2389_s22 + $0x81] sm:$0xff] }
  0x17   : > { %330 = vst.msk [vmem:[#allocation2 + $0xa1] sm:$0xff] %vm310_vm2, %v362_v5  ;;  %332 = vst.msk [vmem:[#allocation2 + $0xb1] sm:$0xff] %vm310_vm2, %v364_v6  ;;  %v2431_v14 = vld [vmem:[%s2389_s22 + $0x10] sm:$0xff]  ;;  %v2434_v15 = vld [vmem:[%s2389_s22 + $0x20] sm:$0xff] }
  0x18   : > { %238 = vst.msk [vmem:[#allocation2] sm:$0xff] %vm237_vm3, %v2302_v0  ;;  %239 = vst.msk [vmem:[#allocation2 + $0x8] sm:$0xff] %vm237_vm3, %v2302_v0  ;;  %v2443_v16 = vld [vmem:[%s2389_s22 + $0xd0] sm:$0xff]  ;;  %v363_v17 = vld [vmem:[%s2389_s22 + $0x98] sm:$0xff] }
  0x19   : > { %241 = vst.msk [vmem:[#allocation2 + $0x110] sm:$0xff] %vm237_vm3, %v2302_v0  ;;  %242 = vst.msk [vmem:[#allocation2 + $0x118] sm:$0xff] %vm237_vm3, %v2302_v0  ;;  %631 = vrot.lane.b32.xlu1 %v552_v7, %s2304_s24  ;;  %629 = vrot.lane.b32.xlu0 %v551_v8, %s2304_s24  ;;  %v2447_v18 = vld [vmem:[%s2389_s22 + $0xe0] sm:$0xff]  ;;  %v2452_v19 = vld [vmem:[%s2389_s22 + $0x30] sm:$0xff] }
  0x1a   : > { %311 = vst.msk [vmem:[#allocation2 + $0x11] sm:$0xff] %vm310_vm2, %v2412_v9  ;;  %334 = vst.msk [vmem:[#allocation2 + $0xc1] sm:$0xff] %vm310_vm2, %v2415_v10  ;;  %v2461_v20 = vld [vmem:[%s2389_s22 + $0x40] sm:$0xff]  ;;  %v365_v21 = vld [vmem:[%s2389_s22 + $0xa8] sm:$0xff] }
  0x1b   : > { %336 = vst.msk [vmem:[#allocation2 + $0xd1] sm:$0xff] %vm310_vm2, %v2420_v11  ;;  %314 = vst.msk [vmem:[#allocation2 + $0x21] sm:$0xff] %vm310_vm2, %v2431_v14  ;;  %v2467_v22 = vld [vmem:[%s2389_s22 + $0x50] sm:$0xff]  ;;  %v2470_v23 = vld [vmem:[%s2389_s22 + $0x60] sm:$0xff] }
  0x1c   : > { %316 = vst.msk [vmem:[#allocation2 + $0x31] sm:$0xff] %vm310_vm2, %v2434_v15  ;;  %338 = vst.msk [vmem:[#allocation2 + $0xe1] sm:$0xff] %vm310_vm2, %v2443_v16  ;;  %v556_v24 = vld [vmem:[%s2389_s22 + $0x99] sm:$0x7f]  ;;  %v555_v25 = vld [vmem:[%s2389_s22 + $0x91] sm:$0xff] }
  0x1d   : > { %635 = vrot.lane.b32.xlu1 %v554_v12, %s2304_s24  ;;  %633 = vrot.lane.b32.xlu0 %v553_v13, %s2304_s24  ;;  %340 = vst.msk [vmem:[#allocation2 + $0xf1] sm:$0xff] %vm310_vm2, %v2447_v18  ;;  %318 = vst.msk [vmem:[#allocation2 + $0x41] sm:$0xff] %vm310_vm2, %v2452_v19  ;;  %v295_v26 = vld [vmem:[%s2389_s22 + $0x88] sm:$0x7f]  ;;  %v293_v27 = vld [vmem:[%s2389_s22 + $0x78] sm:$0x7f] }
  0x1e   : > { %320 = vst.msk [vmem:[#allocation2 + $0x51] sm:$0xff] %vm310_vm2, %v2461_v20  ;;  %322 = vst.msk [vmem:[#allocation2 + $0x61] sm:$0xff] %vm310_vm2, %v2467_v22  ;;  %v297_v28 = vld [vmem:[%s2389_s22 + $0x98] sm:$0x7f]  ;;  %v299_v30 = vld [vmem:[%s2389_s22 + $0xa8] sm:$0x7f] }
  0x1f   : > { %324 = vst.msk [vmem:[#allocation2 + $0x71] sm:$0xff] %vm310_vm2, %v2470_v23  ;;  %v279_v31 = vld [vmem:[%s2389_s22 + $0x8] sm:$0x7f]  ;;  %v2494_v32 = vld [vmem:[%s2389_s22 + $0xf0] sm:$0xff]  ;;  %v301_v36 = vld [vmem:[%s2389_s22 + $0xb8] sm:$0x7f] }
  0x20   : > { %329 = vst.msk [vmem:[#allocation2 + $0x99] sm:$0x7f] %vm312_vm4, %v295_v26  ;;  %327 = vst.msk [vmem:[#allocation2 + $0x89] sm:$0x7f] %vm312_vm4, %v293_v27  ;;  %v558_v34 = vld [vmem:[%s2389_s22 + $0xa9] sm:$0x7f] }
  0x21   : > { %446 = vrot.lane.b32.xlu1 %v363_v17, %s2303_s23  ;;  %444 = vrot.lane.b32.xlu0 %v362_v5, %s2303_s23  ;;  %331 = vst.msk [vmem:[#allocation2 + $0xa9] sm:$0x7f] %vm312_vm4, %v297_v28  ;;  %333 = vst.msk [vmem:[#allocation2 + $0xb9] sm:$0x7f] %vm312_vm4, %v299_v30  ;;  %v557_v35 = vld [vmem:[%s2389_s22 + $0xa1] sm:$0xff]  ;;  %v367_v44 = vld [vmem:[%s2389_s22 + $0xb8] sm:$0xff] }
  0x22   : > { %313 = vst.msk [vmem:[#allocation2 + $0x19] sm:$0x7f] %vm312_vm4, %v279_v31  ;;  %335 = vst.msk [vmem:[#allocation2 + $0xc9] sm:$0x7f] %vm312_vm4, %v301_v36  ;;  %v345_v37 = vld [vmem:[%s2389_s22 + $0x8] sm:$0xff]  ;;  %v731_v39 = vld [vmem:[#allocation2] sm:$0xff] }
  0x23   : > { %342 = vst.msk [vmem:[#allocation2 + $0x101] sm:$0xff] %vm310_vm2, %v2494_v32  ;;  %v303_v38 = vld [vmem:[%s2389_s22 + $0xc8] sm:$0x7f]  ;;  %v281_v45 = vld [vmem:[%s2389_s22 + $0x18] sm:$0x7f] }
  0x24   : > { %v732_v40 = vld [vmem:[#allocation2 + $0x8] sm:$0xff]  ;;  %337 = vst.msk [vmem:[#allocation2 + $0xd9] sm:$0x7f] %vm312_vm4, %v303_v38  ;;  %315 = vst.msk [vmem:[#allocation2 + $0x29] sm:$0x7f] %vm312_vm4, %v281_v45  ;;  %v559_v48 = vld [vmem:[%s2389_s22 + $0xb1] sm:$0xff] }
  0x25   : > { %450 = vrot.lane.b32.xlu1 %v365_v21, %s2303_s23  ;;  %448 = vrot.lane.b32.xlu0 %v364_v6, %s2303_s23  ;;  %v763_v41 = vpack.c.bf16 %v732_v40, %v731_v39  ;;  %v538_v42 = vld [vmem:[%s2389_s22 + $0x9] sm:$0x7f]  ;;  %v537_v43 = vld [vmem:[%s2389_s22 + $0x1] sm:$0xff] }
  0x26   : > { %v369_v46 = vld [vmem:[%s2389_s22 + $0xc8] sm:$0xff]  ;;  %v560_v47 = vld [vmem:[%s2389_s22 + $0xb9] sm:$0x7f]  ;;  %v539_v56 = vld [vmem:[%s2389_s22 + $0x11] sm:$0xff] }
  0x27   : > { %2174 = vmatprep.mubr.msk.bf16.mxu0 %vm237_vm3, %v763_v41  ;;  %v283_v49 = vld [vmem:[%s2389_s22 + $0x28] sm:$0x7f]  ;;  %v347_v50 = vld [vmem:[%s2389_s22 + $0x18] sm:$0xff]  ;;  %v2592_v6 = vld [vmem:[%s3178_s3 + $0x10] sm:$0x3f]  }
  0x28   : > { %317 = vst.msk [vmem:[#allocation2 + $0x39] sm:$0x7f] %vm312_vm4, %v283_v49  ;;  %v562_v51 = vld [vmem:[%s2389_s22 + $0xc9] sm:$0x7f]  ;;  %v561_v52 = vld [vmem:[%s2389_s22 + $0xc1] sm:$0xff]  ;;  %v371_v60 = vld [vmem:[%s2389_s22 + $0xd8] sm:$0xff]  ;;  %2279 = vmatprep.subr.msk.bf16.mxu0 %vm834_vm5, %v2592_v6 }
  0x29   : > { %639 = vrot.lane.b32.xlu1 %v556_v24, %s2304_s24  ;;  %637 = vrot.lane.b32.xlu0 %v555_v25, %s2304_s24  ;;  %v349_v53 = vld [vmem:[%s2389_s22 + $0x28] sm:$0xff]  ;;  %v305_v54 = vld [vmem:[%s2389_s22 + $0xd8] sm:$0x7f] }
  0x2a   : > { %339 = vst.msk [vmem:[#allocation2 + $0xe9] sm:$0x7f] %vm312_vm4, %v305_v54  ;;  %v540_v55 = vld [vmem:[%s2389_s22 + $0x19] sm:$0x7f]  ;;  %v307_v57 = vld [vmem:[%s2389_s22 + $0xe8] sm:$0x7f] }
  0x2b   : > { %341 = vst.msk [vmem:[#allocation2 + $0xf9] sm:$0x7f] %vm312_vm4, %v307_v57  ;;  %v542_v58 = vld [vmem:[%s2389_s22 + $0x29] sm:$0x7f]  ;;  %v541_v59 = vld [vmem:[%s2389_s22 + $0x21] sm:$0xff]  ;;  %v563_v0 = vld [vmem:[%s2389_s22 + $0xd1] sm:$0xff] }
  0x2c   : > { %v285_v61 = vld [vmem:[%s2389_s22 + $0x38] sm:$0x7f]  ;;  %v373_v62 = vld [vmem:[%s2389_s22 + $0xe8] sm:$0xff] }
  0x2d   : > { %643 = vrot.lane.b32.xlu1 %v558_v34, %s2304_s24  ;;  %641 = vrot.lane.b32.xlu0 %v557_v35, %s2304_s24  ;;  %319 = vst.msk [vmem:[#allocation2 + $0x49] sm:$0x7f] %vm312_vm4, %v285_v61  ;;  %v564_v63 = vld [vmem:[%s2389_s22 + $0xd9] sm:$0x7f]  ;;  %v2575_v1 = vld [vmem:[%s3178_s3 + $0x8] sm:$0x3f]  }
  0x2e   : > { %v287_v2 = vld [vmem:[%s2389_s22 + $0x48] sm:$0x7f]  ;;  %2278 = vmatprep.subr.msk.bf16.mxu1 %vm834_vm5, %v2575_v1  ;;  %v351_v3 = vld [vmem:[%s2389_s22 + $0x38] sm:$0xff] }
  0x2f   : > { %321 = vst.msk [vmem:[#allocation2 + $0x59] sm:$0x7f] %vm312_vm4, %v287_v2  ;;  %v566_v4 = vld [vmem:[%s2389_s22 + $0xe9] sm:$0x7f]  ;;  %v565_v5 = vld [vmem:[%s2389_s22 + $0xe1] sm:$0xff]  ;;  %v547_v17 = vld [vmem:[%s2389_s22 + $0x51] sm:$0xff] }
  0x30   : > { %v353_v7 = vld [vmem:[%s2389_s22 + $0x48] sm:$0xff]  ;;  %v289_v8 = vld [vmem:[%s2389_s22 + $0x58] sm:$0x7f] }
  0x31   : > { %410 = vrot.lane.b32.xlu1 %v345_v37, %s2303_s23  ;;  %408 = vrot.lane.b32.xlu0 %v2412_v9, %s2303_s23  ;;  %323 = vst.msk [vmem:[#allocation2 + $0x69] sm:$0x7f] %vm312_vm4, %v289_v8  ;;  %v544_v9 = vld [vmem:[%s2389_s22 + $0x39] sm:$0x7f]  ;;  %v546_v12 = vld [vmem:[%s2389_s22 + $0x49] sm:$0x7f] }
  0x32   : > { %v545_v13 = vld [vmem:[%s2389_s22 + $0x41] sm:$0xff]  ;;  %v568_v25 = vld [vmem:[%s2389_s22 + $0xf9] sm:$0x7f]  ;;  %v567_v26 = vld [vmem:[%s2389_s22 + $0xf1] sm:$0xff] }
  0x33   : > { %v309_v36 = vld [vmem:[%s2389_s22 + $0xf8] sm:$0x7f] }
  0x34   : > { %343 = vst.msk [vmem:[#allocation2 + $0x109] sm:$0x7f] %vm312_vm4, %v309_v36 }
  0x35   : > { %603 = vrot.lane.b32.xlu1 %v538_v42, %s2304_s24  ;;  %601 = vrot.lane.b32.xlu0 %v537_v43, %s2304_s24  ;;  %v1137_v42 = vsel %vm834_vm5, %v2575_v1, 0 }
  0x39   : > { %454 = vrot.lane.b32.xlu1 %v367_v44, %s2303_s23  ;;  %452 = vrot.lane.b32.xlu0 %v2415_v10, %s2303_s23  ;;  %v543_v10 = vld [vmem:[%s2389_s22 + $0x31] sm:$0xff] }
  0x3d   : > { %458 = vrot.lane.b32.xlu1 %v369_v46, %s2303_s23  ;;  %456 = vrot.lane.b32.xlu0 %v2420_v11, %s2303_s23  ;;  %v291_v11 = vld [vmem:[%s2389_s22 + $0x68] sm:$0x7f] }
  0x3e   : > { %325 = vst.msk [vmem:[#allocation2 + $0x79] sm:$0x7f] %vm312_vm4, %v291_v11 }
  0x41   : > { %647 = vrot.lane.b32.xlu1 %v560_v47, %s2304_s24  ;;  %645 = vrot.lane.b32.xlu0 %v559_v48, %s2304_s24 }
  0x45   : > { %414 = vrot.lane.b32.xlu1 %v347_v50, %s2303_s23  ;;  %412 = vrot.lane.b32.xlu0 %v2431_v14, %s2303_s23  ;;  %v355_v14 = vld [vmem:[%s2389_s22 + $0x58] sm:$0xff] }
  0x49   : > { %651 = vrot.lane.b32.xlu1 %v562_v51, %s2304_s24  ;;  %649 = vrot.lane.b32.xlu0 %v561_v52, %s2304_s24 }
  0x4d   : > { %418 = vrot.lane.b32.xlu1 %v349_v53, %s2303_s23  ;;  %416 = vrot.lane.b32.xlu0 %v2434_v15, %s2303_s23  ;;  %v357_v15 = vld [vmem:[%s2389_s22 + $0x68] sm:$0xff] }
  0x51   : > { %607 = vrot.lane.b32.xlu1 %v540_v55, %s2304_s24  ;;  %605 = vrot.lane.b32.xlu0 %v539_v56, %s2304_s24 }
  0x55   : > { %611 = vrot.lane.b32.xlu1 %v542_v58, %s2304_s24  ;;  %609 = vrot.lane.b32.xlu0 %v541_v59, %s2304_s24 }
  0x59   : > { %462 = vrot.lane.b32.xlu1 %v371_v60, %s2303_s23  ;;  %460 = vrot.lane.b32.xlu0 %v2443_v16, %s2303_s23  ;;  %v548_v16 = vld [vmem:[%s2389_s22 + $0x59] sm:$0x7f] }
  0x5d   : > { %466 = vrot.lane.b32.xlu1 %v373_v62, %s2303_s23  ;;  %464 = vrot.lane.b32.xlu0 %v2447_v18, %s2303_s23  ;;  %v550_v18 = vld [vmem:[%s2389_s22 + $0x69] sm:$0x7f] }
  0x61   : > { %655 = vrot.lane.b32.xlu1 %v564_v63, %s2304_s24  ;;  %653 = vrot.lane.b32.xlu0 %v563_v0, %s2304_s24  ;;  %v1502_v0 = vsel %vm834_vm5, %v2592_v6, 0 }
  0x65   : > { %422 = vrot.lane.b32.xlu1 %v351_v3, %s2303_s23  ;;  %420 = vrot.lane.b32.xlu0 %v2452_v19, %s2303_s23  ;;  %v549_v19 = vld [vmem:[%s2389_s22 + $0x61] sm:$0xff] }
  0x69   : > { %659 = vrot.lane.b32.xlu1 %v566_v4, %s2304_s24  ;;  %657 = vrot.lane.b32.xlu0 %v565_v5, %s2304_s24 }
  0x6d   : > { %426 = vrot.lane.b32.xlu1 %v353_v7, %s2303_s23  ;;  %424 = vrot.lane.b32.xlu0 %v2461_v20, %s2303_s23 }
  0x71   : > { %615 = vrot.lane.b32.xlu1 %v544_v9, %s2304_s24  ;;  %613 = vrot.lane.b32.xlu0 %v543_v10, %s2304_s24 }
  0x75   : > { %619 = vrot.lane.b32.xlu1 %v546_v12, %s2304_s24  ;;  %617 = vrot.lane.b32.xlu0 %v545_v13, %s2304_s24 }
  0x79   : > { %430 = vrot.lane.b32.xlu1 %v355_v14, %s2303_s23  ;;  %428 = vrot.lane.b32.xlu0 %v2467_v22, %s2303_s23  ;;  %v375_v22 = vld [vmem:[%s2389_s22 + $0xf8] sm:$0xff] }
  0x7d   : > { %434 = vrot.lane.b32.xlu1 %v357_v15, %s2303_s23  ;;  %432 = vrot.lane.b32.xlu0 %v2470_v23, %s2303_s23 }
  0x81   : > { %623 = vrot.lane.b32.xlu1 %v548_v16, %s2304_s24  ;;  %621 = vrot.lane.b32.xlu0 %v547_v17, %s2304_s24 }
  0x83   : > { %v441_v20 = vpop.permute.xlu1 %440  ;;  %v437_v21 = vpop.permute.xlu0 %436 }
  0x84   : > { %521 = vst.msk [vmem:[#allocation2 + $0x90] sm:$0xff] %vm504_vm6, %v441_v20  ;;  %519 = vst.msk [vmem:[#allocation2 + $0x80] sm:$0xff] %vm504_vm6, %v437_v21 }
  0x85   : > { %627 = vrot.lane.b32.xlu1 %v550_v18, %s2304_s24  ;;  %625 = vrot.lane.b32.xlu0 %v549_v19, %s2304_s24 }
  0x87   : > { %v443_v23 = vpop.permute.xlu1 %442  ;;  %v439_v24 = vpop.permute.xlu0 %438 }
  0x88   : > { %522 = vst.msk [vmem:[#allocation2 + $0x98] sm:$0xff] %vm504_vm6, %v443_v23  ;;  %520 = vst.msk [vmem:[#allocation2 + $0x88] sm:$0xff] %vm504_vm6, %v439_v24 }
  0x89   : > { %470 = vrot.lane.b32.xlu1 %v375_v22, %s2303_s23  ;;  %468 = vrot.lane.b32.xlu0 %v2494_v32, %s2303_s23 }
  0x8b   : > { %v632_v27 = vpop.permute.xlu1 %631  ;;  %v630_v28 = vpop.permute.xlu0 %629 }
  0x8c   : > { %714 = vst.msk [vmem:[#allocation2 + $0x88] sm:$0x7f] %vm699_vm7, %v632_v27 }
  0x8d   : > { %713 = vst.msk [vmem:[#allocation2 + $0x80] sm:$0xff] %vm697_vm8, %v630_v28  ;;  %663 = vrot.lane.b32.xlu1 %v568_v25, %s2304_s24  ;;  %661 = vrot.lane.b32.xlu0 %v567_v26, %s2304_s24 }
  0x8f   : > { %v636_v29 = vpop.permute.xlu1 %635  ;;  %v634_v30 = vpop.permute.xlu0 %633 }
  0x90   : > { %716 = vst.msk [vmem:[#allocation2 + $0x98] sm:$0x7f] %vm699_vm7, %v636_v29 }
  0x91   : > { %715 = vst.msk [vmem:[#allocation2 + $0x90] sm:$0xff] %vm697_vm8, %v634_v30 }
  0x93   : > { %v447_v31 = vpop.permute.xlu1 %446  ;;  %v445_v32 = vpop.permute.xlu0 %444  ;;  %v748_v34 = vld [vmem:[#allocation2 + $0x88] sm:$0xff] }
  0x94   : > { %v747_v33 = vld [vmem:[#allocation2 + $0x80] sm:$0xff]  ;;  %524 = vst.msk [vmem:[#allocation2 + $0xa8] sm:$0xff] %vm504_vm6, %v447_v31  ;;  %523 = vst.msk [vmem:[#allocation2 + $0xa0] sm:$0xff] %vm504_vm6, %v445_v32 }
  0x95   : > { %v2648_v35 = vpack.c.bf16 %v748_v34, %v747_v33 }
  0x97   : > { %2190 = vmatprep.mubr.msk.bf16.mxu1 %vm237_vm3, %v2648_v35  ;;  %v451_v37 = vpop.permute.xlu1 %450  ;;  %v449_v38 = vpop.permute.xlu0 %448  ;;  %v750_v40 = vld [vmem:[#allocation2 + $0x98] sm:$0xff] }
  0x98   : > { %v749_v39 = vld [vmem:[#allocation2 + $0x90] sm:$0xff]  ;;  %526 = vst.msk [vmem:[#allocation2 + $0xb8] sm:$0xff] %vm504_vm6, %v451_v37  ;;  %525 = vst.msk [vmem:[#allocation2 + $0xb0] sm:$0xff] %vm504_vm6, %v449_v38 }
  0x99   : > { %v2656_v41 = vpack.c.bf16 %v750_v40, %v749_v39 }
  0x9b   : > { %2191 = vmatmul.mubr.msk.bf16.vlgmr.msra.gmra.mrb[0].mxu1 %vm237_vm3, %v2656_v41  ;;  %v640_v43 = vpop.permute.xlu1 %639  ;;  %v638_v44 = vpop.permute.xlu0 %637 }
  0x9c   : > { %2207 = vmatpush3.bf16.msra.mxu1 %v1137_v42  ;;  %718 = vst.msk [vmem:[#allocation2 + $0xa8] sm:$0x7f] %vm699_vm7, %v640_v43 }
  0x9d   : > { %717 = vst.msk [vmem:[#allocation2 + $0xa0] sm:$0xff] %vm697_vm8, %v638_v44 }
  0x9f   : > { %v644_v45 = vpop.permute.xlu1 %643  ;;  %v642_v46 = vpop.permute.xlu0 %641 }
  0xa0   : > { %720 = vst.msk [vmem:[#allocation2 + $0xb8] sm:$0x7f] %vm699_vm7, %v644_v45 }
  0xa1   : > { %719 = vst.msk [vmem:[#allocation2 + $0xb0] sm:$0xff] %vm697_vm8, %v642_v46 }
  0xa3   : > { %v411_v47 = vpop.permute.xlu1 %410  ;;  %v409_v48 = vpop.permute.xlu0 %408  ;;  %v752_v50 = vld [vmem:[#allocation2 + $0xa8] sm:$0xff] }
  0xa4   : > { %v751_v49 = vld [vmem:[#allocation2 + $0xa0] sm:$0xff]  ;;  %506 = vst.msk [vmem:[#allocation2 + $0x18] sm:$0xff] %vm504_vm6, %v411_v47  ;;  %505 = vst.msk [vmem:[#allocation2 + $0x10] sm:$0xff] %vm504_vm6, %v409_v48 }
  0xa5   : > { %v2668_v51 = vpack.c.bf16 %v752_v50, %v751_v49 }
  0xa7   : > { %2194 = vmatprep.mubr.msk.bf16.mxu1 %vm237_vm3, %v2668_v51  ;;  %v604_v52 = vpop.permute.xlu1 %603  ;;  %v602_v53 = vpop.permute.xlu0 %601  ;;  %v754_v55 = vld [vmem:[#allocation2 + $0xb8] sm:$0xff] }
  0xa8   : > { %v753_v54 = vld [vmem:[#allocation2 + $0xb0] sm:$0xff]  ;;  %700 = vst.msk [vmem:[#allocation2 + $0x18] sm:$0x7f] %vm699_vm7, %v604_v52 }
  0xa9   : > { %698 = vst.msk [vmem:[#allocation2 + $0x10] sm:$0xff] %vm697_vm8, %v602_v53  ;;  %v2674_v56 = vpack.c.bf16 %v754_v55, %v753_v54 }
  0xab   : > { %2195 = vmatmul.mubr.msk.bf16.gmra.mrb[4].mxu1 %vm237_vm3, %v2674_v56  ;;  %v455_v57 = vpop.permute.xlu1 %454  ;;  %v453_v58 = vpop.permute.xlu0 %452 }
  0xac   : > { %528 = vst.msk [vmem:[#allocation2 + $0xc8] sm:$0xff] %vm504_vm6, %v455_v57  ;;  %527 = vst.msk [vmem:[#allocation2 + $0xc0] sm:$0xff] %vm504_vm6, %v453_v58 }
  0xaf   : > { %v459_v59 = vpop.permute.xlu1 %458  ;;  %v457_v60 = vpop.permute.xlu0 %456  ;;  %v734_v62 = vld [vmem:[#allocation2 + $0x18] sm:$0xff] }
  0xb0   : > { %v733_v61 = vld [vmem:[#allocation2 + $0x10] sm:$0xff]  ;;  %530 = vst.msk [vmem:[#allocation2 + $0xd8] sm:$0xff] %vm504_vm6, %v459_v59  ;;  %529 = vst.msk [vmem:[#allocation2 + $0xd0] sm:$0xff] %vm504_vm6, %v457_v60 }
  0xb1   : > { %v2682_v63 = vpack.c.bf16 %v734_v62, %v733_v61 }
  0xb3   : > { %2175 = vmatmul.mubr.msk.bf16.vlgmr.msra.gmra.mrb[0].mxu0 %vm237_vm3, %v2682_v63  ;;  %v648_v1 = vpop.permute.xlu1 %647  ;;  %v646_v2 = vpop.permute.xlu0 %645 }
  0xb4   : > { %2241 = vmatpush3.bf16.msra.mxu0 %v1502_v0  ;;  %722 = vst.msk [vmem:[#allocation2 + $0xc8] sm:$0x7f] %vm699_vm7, %v648_v1 }
  0xb5   : > { %721 = vst.msk [vmem:[#allocation2 + $0xc0] sm:$0xff] %vm697_vm8, %v646_v2 }
  0xb7   : > { %v415_v3 = vpop.permute.xlu1 %414  ;;  %v413_v4 = vpop.permute.xlu0 %412 }
  0xb8   : > { %508 = vst.msk [vmem:[#allocation2 + $0x28] sm:$0xff] %vm504_vm6, %v415_v3  ;;  %507 = vst.msk [vmem:[#allocation2 + $0x20] sm:$0xff] %vm504_vm6, %v413_v4 }
  0xbb   : > { %v652_v5 = vpop.permute.xlu1 %651  ;;  %v650_v7 = vpop.permute.xlu0 %649  ;;  %v756_v6 = vld [vmem:[#allocation2 + $0xc8] sm:$0xff] }
  0xbc   : > { %v755_v8 = vld [vmem:[#allocation2 + $0xc0] sm:$0xff]  ;;  %724 = vst.msk [vmem:[#allocation2 + $0xd8] sm:$0x7f] %vm699_vm7, %v652_v5 }
  0xbd   : > { %723 = vst.msk [vmem:[#allocation2 + $0xd0] sm:$0xff] %vm697_vm8, %v650_v7  ;;  %v2694_v9 = vpack.c.bf16 %v756_v6, %v755_v8 }
  0xbf   : > { %2198 = vmatprep.mubr.msk.bf16.mxu1 %vm237_vm3, %v2694_v9  ;;  %v419_v10 = vpop.permute.xlu1 %418  ;;  %v417_v11 = vpop.permute.xlu0 %416 }
  0xc0   : > { %510 = vst.msk [vmem:[#allocation2 + $0x38] sm:$0xff] %vm504_vm6, %v419_v10  ;;  %509 = vst.msk [vmem:[#allocation2 + $0x30] sm:$0xff] %vm504_vm6, %v417_v11 }
  0xc3   : > { %v608_v12 = vpop.permute.xlu1 %607  ;;  %v606_v13 = vpop.permute.xlu0 %605  ;;  %v758_v15 = vld [vmem:[#allocation2 + $0xd8] sm:$0xff] }
  0xc4   : > { %v757_v14 = vld [vmem:[#allocation2 + $0xd0] sm:$0xff]  ;;  %702 = vst.msk [vmem:[#allocation2 + $0x28] sm:$0x7f] %vm699_vm7, %v608_v12 }
  0xc5   : > { %701 = vst.msk [vmem:[#allocation2 + $0x20] sm:$0xff] %vm697_vm8, %v606_v13  ;;  %v2702_v16 = vpack.c.bf16 %v758_v15, %v757_v14 }
  0xc7   : > { %2199 = vmatmul.mubr.msk.bf16.gmra.mrb[8].mxu1 %vm237_vm3, %v2702_v16  ;;  %v612_v17 = vpop.permute.xlu1 %611  ;;  %v610_v18 = vpop.permute.xlu0 %609 }
  0xc8   : > { %704 = vst.msk [vmem:[#allocation2 + $0x38] sm:$0x7f] %vm699_vm7, %v612_v17 }
  0xc9   : > { %703 = vst.msk [vmem:[#allocation2 + $0x30] sm:$0xff] %vm697_vm8, %v610_v18 }
  0xcb   : > { %v463_v19 = vpop.permute.xlu1 %462  ;;  %v461_v20 = vpop.permute.xlu0 %460  ;;  %v736_v22 = vld [vmem:[#allocation2 + $0x28] sm:$0xff] }
  0xcc   : > { %v735_v21 = vld [vmem:[#allocation2 + $0x20] sm:$0xff]  ;;  %532 = vst.msk [vmem:[#allocation2 + $0xe8] sm:$0xff] %vm504_vm6, %v463_v19  ;;  %531 = vst.msk [vmem:[#allocation2 + $0xe0] sm:$0xff] %vm504_vm6, %v461_v20 }
  0xcd   : > { %v2710_v23 = vpack.c.bf16 %v736_v22, %v735_v21 }
  0xcf   : > { %2178 = vmatprep.mubr.msk.bf16.mxu0 %vm237_vm3, %v2710_v23  ;;  %v467_v24 = vpop.permute.xlu1 %466  ;;  %v465_v25 = vpop.permute.xlu0 %464  ;;  %v738_v27 = vld [vmem:[#allocation2 + $0x38] sm:$0xff] }
  0xd0   : > { %v737_v26 = vld [vmem:[#allocation2 + $0x30] sm:$0xff]  ;;  %534 = vst.msk [vmem:[#allocation2 + $0xf8] sm:$0xff] %vm504_vm6, %v467_v24  ;;  %533 = vst.msk [vmem:[#allocation2 + $0xf0] sm:$0xff] %vm504_vm6, %v465_v25 }
  0xd1   : > { %v2716_v28 = vpack.c.bf16 %v738_v27, %v737_v26 }
  0xd3   : > { %2179 = vmatmul.mubr.msk.bf16.gmra.mrb[4].mxu0 %vm237_vm3, %v2716_v28  ;;  %v656_v29 = vpop.permute.xlu1 %655  ;;  %v654_v30 = vpop.permute.xlu0 %653 }
  0xd4   : > { %726 = vst.msk [vmem:[#allocation2 + $0xe8] sm:$0x7f] %vm699_vm7, %v656_v29 }
  0xd5   : > { %725 = vst.msk [vmem:[#allocation2 + $0xe0] sm:$0xff] %vm697_vm8, %v654_v30 }
  0xd7   : > { %v423_v31 = vpop.permute.xlu1 %422  ;;  %v421_v32 = vpop.permute.xlu0 %420 }
  0xd8   : > { %512 = vst.msk [vmem:[#allocation2 + $0x48] sm:$0xff] %vm504_vm6, %v423_v31  ;;  %511 = vst.msk [vmem:[#allocation2 + $0x40] sm:$0xff] %vm504_vm6, %v421_v32 }
  0xdb   : > { %v660_v33 = vpop.permute.xlu1 %659  ;;  %v658_v34 = vpop.permute.xlu0 %657  ;;  %v760_v37 = vld [vmem:[#allocation2 + $0xe8] sm:$0xff] }
  0xdc   : > { %v759_v36 = vld [vmem:[#allocation2 + $0xe0] sm:$0xff]  ;;  %728 = vst.msk [vmem:[#allocation2 + $0xf8] sm:$0x7f] %vm699_vm7, %v660_v33 }
  0xdd   : > { %727 = vst.msk [vmem:[#allocation2 + $0xf0] sm:$0xff] %vm697_vm8, %v658_v34  ;;  %v2726_v38 = vpack.c.bf16 %v760_v37, %v759_v36 }
  0xdf   : > { %2202 = vmatprep.mubr.msk.bf16.mxu1 %vm237_vm3, %v2726_v38  ;;  %v427_v39 = vpop.permute.xlu1 %426  ;;  %v425_v40 = vpop.permute.xlu0 %424 }
  0xe0   : > { %514 = vst.msk [vmem:[#allocation2 + $0x58] sm:$0xff] %vm504_vm6, %v427_v39  ;;  %513 = vst.msk [vmem:[#allocation2 + $0x50] sm:$0xff] %vm504_vm6, %v425_v40 }
  0xe3   : > { %v616_v42 = vpop.permute.xlu1 %615  ;;  %v614_v43 = vpop.permute.xlu0 %613  ;;  %v762_v45 = vld [vmem:[#allocation2 + $0xf8] sm:$0xff] }
  0xe4   : > { %v761_v44 = vld [vmem:[#allocation2 + $0xf0] sm:$0xff]  ;;  %706 = vst.msk [vmem:[#allocation2 + $0x48] sm:$0x7f] %vm699_vm7, %v616_v42 }
  0xe5   : > { %705 = vst.msk [vmem:[#allocation2 + $0x40] sm:$0xff] %vm697_vm8, %v614_v43  ;;  %v2734_v46 = vpack.c.bf16 %v762_v45, %v761_v44 }
  0xe7   : > { %2203 = vmatmul.mubr.msk.bf16.gmra.mrb[12].mxu1 %vm237_vm3, %v2734_v46  ;;  %v620_v47 = vpop.permute.xlu1 %619  ;;  %v618_v48 = vpop.permute.xlu0 %617 }
  0xe8   : > { %2208 = vmatprep.mubr.msk.bf16.mxu1 %vm237_vm3, %v2682_v63  ;;  %708 = vst.msk [vmem:[#allocation2 + $0x58] sm:$0x7f] %vm699_vm7, %v620_v47 }
  0xe9   : > { %707 = vst.msk [vmem:[#allocation2 + $0x50] sm:$0xff] %vm697_vm8, %v618_v48 }
  0xeb   : > { %v431_v49 = vpop.permute.xlu1 %430  ;;  %v429_v50 = vpop.permute.xlu0 %428  ;;  %v740_v53 = vld [vmem:[#allocation2 + $0x48] sm:$0xff] }
  0xec   : > { %v739_v52 = vld [vmem:[#allocation2 + $0x40] sm:$0xff]  ;;  %516 = vst.msk [vmem:[#allocation2 + $0x68] sm:$0xff] %vm504_vm6, %v431_v49  ;;  %515 = vst.msk [vmem:[#allocation2 + $0x60] sm:$0xff] %vm504_vm6, %v429_v50 }
  0xed   : > { %v767_v54 = vpack.c.bf16 %v740_v53, %v739_v52 }
  0xef   : > { %2182 = vmatprep.mubr.msk.bf16.mxu0 %vm237_vm3, %v767_v54  ;;  %2209 = vmatmul.mubr.msk.bf16.vlgmr.msra.gmra.mrb[16].mxu1 %vm237_vm3, %v2710_v23  ;;  %v435_v55 = vpop.permute.xlu1 %434  ;;  %v433_v57 = vpop.permute.xlu0 %432  ;;  %v742_v59 = vld [vmem:[#allocation2 + $0x58] sm:$0xff] }
  0xf0   : > { %2212 = vmatprep.mubr.msk.bf16.mxu1 %vm237_vm3, %v2716_v28  ;;  %v741_v58 = vld [vmem:[#allocation2 + $0x50] sm:$0xff]  ;;  %518 = vst.msk [vmem:[#allocation2 + $0x78] sm:$0xff] %vm504_vm6, %v435_v55  ;;  %517 = vst.msk [vmem:[#allocation2 + $0x70] sm:$0xff] %vm504_vm6, %v433_v57 }
  0xf1   : > { %v768_v60 = vpack.c.bf16 %v742_v59, %v741_v58 }
  0xf3   : > { %2183 = vmatmul.mubr.msk.bf16.gmra.mrb[8].mxu0 %vm237_vm3, %v768_v60  ;;  %v624_v61 = vpop.permute.xlu1 %623  ;;  %v622_v62 = vpop.permute.xlu0 %621 }
  0xf4   : > { %710 = vst.msk [vmem:[#allocation2 + $0x68] sm:$0x7f] %vm699_vm7, %v624_v61 }
  0xf5   : > { %709 = vst.msk [vmem:[#allocation2 + $0x60] sm:$0xff] %vm697_vm8, %v622_v62 }
  0xf7   : > { %2213 = vmatmul.mubr.msk.bf16.gmra.mrb[20].mxu1 %vm237_vm3, %v767_v54  ;;  %v628_v63 = vpop.permute.xlu1 %627  ;;  %v626_v0 = vpop.permute.xlu0 %625 }
  0xf8   : > { %2216 = vmatprep.mubr.msk.bf16.mxu1 %vm237_vm3, %v768_v60  ;;  %712 = vst.msk [vmem:[#allocation2 + $0x78] sm:$0x7f] %vm699_vm7, %v628_v63 }
  0xf9   : > { %711 = vst.msk [vmem:[#allocation2 + $0x70] sm:$0xff] %vm697_vm8, %v626_v0 }
  0xfb   : > { %v744_v2 = vld [vmem:[#allocation2 + $0x68] sm:$0xff]  ;;  %v471_v3 = vpop.permute.xlu1 %470  ;;  %v469_v4 = vpop.permute.xlu0 %468 }
  0xfc   : > { %v743_v1 = vld [vmem:[#allocation2 + $0x60] sm:$0xff]  ;;  %536 = vst.msk [vmem:[#allocation2 + $0x108] sm:$0xff] %vm504_vm6, %v471_v3  ;;  %535 = vst.msk [vmem:[#allocation2 + $0x100] sm:$0xff] %vm504_vm6, %v469_v4 }
  0xfd   : > { %v769_v5 = vpack.c.bf16 %v744_v2, %v743_v1 }
  0xff   : > { %2186 = vmatprep.mubr.msk.bf16.mxu0 %vm237_vm3, %v769_v5  ;;  %2217 = vmatmul.mubr.msk.bf16.gmra.mrb[24].mxu1 %vm237_vm3, %v769_v5  ;;  %v746_v8 = vld [vmem:[#allocation2 + $0x78] sm:$0xff]  ;;  %v664_v6 = vpop.permute.xlu1 %663  ;;  %v662_v10 = vpop.permute.xlu0 %661 }
 0x100   : > { %v745_v7 = vld [vmem:[#allocation2 + $0x70] sm:$0xff]  ;;  %730 = vst.msk [vmem:[#allocation2 + $0x108] sm:$0x7f] %vm699_vm7, %v664_v6 }
 0x101   : > { %v770_v11 = vpack.c.bf16 %v746_v8, %v745_v7  ;;  %729 = vst.msk [vmem:[#allocation2 + $0x100] sm:$0xff] %vm697_vm8, %v662_v10 }
 0x103   : > { %2187 = vmatmul.mubr.msk.bf16.gmra.mrb[12].mxu0 %vm237_vm3, %v770_v11  ;;  %2220 = vmatprep.mubr.msk.bf16.mxu1 %vm237_vm3, %v770_v11 }
 0x104   : > { %2242 = vmatprep.mubr.msk.bf16.mxu0 %vm237_vm3, %v2710_v23 }
 0x107   : > { %2221 = vmatmul.mubr.msk.bf16.gmra.mrb[28].mxu1 %vm237_vm3, %v2648_v35  ;;  %v1063_v13 = vld [vmem:[#allocation2 + $0x108] sm:$0xff] }
 0x108   : > { %2224 = vmatprep.mubr.msk.bf16.mxu1 %vm237_vm3, %v2656_v41  ;;  %v1062_v12 = vld [vmem:[#allocation2 + $0x100] sm:$0xff] }
 0x109   : > { %v1079_v14 = vpack.c.bf16 %v1063_v13, %v1062_v12 }
 0x10b   : > { %2243 = vmatmul.mubr.msk.bf16.vlgmr.msra.gmra.mrb[16].mxu0 %vm237_vm3, %v2716_v28 }
 0x10c   : > { %2246 = vmatprep.mubr.msk.bf16.mxu0 %vm237_vm3, %v767_v54 }
 0x10f   : > { %2225 = vmatmul.mubr.msk.bf16.gmra.mrb[32].mxu1 %vm237_vm3, %v2668_v51 }
 0x110   : > { %2228 = vmatprep.mubr.msk.bf16.mxu1 %vm237_vm3, %v2674_v56 }
 0x113   : > { %2247 = vmatmul.mubr.msk.bf16.gmra.mrb[20].mxu0 %vm237_vm3, %v768_v60 }
 0x114   : > { %2250 = vmatprep.mubr.msk.bf16.mxu0 %vm237_vm3, %v769_v5 }
 0x117   : > { %2229 = vmatmul.mubr.msk.bf16.gmra.mrb[36].mxu1 %vm237_vm3, %v2694_v9 }
 0x118   : > { %2232 = vmatprep.mubr.msk.bf16.mxu1 %vm237_vm3, %v2702_v16 }
 0x11b   : > { %2251 = vmatmul.mubr.msk.bf16.gmra.mrb[24].mxu0 %vm237_vm3, %v770_v11 }
 0x11c   : > { %2254 = vmatprep.mubr.msk.bf16.mxu0 %vm237_vm3, %v2648_v35  ;;  %v1427_v35 = vld [vmem:[#allocation2 + $0x110] sm:$0xff] }
 0x11f   : > { %2233 = vmatmul.mubr.msk.bf16.gmra.mrb[40].mxu1 %vm237_vm3, %v2726_v38 }
 0x120   : > { %2236 = vmatprep.mubr.msk.bf16.mxu1 %vm237_vm3, %v2734_v46 }
 0x123   : > { %2255 = vmatmul.mubr.msk.bf16.gmra.mrb[28].mxu0 %vm237_vm3, %v2656_v41  ;;  %v1428_v41 = vld [vmem:[#allocation2 + $0x118] sm:$0xff] }
 0x124   : > { %2258 = vmatprep.mubr.msk.bf16.mxu0 %vm237_vm3, %v2668_v51  ;;  %v1444_v51 = vpack.c.bf16 %v1428_v41, %v1427_v35 }
 0x127   : > { %2237 = vmatmul.mubr.msk.bf16.gmra.mrb[44].mxu1 %vm237_vm3, %v1079_v14 }
 0x12b   : > { %2259 = vmatmul.mubr.msk.bf16.gmra.mrb[32].mxu0 %vm237_vm3, %v2674_v56 }
 0x12c   : > { %2262 = vmatprep.mubr.msk.bf16.mxu0 %vm237_vm3, %v2694_v9 }
 0x133   : > { %2263 = vmatmul.mubr.msk.bf16.gmra.mrb[36].mxu0 %vm237_vm3, %v2702_v16 }
 0x134   : > { %2266 = vmatprep.mubr.msk.bf16.mxu0 %vm237_vm3, %v2726_v38 }
 0x13b   : > { %2267 = vmatmul.mubr.msk.bf16.gmra.mrb[40].mxu0 %vm237_vm3, %v2734_v46 }
 0x13c   : > { %2270 = vmatprep.mubr.msk.bf16.mxu0 %vm237_vm3, %v1079_v14 }
 0x143   : > { %2271 = vmatmul.mubr.msk.bf16.gmra.mrb[44].mxu0 %vm237_vm3, %v1444_v51 }
 0x16e   : > { %v2192_v56 = vpop.f32.mrb[0].mxu1 }
 0x16f   : > { %1018 = vst.msk [vmem:[%s2814_s8 + $0x90] sm:$0xff] %vm999_vm9, %v2192_v56  ;;  %v936_v9 = vpop.f32.mrb[1].mxu1 }
 0x170   : > { %1016 = vst.msk [vmem:[%s2814_s8 + $0x80] sm:$0xff] %vm999_vm9, %v936_v9  ;;  %v2193_v15 = vpop.f32.mrb[2].mxu1 }
 0x171   : > { %1019 = vst.msk [vmem:[%s2814_s8 + $0x98] sm:$0xff] %vm999_vm9, %v2193_v15  ;;  %v939_v16 = vpop.f32.mrb[3].mxu1 }
 0x172   : > { %1017 = vst.msk [vmem:[%s2814_s8 + $0x88] sm:$0xff] %vm999_vm9, %v939_v16 }
 0x17e   : > { %v2196_v17 = vpop.f32.mrb[4].mxu1 }
 0x17f   : > { %1022 = vst.msk [vmem:[%s2814_s8 + $0xb0] sm:$0xff] %vm999_vm9, %v2196_v17  ;;  %v952_v18 = vpop.f32.mrb[5].mxu1 }
 0x180   : > { %1020 = vst.msk [vmem:[%s2814_s8 + $0xa0] sm:$0xff] %vm999_vm9, %v952_v18  ;;  %v2197_v19 = vpop.f32.mrb[6].mxu1 }
 0x181   : > { %1023 = vst.msk [vmem:[%s2814_s8 + $0xb8] sm:$0xff] %vm999_vm9, %v2197_v19  ;;  %v955_v20 = vpop.f32.mrb[7].mxu1 }
 0x182   : > { %1021 = vst.msk [vmem:[%s2814_s8 + $0xa8] sm:$0xff] %vm999_vm9, %v955_v20 }
 0x186   : > { %v2176_v21 = vpop.f32.mrb[0].mxu0 }
 0x187   : > { %1002 = vst.msk [vmem:[%s2814_s8 + $0x10] sm:$0xff] %vm999_vm9, %v2176_v21  ;;  %v872_v22 = vpop.f32.mrb[1].mxu0 }
 0x188   : > { %1000 = vst.msk [vmem:[%s2814_s8] sm:$0xff] %vm999_vm9, %v872_v22  ;;  %v2177_v23 = vpop.f32.mrb[2].mxu0 }
 0x189   : > { %1003 = vst.msk [vmem:[%s2814_s8 + $0x18] sm:$0xff] %vm999_vm9, %v2177_v23  ;;  %v875_v24 = vpop.f32.mrb[3].mxu0 }
 0x18a   : > { %1001 = vst.msk [vmem:[%s2814_s8 + $0x8] sm:$0xff] %vm999_vm9, %v875_v24 }
 0x18e   : > { %v1302_v39 = vld [vmem:[%s2814_s8 + $0x10] sm:$0xff] }
 0x18f   : > { %v1300_v43 = vld [vmem:[%s2814_s8] sm:$0xff] }
 0x190   : > { %v1303_v46 = vld [vmem:[%s2814_s8 + $0x18] sm:$0xff] }
 0x191   : > { %v1301_v49 = vld [vmem:[%s2814_s8 + $0x8] sm:$0xff] }
 0x19a   : > { %v2200_v25 = vpop.f32.mrb[8].mxu1 }
 0x19b   : > { %1026 = vst.msk [vmem:[%s2814_s8 + $0xd0] sm:$0xff] %vm999_vm9, %v2200_v25  ;;  %v968_v26 = vpop.f32.mrb[9].mxu1 }
 0x19c   : > { %1024 = vst.msk [vmem:[%s2814_s8 + $0xc0] sm:$0xff] %vm999_vm9, %v968_v26  ;;  %v2201_v27 = vpop.f32.mrb[10].mxu1 }
 0x19d   : > { %1027 = vst.msk [vmem:[%s2814_s8 + $0xd8] sm:$0xff] %vm999_vm9, %v2201_v27  ;;  %v971_v28 = vpop.f32.mrb[11].mxu1 }
 0x19e   : > { %1025 = vst.msk [vmem:[%s2814_s8 + $0xc8] sm:$0xff] %vm999_vm9, %v971_v28 }
 0x1a6   : > { %v2180_v29 = vpop.f32.mrb[4].mxu0 }
 0x1a7   : > { %1006 = vst.msk [vmem:[%s2814_s8 + $0x30] sm:$0xff] %vm999_vm9, %v2180_v29  ;;  %v888_v30 = vpop.f32.mrb[5].mxu0 }
 0x1a8   : > { %1004 = vst.msk [vmem:[%s2814_s8 + $0x20] sm:$0xff] %vm999_vm9, %v888_v30  ;;  %v2181_v31 = vpop.f32.mrb[6].mxu0 }
 0x1a9   : > { %1007 = vst.msk [vmem:[%s2814_s8 + $0x38] sm:$0xff] %vm999_vm9, %v2181_v31  ;;  %v891_v32 = vpop.f32.mrb[7].mxu0 }
 0x1aa   : > { %1005 = vst.msk [vmem:[%s2814_s8 + $0x28] sm:$0xff] %vm999_vm9, %v891_v32 }
 0x1ae   : > { %v1306_v58 = vld [vmem:[%s2814_s8 + $0x30] sm:$0xff] }
 0x1af   : > { %v1304_v61 = vld [vmem:[%s2814_s8 + $0x20] sm:$0xff] }
 0x1b0   : > { %v1307_v0 = vld [vmem:[%s2814_s8 + $0x38] sm:$0xff] }
 0x1b1   : > { %v1305_v3 = vld [vmem:[%s2814_s8 + $0x28] sm:$0xff] }
 0x1ba   : > { %v2204_v33 = vpop.f32.mrb[12].mxu1 }
 0x1bb   : > { %1030 = vst.msk [vmem:[%s2814_s8 + $0xf0] sm:$0xff] %vm999_vm9, %v2204_v33  ;;  %v984_v34 = vpop.f32.mrb[13].mxu1 }
 0x1bc   : > { %1028 = vst.msk [vmem:[%s2814_s8 + $0xe0] sm:$0xff] %vm999_vm9, %v984_v34  ;;  %v2205_v36 = vpop.f32.mrb[14].mxu1 }
 0x1bd   : > { %1031 = vst.msk [vmem:[%s2814_s8 + $0xf8] sm:$0xff] %vm999_vm9, %v2205_v36  ;;  %v987_v37 = vpop.f32.mrb[15].mxu1 }
 0x1be   : > { %1029 = vst.msk [vmem:[%s2814_s8 + $0xe8] sm:$0xff] %vm999_vm9, %v987_v37 }
 0x1c2   : > { %v2210_v38 = vpop.f32.mrb[16].mxu1 }
 0x1c3   : > { %v1334_v40 = vadd.f32 %v2210_v38, %v1302_v39  ;;  %v1173_v42 = vpop.f32.mrb[17].mxu1 }
 0x1c4   : > { %v1332_v44 = vadd.f32 %v1300_v43, %v1173_v42  ;;  %v2211_v45 = vpop.f32.mrb[18].mxu1 }
 0x1c5   : > { %1366 = vst.msk [vmem:[%s2814_s8 + $0x10] sm:$0xff] %vm999_vm9, %v1334_v40  ;;  %v1335_v47 = vadd.f32 %v2211_v45, %v1303_v46  ;;  %v1176_v48 = vpop.f32.mrb[19].mxu1 }
 0x1c6   : > { %1364 = vst.msk [vmem:[%s2814_s8] sm:$0xff] %vm999_vm9, %v1332_v44  ;;  %v1333_v50 = vadd.f32 %v1301_v49, %v1176_v48  ;;  %v2184_v52 = vpop.f32.mrb[8].mxu0  ;;  %v1318_v44 = vld [vmem:[%s2814_s8 + $0x90] sm:$0xff] }
 0x1c7   : > { %1367 = vst.msk [vmem:[%s2814_s8 + $0x18] sm:$0xff] %vm999_vm9, %v1335_v47  ;;  %1010 = vst.msk [vmem:[%s2814_s8 + $0x50] sm:$0xff] %vm999_vm9, %v2184_v52  ;;  %v904_v53 = vpop.f32.mrb[9].mxu0  ;;  %v1316_v47 = vld [vmem:[%s2814_s8 + $0x80] sm:$0xff] }
 0x1c8   : > { %1365 = vst.msk [vmem:[%s2814_s8 + $0x8] sm:$0xff] %vm999_vm9, %v1333_v50  ;;  %1008 = vst.msk [vmem:[%s2814_s8 + $0x40] sm:$0xff] %vm999_vm9, %v904_v53  ;;  %v2185_v54 = vpop.f32.mrb[10].mxu0  ;;  %v1319_v50 = vld [vmem:[%s2814_s8 + $0x98] sm:$0xff] }
 0x1c9   : > { %1011 = vst.msk [vmem:[%s2814_s8 + $0x58] sm:$0xff] %vm999_vm9, %v2185_v54  ;;  %v907_v55 = vpop.f32.mrb[11].mxu0  ;;  %v1317_v54 = vld [vmem:[%s2814_s8 + $0x88] sm:$0xff] }
 0x1ca   : > { %1009 = vst.msk [vmem:[%s2814_s8 + $0x48] sm:$0xff] %vm999_vm9, %v907_v55  ;;  %v2214_v57 = vpop.f32.mrb[20].mxu1 }
 0x1cb   : > { %v1338_v59 = vadd.f32 %v2214_v57, %v1306_v58  ;;  %v1189_v60 = vpop.f32.mrb[21].mxu1 }
 0x1cc   : > { %v1336_v62 = vadd.f32 %v1304_v61, %v1189_v60  ;;  %v2215_v63 = vpop.f32.mrb[22].mxu1  ;;  %v1667_v23 = vld [vmem:[%s2814_s8 + $0x10] sm:$0xff] }
 0x1cd   : > { %1370 = vst.msk [vmem:[%s2814_s8 + $0x30] sm:$0xff] %vm999_vm9, %v1338_v59  ;;  %v1339_v1 = vadd.f32 %v2215_v63, %v1307_v0  ;;  %v1192_v2 = vpop.f32.mrb[23].mxu1  ;;  %v1665_v28 = vld [vmem:[%s2814_s8] sm:$0xff] }
 0x1ce   : > { %1368 = vst.msk [vmem:[%s2814_s8 + $0x20] sm:$0xff] %vm999_vm9, %v1336_v62  ;;  %v1337_v4 = vadd.f32 %v1305_v3, %v1192_v2  ;;  %v1310_v7 = vld [vmem:[%s2814_s8 + $0x50] sm:$0xff]  ;;  %v1668_v33 = vld [vmem:[%s2814_s8 + $0x18] sm:$0xff] }
 0x1cf   : > { %1371 = vst.msk [vmem:[%s2814_s8 + $0x38] sm:$0xff] %vm999_vm9, %v1339_v1  ;;  %v1308_v10 = vld [vmem:[%s2814_s8 + $0x40] sm:$0xff]  ;;  %v1666_v39 = vld [vmem:[%s2814_s8 + $0x8] sm:$0xff] }
 0x1d0   : > { %1369 = vst.msk [vmem:[%s2814_s8 + $0x28] sm:$0xff] %vm999_vm9, %v1337_v4  ;;  %v1311_v13 = vld [vmem:[%s2814_s8 + $0x58] sm:$0xff] }
 0x1d1   : > { %v1309_v41 = vld [vmem:[%s2814_s8 + $0x48] sm:$0xff] }
 0x1d2   : > { %v2218_v5 = vpop.f32.mrb[24].mxu1 }
 0x1d3   : > { %v1342_v8 = vadd.f32 %v2218_v5, %v1310_v7  ;;  %v1205_v6 = vpop.f32.mrb[25].mxu1 }
 0x1d4   : > { %v1340_v11 = vadd.f32 %v1308_v10, %v1205_v6  ;;  %v2219_v12 = vpop.f32.mrb[26].mxu1  ;;  %v1671_v58 = vld [vmem:[%s2814_s8 + $0x30] sm:$0xff] }
 0x1d5   : > { %1374 = vst.msk [vmem:[%s2814_s8 + $0x50] sm:$0xff] %vm999_vm9, %v1342_v8  ;;  %v1343_v14 = vadd.f32 %v2219_v12, %v1311_v13  ;;  %v1208_v35 = vpop.f32.mrb[27].mxu1  ;;  %v1669_v61 = vld [vmem:[%s2814_s8 + $0x20] sm:$0xff] }
 0x1d6   : > { %1372 = vst.msk [vmem:[%s2814_s8 + $0x40] sm:$0xff] %vm999_vm9, %v1340_v11  ;;  %v1341_v51 = vadd.f32 %v1309_v41, %v1208_v35  ;;  %v2188_v56 = vpop.f32.mrb[12].mxu0  ;;  %v1672_v1 = vld [vmem:[%s2814_s8 + $0x38] sm:$0xff]  ;;  %v1322_v11 = vld [vmem:[%s2814_s8 + $0xb0] sm:$0xff]  ;;  %v1320_v41 = vld [vmem:[%s2814_s8 + $0xa0] sm:$0xff] }
 0x1d7   : > { %1375 = vst.msk [vmem:[%s2814_s8 + $0x58] sm:$0xff] %vm999_vm9, %v1343_v14  ;;  %1014 = vst.msk [vmem:[%s2814_s8 + $0x70] sm:$0xff] %vm999_vm9, %v2188_v56  ;;  %v920_v9 = vpop.f32.mrb[13].mxu0  ;;  %v1670_v5 = vld [vmem:[%s2814_s8 + $0x28] sm:$0xff] }
 0x1d8   : > { %1373 = vst.msk [vmem:[%s2814_s8 + $0x48] sm:$0xff] %vm999_vm9, %v1341_v51  ;;  %1012 = vst.msk [vmem:[%s2814_s8 + $0x60] sm:$0xff] %vm999_vm9, %v920_v9  ;;  %v2189_v15 = vpop.f32.mrb[14].mxu0 }
 0x1d9   : > { %1015 = vst.msk [vmem:[%s2814_s8 + $0x78] sm:$0xff] %vm999_vm9, %v2189_v15  ;;  %v923_v16 = vpop.f32.mrb[15].mxu0 }
 0x1da   : > { %1013 = vst.msk [vmem:[%s2814_s8 + $0x68] sm:$0xff] %vm999_vm9, %v923_v16  ;;  %v2222_v17 = vpop.f32.mrb[28].mxu1 }
 0x1db   : > { %v1221_v18 = vpop.f32.mrb[29].mxu1 }
 0x1dc   : > { %v2223_v19 = vpop.f32.mrb[30].mxu1 }
 0x1dd   : > { %v1224_v20 = vpop.f32.mrb[31].mxu1 }
 0x1de   : > { %v1314_v21 = vld [vmem:[%s2814_s8 + $0x70] sm:$0xff]  ;;  %v2244_v22 = vpop.f32.mrb[16].mxu0 }
 0x1df   : > { %v1346_v24 = vadd.f32 %v2222_v17, %v1314_v21  ;;  %v1312_v25 = vld [vmem:[%s2814_s8 + $0x60] sm:$0xff]  ;;  %v1699_v26 = vadd.f32 %v2244_v22, %v1667_v23  ;;  %v1538_v27 = vpop.f32.mrb[17].mxu0  ;;  %v1323_v17 = vld [vmem:[%s2814_s8 + $0xb8] sm:$0xff]  ;;  %v1321_v22 = vld [vmem:[%s2814_s8 + $0xa8] sm:$0xff] }
 0x1e0   : > { %v1344_v29 = vadd.f32 %v1312_v25, %v1221_v18  ;;  %v1315_v30 = vld [vmem:[%s2814_s8 + $0x78] sm:$0xff]  ;;  %v1697_v31 = vadd.f32 %v1665_v28, %v1538_v27  ;;  %v2245_v32 = vpop.f32.mrb[18].mxu0  ;;  %v1675_v28 = vld [vmem:[%s2814_s8 + $0x50] sm:$0xff] }
 0x1e1   : > { %1378 = vst.msk [vmem:[%s2814_s8 + $0x70] sm:$0xff] %vm999_vm9, %v1346_v24  ;;  %v1347_v34 = vadd.f32 %v2223_v19, %v1315_v30  ;;  %v1313_v36 = vld [vmem:[%s2814_s8 + $0x68] sm:$0xff]  ;;  %1731 = vst.msk [vmem:[%s2814_s8 + $0x10] sm:$0xff] %vm999_vm9, %v1699_v26  ;;  %v1700_v37 = vadd.f32 %v2245_v32, %v1668_v33  ;;  %v1541_v38 = vpop.f32.mrb[19].mxu0  ;;  %v1673_v33 = vld [vmem:[%s2814_s8 + $0x40] sm:$0xff] }
 0x1e2   : > { %1376 = vst.msk [vmem:[%s2814_s8 + $0x60] sm:$0xff] %vm999_vm9, %v1344_v29  ;;  %v1345_v40 = vadd.f32 %v1313_v36, %v1224_v20  ;;  %1729 = vst.msk [vmem:[%s2814_s8] sm:$0xff] %vm999_vm9, %v1697_v31  ;;  %v1698_v42 = vadd.f32 %v1666_v39, %v1541_v38  ;;  %v2226_v43 = vpop.f32.mrb[32].mxu1 }
 0x1e3   : > { %1379 = vst.msk [vmem:[%s2814_s8 + $0x78] sm:$0xff] %vm999_vm9, %v1347_v34  ;;  %1732 = vst.msk [vmem:[%s2814_s8 + $0x18] sm:$0xff] %vm999_vm9, %v1700_v37  ;;  %v1350_v45 = vadd.f32 %v2226_v43, %v1318_v44  ;;  %v1237_v46 = vpop.f32.mrb[33].mxu1 }
 0x1e4   : > { %1377 = vst.msk [vmem:[%s2814_s8 + $0x68] sm:$0xff] %vm999_vm9, %v1345_v40  ;;  %1730 = vst.msk [vmem:[%s2814_s8 + $0x8] sm:$0xff] %vm999_vm9, %v1698_v42  ;;  %v1348_v48 = vadd.f32 %v1316_v47, %v1237_v46  ;;  %v2227_v49 = vpop.f32.mrb[34].mxu1  ;;  %v1674_v47 = vld [vmem:[%s2814_s8 + $0x48] sm:$0xff] }
 0x1e5   : > { %1382 = vst.msk [vmem:[%s2814_s8 + $0x90] sm:$0xff] %vm999_vm9, %v1350_v45  ;;  %v1351_v52 = vadd.f32 %v2227_v49, %v1319_v50  ;;  %v1240_v53 = vpop.f32.mrb[35].mxu1  ;;  %v1676_v45 = vld [vmem:[%s2814_s8 + $0x58] sm:$0xff] }
 0x1e6   : > { %1380 = vst.msk [vmem:[%s2814_s8 + $0x80] sm:$0xff] %vm999_vm9, %v1348_v48  ;;  %v1349_v55 = vadd.f32 %v1317_v54, %v1240_v53  ;;  %v2248_v57 = vpop.f32.mrb[20].mxu0 }
 0x1e7   : > { %1383 = vst.msk [vmem:[%s2814_s8 + $0x98] sm:$0xff] %vm999_vm9, %v1351_v52  ;;  %v1703_v59 = vadd.f32 %v2248_v57, %v1671_v58  ;;  %v1554_v60 = vpop.f32.mrb[21].mxu0 }
 0x1e8   : > { %v1763_v62 = vld [vmem:[%s2814_s8 + $0x10] sm:$0xff]  ;;  %1381 = vst.msk [vmem:[%s2814_s8 + $0x88] sm:$0xff] %vm999_vm9, %v1349_v55  ;;  %v1701_v63 = vadd.f32 %v1669_v61, %v1554_v60  ;;  %v2249_v0 = vpop.f32.mrb[22].mxu0 }
 0x1e9   : > { %v1761_v2 = vld [vmem:[%s2814_s8] sm:$0xff]  ;;  %1735 = vst.msk [vmem:[%s2814_s8 + $0x30] sm:$0xff] %vm999_vm9, %v1703_v59  ;;  %v1704_v3 = vadd.f32 %v2249_v0, %v1672_v1  ;;  %v1557_v4 = vpop.f32.mrb[23].mxu0  ;;  %v1866_v12 = vmul.f32 %v1763_v62, %v1763_v62  ;;  %v1796_v23 = vsel %vm999_vm9, %v1763_v62, 0.0  ;;  %v1326_v1 = vld [vmem:[%s2814_s8 + $0xd0] sm:$0xff] }
 0x1ea   : > { %v1864_v7 = vmul.f32 %v1761_v2, %v1761_v2  ;;  %v1764_v8 = vld [vmem:[%s2814_s8 + $0x18] sm:$0xff]  ;;  %1733 = vst.msk [vmem:[%s2814_s8 + $0x20] sm:$0xff] %vm999_vm9, %v1701_v63  ;;  %v1702_v6 = vadd.f32 %v1670_v5, %v1557_v4  ;;  %v2230_v10 = vpop.f32.mrb[36].mxu1  ;;  %v1793_v51 = vsel %vm999_vm9, %v1761_v2, 0.0  ;;  %v1324_v2 = vld [vmem:[%s2814_s8 + $0xc0] sm:$0xff] }
 0x1eb   : > { %v1762_v13 = vld [vmem:[%s2814_s8 + $0x8] sm:$0xff]  ;;  %1736 = vst.msk [vmem:[%s2814_s8 + $0x38] sm:$0xff] %vm999_vm9, %v1704_v3  ;;  %v1354_v14 = vadd.f32 %v2230_v10, %v1322_v11  ;;  %v1253_v35 = vpop.f32.mrb[37].mxu1  ;;  %v1867_v18 = vmul.f32 %v1764_v8, %v1764_v8  ;;  %v1899_v34 = vsel %vm999_vm9, %v1866_v12, 0.0  ;;  %v1798_v36 = vsel %vm999_vm9, %v1764_v8, 0.0 }
 0x1ec   : > { %v1794_v56 = vsel %vm999_vm9, %v1762_v13, 0.0  ;;  %v1865_v9 = vmul.f32 %v1762_v13, %v1762_v13  ;;  %1734 = vst.msk [vmem:[%s2814_s8 + $0x28] sm:$0xff] %vm999_vm9, %v1702_v6  ;;  %v1352_v15 = vadd.f32 %v1320_v41, %v1253_v35  ;;  %v2231_v16 = vpop.f32.mrb[38].mxu1  ;;  %v1896_v24 = vsel %vm999_vm9, %v1864_v7, 0.0  ;;  %v1327_v6 = vld [vmem:[%s2814_s8 + $0xd8] sm:$0xff]  ;;  %v1325_v11 = vld [vmem:[%s2814_s8 + $0xc8] sm:$0xff] }
 0x1ed   : > { %v1795_v19 = vadd.f32 %v1794_v56, %v1793_v51  ;;  %1386 = vst.msk [vmem:[%s2814_s8 + $0xb0] sm:$0xff] %vm999_vm9, %v1354_v14  ;;  %v1355_v20 = vadd.f32 %v2231_v16, %v1323_v17  ;;  %v1256_v21 = vpop.f32.mrb[39].mxu1  ;;  %v1901_v40 = vsel %vm999_vm9, %v1867_v18, 0.0  ;;  %v1679_v51 = vld [vmem:[%s2814_s8 + $0x70] sm:$0xff]  ;;  %v1677_v17 = vld [vmem:[%s2814_s8 + $0x60] sm:$0xff] }
 0x1ee   : > { %v1897_v25 = vsel %vm999_vm9, %v1865_v9, 0.0  ;;  %1384 = vst.msk [vmem:[%s2814_s8 + $0xa0] sm:$0xff] %vm999_vm9, %v1352_v15  ;;  %v1353_v26 = vadd.f32 %v1321_v22, %v1256_v21  ;;  %v2252_v27 = vpop.f32.mrb[24].mxu0  ;;  %v1680_v22 = vld [vmem:[%s2814_s8 + $0x78] sm:$0xff] }
 0x1ef   : > { %v1797_v29 = vadd.f32 %v1796_v23, %v1795_v19  ;;  %v1898_v30 = vadd.f32 %v1897_v25, %v1896_v24  ;;  %1387 = vst.msk [vmem:[%s2814_s8 + $0xb8] sm:$0xff] %vm999_vm9, %v1355_v20  ;;  %v1707_v31 = vadd.f32 %v2252_v27, %v1675_v28  ;;  %v1570_v32 = vpop.f32.mrb[25].mxu0 }
 0x1f0   : > { %v1767_v37 = vld [vmem:[%s2814_s8 + $0x30] sm:$0xff]  ;;  %1385 = vst.msk [vmem:[%s2814_s8 + $0xa8] sm:$0xff] %vm999_vm9, %v1353_v26  ;;  %v1705_v38 = vadd.f32 %v1673_v33, %v1570_v32  ;;  %v2253_v39 = vpop.f32.mrb[26].mxu0 }
 0x1f1   : > { %v1900_v42 = vadd.f32 %v1899_v34, %v1898_v30  ;;  %v1765_v43 = vld [vmem:[%s2814_s8 + $0x20] sm:$0xff]  ;;  %v1799_v44 = vadd.f32 %v1798_v36, %v1797_v29  ;;  %1739 = vst.msk [vmem:[%s2814_s8 + $0x50] sm:$0xff] %vm999_vm9, %v1707_v31  ;;  %v1573_v46 = vpop.f32.mrb[27].mxu0  ;;  %v1708_v52 = vadd.f32 %v2253_v39, %v1676_v45  ;;  %v1870_v55 = vmul.f32 %v1767_v37, %v1767_v37  ;;  %v1678_v29 = vld [vmem:[%s2814_s8 + $0x68] sm:$0xff]  ;;  %v1330_v36 = vld [vmem:[%s2814_s8 + $0xf0] sm:$0xff] }
 0x1f2   : > { %v1800_v48 = vsel %vm999_vm9, %v1765_v43, 0.0  ;;  %v1868_v49 = vmul.f32 %v1765_v43, %v1765_v43  ;;  %v1768_v50 = vld [vmem:[%s2814_s8 + $0x38] sm:$0xff]  ;;  %1737 = vst.msk [vmem:[%s2814_s8 + $0x40] sm:$0xff] %vm999_vm9, %v1705_v38  ;;  %v1706_v53 = vadd.f32 %v1674_v47, %v1573_v46  ;;  %v2234_v54 = vpop.f32.mrb[40].mxu1  ;;  %v1804_v12 = vsel %vm999_vm9, %v1767_v37, 0.0  ;;  %v1328_v47 = vld [vmem:[%s2814_s8 + $0xe0] sm:$0xff] }
 0x1f3   : > { %v1801_v57 = vadd.f32 %v1800_v48, %v1799_v44  ;;  %v1902_v58 = vadd.f32 %v1901_v40, %v1900_v42  ;;  %v1766_v59 = vld [vmem:[%s2814_s8 + $0x28] sm:$0xff]  ;;  %v1269_v60 = vpop.f32.mrb[41].mxu1  ;;  %v1871_v62 = vmul.f32 %v1768_v50, %v1768_v50  ;;  %1740 = vst.msk [vmem:[%s2814_s8 + $0x58] sm:$0xff] %vm999_vm9, %v1708_v52  ;;  %v1358_v7 = vadd.f32 %v2234_v54, %v1326_v1  ;;  %v1331_v54 = vld [vmem:[%s2814_s8 + $0xf8] sm:$0xff] }
 0x1f4   : > { %v1903_v61 = vsel %vm999_vm9, %v1868_v49, 0.0  ;;  %v1802_v63 = vsel %vm999_vm9, %v1766_v59, 0.0  ;;  %v1869_v0 = vmul.f32 %v1766_v59, %v1766_v59  ;;  %1738 = vst.msk [vmem:[%s2814_s8 + $0x48] sm:$0xff] %vm999_vm9, %v1706_v53  ;;  %v2235_v3 = vpop.f32.mrb[42].mxu1  ;;  %v1356_v8 = vadd.f32 %v1324_v2, %v1269_v60 }
 0x1f5   : > { %v1904_v4 = vadd.f32 %v1903_v61, %v1902_v58  ;;  %v1803_v5 = vadd.f32 %v1802_v63, %v1801_v57  ;;  %v1272_v10 = vpop.f32.mrb[43].mxu1  ;;  %v1359_v14 = vadd.f32 %v2235_v3, %v1327_v6  ;;  %1390 = vst.msk [vmem:[%s2814_s8 + $0xd0] sm:$0xff] %vm999_vm9, %v1358_v7  ;;  %v1907_v18 = vsel %vm999_vm9, %v1870_v55, 0.0  ;;  %v1329_v57 = vld [vmem:[%s2814_s8 + $0xe8] sm:$0xff] }
 0x1f6   : > { %v1905_v13 = vsel %vm999_vm9, %v1869_v0, 0.0  ;;  %v1357_v35 = vadd.f32 %v1325_v11, %v1272_v10  ;;  %v2256_v41 = vpop.f32.mrb[28].mxu0  ;;  %1388 = vst.msk [vmem:[%s2814_s8 + $0xc0] sm:$0xff] %vm999_vm9, %v1356_v8  ;;  %v1806_v19 = vsel %vm999_vm9, %v1768_v50, 0.0  ;;  %v1909_v23 = vsel %vm999_vm9, %v1871_v62, 0.0  ;;  %v1683_v62 = vld [vmem:[%s2814_s8 + $0x90] sm:$0xff] }
 0x1f7   : > { %v1805_v56 = vadd.f32 %v1804_v12, %v1803_v5  ;;  %v1906_v9 = vadd.f32 %v1905_v13, %v1904_v4  ;;  %v1711_v15 = vadd.f32 %v2256_v41, %v1679_v51  ;;  %v1586_v16 = vpop.f32.mrb[29].mxu0  ;;  %1391 = vst.msk [vmem:[%s2814_s8 + $0xd8] sm:$0xff] %vm999_vm9, %v1359_v14  ;;  %v1681_v4 = vld [vmem:[%s2814_s8 + $0x80] sm:$0xff]  ;;  %v1684_v10 = vld [vmem:[%s2814_s8 + $0x98] sm:$0xff]  ;;  %v1682_v41 = vld [vmem:[%s2814_s8 + $0x88] sm:$0xff] }
 0x1f8   : > { %1389 = vst.msk [vmem:[%s2814_s8 + $0xc8] sm:$0xff] %vm999_vm9, %v1357_v35  ;;  %v1709_v20 = vadd.f32 %v1677_v17, %v1586_v16  ;;  %v2257_v21 = vpop.f32.mrb[30].mxu0  ;;  %v1771_v25 = vld [vmem:[%s2814_s8 + $0x50] sm:$0xff] }
 0x1f9   : > { %v1908_v24 = vadd.f32 %v1907_v18, %v1906_v9  ;;  %v1769_v26 = vld [vmem:[%s2814_s8 + $0x40] sm:$0xff]  ;;  %v1807_v27 = vadd.f32 %v1806_v19, %v1805_v56  ;;  %1743 = vst.msk [vmem:[%s2814_s8 + $0x70] sm:$0xff] %vm999_vm9, %v1711_v15  ;;  %v1589_v28 = vpop.f32.mrb[31].mxu0  ;;  %v1712_v32 = vadd.f32 %v2257_v21, %v1680_v22  ;;  %v1874_v43 = vmul.f32 %v1771_v25, %v1771_v25 }
 0x1fa   : > { %v1808_v30 = vsel %vm999_vm9, %v1769_v26, 0.0  ;;  %v1872_v31 = vmul.f32 %v1769_v26, %v1769_v26  ;;  %1741 = vst.msk [vmem:[%s2814_s8 + $0x60] sm:$0xff] %vm999_vm9, %v1709_v20  ;;  %v1710_v33 = vadd.f32 %v1678_v29, %v1589_v28  ;;  %v2238_v34 = vpop.f32.mrb[44].mxu1  ;;  %v1772_v45 = vld [vmem:[%s2814_s8 + $0x58] sm:$0xff]  ;;  %v1812_v58 = vsel %vm999_vm9, %v1771_v25, 0.0  ;;  %v1687_v29 = vld [vmem:[%s2814_s8 + $0xb0] sm:$0xff] }
 0x1fb   : > { %v1809_v37 = vadd.f32 %v1808_v30, %v1807_v27  ;;  %v1910_v38 = vadd.f32 %v1909_v23, %v1908_v24  ;;  %v1770_v39 = vld [vmem:[%s2814_s8 + $0x48] sm:$0xff]  ;;  %v1362_v40 = vadd.f32 %v2238_v34, %v1330_v36  ;;  %v1285_v42 = vpop.f32.mrb[45].mxu1  ;;  %1744 = vst.msk [vmem:[%s2814_s8 + $0x78] sm:$0xff] %vm999_vm9, %v1712_v32  ;;  %v1875_v63 = vmul.f32 %v1772_v45, %v1772_v45  ;;  %v1685_v36 = vld [vmem:[%s2814_s8 + $0xa0] sm:$0xff] }
 0x1fc   : > { %v1911_v44 = vsel %vm999_vm9, %v1872_v31, 0.0  ;;  %v1810_v46 = vsel %vm999_vm9, %v1770_v39, 0.0  ;;  %1742 = vst.msk [vmem:[%s2814_s8 + $0x68] sm:$0xff] %vm999_vm9, %v1710_v33  ;;  %v2239_v48 = vpop.f32.mrb[46].mxu1  ;;  %v1873_v52 = vmul.f32 %v1770_v39, %v1770_v39  ;;  %v1360_v53 = vadd.f32 %v1328_v47, %v1285_v42  ;;  %v1688_v42 = vld [vmem:[%s2814_s8 + $0xb8] sm:$0xff] }
 0x1fd   : > { %v1912_v49 = vadd.f32 %v1911_v44, %v1910_v38  ;;  %v1811_v50 = vadd.f32 %v1810_v46, %v1809_v37  ;;  %1394 = vst.msk [vmem:[%s2814_s8 + $0xf0] sm:$0xff] %vm999_vm9, %v1362_v40  ;;  %v1288_v55 = vpop.f32.mrb[47].mxu1  ;;  %v1363_v59 = vadd.f32 %v2239_v48, %v1331_v54  ;;  %v1814_v5 = vsel %vm999_vm9, %v1772_v45, 0.0  ;;  %v1686_v54 = vld [vmem:[%s2814_s8 + $0xa8] sm:$0xff] }
 0x1fe   : > { %v1361_v60 = vadd.f32 %v1329_v57, %v1288_v55  ;;  %v2260_v61 = vpop.f32.mrb[32].mxu0  ;;  %v1913_v1 = vsel %vm999_vm9, %v1873_v52, 0.0  ;;  %1392 = vst.msk [vmem:[%s2814_s8 + $0xe0] sm:$0xff] %vm999_vm9, %v1360_v53  ;;  %v1915_v11 = vsel %vm999_vm9, %v1874_v43, 0.0  ;;  %v1917_v17 = vsel %vm999_vm9, %v1875_v63, 0.0 }
 0x1ff   : > { %v1813_v0 = vadd.f32 %v1812_v58, %v1811_v50  ;;  %v1715_v2 = vadd.f32 %v2260_v61, %v1683_v62  ;;  %v1602_v3 = vpop.f32.mrb[33].mxu0  ;;  %v1914_v7 = vadd.f32 %v1913_v1, %v1912_v49  ;;  %1395 = vst.msk [vmem:[%s2814_s8 + $0xf8] sm:$0xff] %vm999_vm9, %v1363_v59 }
 0x200   : > { %1393 = vst.msk [vmem:[%s2814_s8 + $0xe8] sm:$0xff] %vm999_vm9, %v1361_v60  ;;  %v1713_v8 = vadd.f32 %v1681_v4, %v1602_v3  ;;  %v2261_v6 = vpop.f32.mrb[34].mxu0  ;;  %v1775_v56 = vld [vmem:[%s2814_s8 + $0x70] sm:$0xff] }
 0x201   : > { %v1773_v12 = vld [vmem:[%s2814_s8 + $0x60] sm:$0xff]  ;;  %v1815_v13 = vadd.f32 %v1814_v5, %v1813_v0  ;;  %1747 = vst.msk [vmem:[%s2814_s8 + $0x90] sm:$0xff] %vm999_vm9, %v1715_v2  ;;  %v1716_v14 = vadd.f32 %v2261_v6, %v1684_v10  ;;  %v1605_v35 = vpop.f32.mrb[35].mxu0  ;;  %v1916_v51 = vadd.f32 %v1915_v11, %v1914_v7  ;;  %v1878_v23 = vmul.f32 %v1775_v56, %v1775_v56  ;;  %v1691_v5 = vld [vmem:[%s2814_s8 + $0xd0] sm:$0xff] }
 0x202   : > { %v1816_v9 = vsel %vm999_vm9, %v1773_v12, 0.0  ;;  %v1876_v15 = vmul.f32 %v1773_v12, %v1773_v12  ;;  %1745 = vst.msk [vmem:[%s2814_s8 + $0x80] sm:$0xff] %vm999_vm9, %v1713_v8  ;;  %v1714_v16 = vadd.f32 %v1682_v41, %v1605_v35  ;;  %v1776_v22 = vld [vmem:[%s2814_s8 + $0x78] sm:$0xff]  ;;  %v1820_v30 = vsel %vm999_vm9, %v1775_v56, 0.0  ;;  %v1689_v12 = vld [vmem:[%s2814_s8 + $0xc0] sm:$0xff] }
 0x203   : > { %v1817_v18 = vadd.f32 %v1816_v9, %v1815_v13  ;;  %v1774_v19 = vld [vmem:[%s2814_s8 + $0x68] sm:$0xff]  ;;  %1748 = vst.msk [vmem:[%s2814_s8 + $0x98] sm:$0xff] %vm999_vm9, %v1716_v14  ;;  %v1918_v20 = vadd.f32 %v1917_v17, %v1916_v51  ;;  %v1879_v31 = vmul.f32 %v1776_v22, %v1776_v22  ;;  %v1923_v43 = vsel %vm999_vm9, %v1878_v23, 0.0  ;;  %v1692_v51 = vld [vmem:[%s2814_s8 + $0xd8] sm:$0xff] }
 0x204   : > { %v1919_v21 = vsel %vm999_vm9, %v1876_v15, 0.0  ;;  %1746 = vst.msk [vmem:[%s2814_s8 + $0x88] sm:$0xff] %vm999_vm9, %v1714_v16  ;;  %v1818_v24 = vsel %vm999_vm9, %v1774_v19, 0.0  ;;  %v1877_v25 = vmul.f32 %v1774_v19, %v1774_v19  ;;  %v1822_v44 = vsel %vm999_vm9, %v1776_v22, 0.0  ;;  %v1690_v23 = vld [vmem:[%s2814_s8 + $0xc8] sm:$0xff] }
 0x205   : > { %v1920_v26 = vadd.f32 %v1919_v21, %v1918_v20  ;;  %v1819_v27 = vadd.f32 %v1818_v24, %v1817_v18  ;;  %v1925_v55 = vsel %vm999_vm9, %v1879_v31, 0.0 }
 0x206   : > { %v2264_v28 = vpop.f32.mrb[36].mxu0  ;;  %v1921_v32 = vsel %vm999_vm9, %v1877_v25, 0.0 }
 0x207   : > { %v1719_v33 = vadd.f32 %v2264_v28, %v1687_v29  ;;  %v1618_v34 = vpop.f32.mrb[37].mxu0  ;;  %v1821_v37 = vadd.f32 %v1820_v30, %v1819_v27  ;;  %v1922_v38 = vadd.f32 %v1921_v32, %v1920_v26 }
 0x208   : > { %v1717_v39 = vadd.f32 %v1685_v36, %v1618_v34  ;;  %v2265_v40 = vpop.f32.mrb[38].mxu0  ;;  %v1779_v49 = vld [vmem:[%s2814_s8 + $0x90] sm:$0xff] }
 0x209   : > { %v1777_v45 = vld [vmem:[%s2814_s8 + $0x80] sm:$0xff]  ;;  %1751 = vst.msk [vmem:[%s2814_s8 + $0xb0] sm:$0xff] %vm999_vm9, %v1719_v33  ;;  %v1720_v46 = vadd.f32 %v2265_v40, %v1688_v42  ;;  %v1621_v47 = vpop.f32.mrb[39].mxu0  ;;  %v1924_v48 = vadd.f32 %v1923_v43, %v1922_v38  ;;  %v1823_v50 = vadd.f32 %v1822_v44, %v1821_v37  ;;  %v1882_v0 = vmul.f32 %v1779_v49, %v1779_v49  ;;  %v1695_v38 = vld [vmem:[%s2814_s8 + $0xf0] sm:$0xff] }
 0x20a   : > { %v1824_v52 = vsel %vm999_vm9, %v1777_v45, 0.0  ;;  %v1880_v53 = vmul.f32 %v1777_v45, %v1777_v45  ;;  %1749 = vst.msk [vmem:[%s2814_s8 + $0xa0] sm:$0xff] %vm999_vm9, %v1717_v39  ;;  %v1718_v58 = vadd.f32 %v1686_v54, %v1621_v47  ;;  %v1780_v62 = vld [vmem:[%s2814_s8 + $0x98] sm:$0xff]  ;;  %v1828_v7 = vsel %vm999_vm9, %v1779_v49, 0.0  ;;  %v1693_v45 = vld [vmem:[%s2814_s8 + $0xe0] sm:$0xff] }
 0x20b   : > { %v1778_v57 = vld [vmem:[%s2814_s8 + $0x88] sm:$0xff]  ;;  %1752 = vst.msk [vmem:[%s2814_s8 + $0xb8] sm:$0xff] %vm999_vm9, %v1720_v46  ;;  %v1825_v59 = vadd.f32 %v1824_v52, %v1823_v50  ;;  %v1926_v60 = vadd.f32 %v1925_v55, %v1924_v48  ;;  %v1883_v8 = vmul.f32 %v1780_v62, %v1780_v62  ;;  %v1931_v56 = vsel %vm999_vm9, %v1882_v0, 0.0  ;;  %v1696_v50 = vld [vmem:[%s2814_s8 + $0xf8] sm:$0xff] }
 0x20c   : > { %v1927_v61 = vsel %vm999_vm9, %v1880_v53, 0.0  ;;  %v1826_v63 = vsel %vm999_vm9, %v1778_v57, 0.0  ;;  %v1881_v1 = vmul.f32 %v1778_v57, %v1778_v57  ;;  %1750 = vst.msk [vmem:[%s2814_s8 + $0xa8] sm:$0xff] %vm999_vm9, %v1718_v58  ;;  %v1830_v9 = vsel %vm999_vm9, %v1780_v62, 0.0 }
 0x20d   : > { %v1928_v2 = vadd.f32 %v1927_v61, %v1926_v60  ;;  %v1827_v3 = vadd.f32 %v1826_v63, %v1825_v59  ;;  %v1933_v24 = vsel %vm999_vm9, %v1883_v8, 0.0  ;;  %v1694_v63 = vld [vmem:[%s2814_s8 + $0xe8] sm:$0xff] }
 0x20e   : > { %v2268_v4 = vpop.f32.mrb[40].mxu0  ;;  %v1929_v6 = vsel %vm999_vm9, %v1881_v1, 0.0 }
 0x20f   : > { %v1723_v10 = vadd.f32 %v2268_v4, %v1691_v5  ;;  %v1634_v11 = vpop.f32.mrb[41].mxu0  ;;  %v1829_v13 = vadd.f32 %v1828_v7, %v1827_v3  ;;  %v1930_v14 = vadd.f32 %v1929_v6, %v1928_v2 }
 0x210   : > { %v1721_v35 = vadd.f32 %v1689_v12, %v1634_v11  ;;  %v2269_v41 = vpop.f32.mrb[42].mxu0  ;;  %v1783_v19 = vld [vmem:[%s2814_s8 + $0xb0] sm:$0xff] }
 0x211   : > { %v1781_v15 = vld [vmem:[%s2814_s8 + $0xa0] sm:$0xff]  ;;  %1755 = vst.msk [vmem:[%s2814_s8 + $0xd0] sm:$0xff] %vm999_vm9, %v1723_v10  ;;  %v1724_v16 = vadd.f32 %v2269_v41, %v1692_v51  ;;  %v1637_v17 = vpop.f32.mrb[43].mxu0  ;;  %v1932_v18 = vadd.f32 %v1931_v56, %v1930_v14  ;;  %v1831_v20 = vadd.f32 %v1830_v9, %v1829_v13  ;;  %v1886_v31 = vmul.f32 %v1783_v19, %v1783_v19 }
 0x212   : > { %v1832_v21 = vsel %vm999_vm9, %v1781_v15, 0.0  ;;  %v1884_v22 = vmul.f32 %v1781_v15, %v1781_v15  ;;  %1753 = vst.msk [vmem:[%s2814_s8 + $0xc0] sm:$0xff] %vm999_vm9, %v1721_v35  ;;  %v1722_v25 = vadd.f32 %v1690_v23, %v1637_v17  ;;  %v1784_v29 = vld [vmem:[%s2814_s8 + $0xb8] sm:$0xff]  ;;  %v1836_v39 = vsel %vm999_vm9, %v1783_v19, 0.0 }
 0x213   : > { %1756 = vst.msk [vmem:[%s2814_s8 + $0xd8] sm:$0xff] %vm999_vm9, %v1724_v16  ;;  %v1833_v26 = vadd.f32 %v1832_v21, %v1831_v20  ;;  %v1934_v27 = vadd.f32 %v1933_v24, %v1932_v18  ;;  %v1782_v30 = vld [vmem:[%s2814_s8 + $0xa8] sm:$0xff]  ;;  %v1887_v40 = vmul.f32 %v1784_v29, %v1784_v29  ;;  %v1939_v52 = vsel %vm999_vm9, %v1886_v31, 0.0 }
 0x214   : > { %v1935_v28 = vsel %vm999_vm9, %v1884_v22, 0.0  ;;  %v1834_v32 = vsel %vm999_vm9, %v1782_v30, 0.0  ;;  %v1885_v33 = vmul.f32 %v1782_v30, %v1782_v30  ;;  %1754 = vst.msk [vmem:[%s2814_s8 + $0xc8] sm:$0xff] %vm999_vm9, %v1722_v25  ;;  %v1838_v53 = vsel %vm999_vm9, %v1784_v29, 0.0 }
 0x215   : > { %v1936_v34 = vadd.f32 %v1935_v28, %v1934_v27  ;;  %v1835_v36 = vadd.f32 %v1834_v32, %v1833_v26  ;;  %v1941_v0 = vsel %vm999_vm9, %v1887_v40, 0.0 }
 0x216   : > { %v2272_v37 = vpop.f32.mrb[44].mxu0  ;;  %v1937_v42 = vsel %vm999_vm9, %v1885_v33, 0.0 }
 0x217   : > { %v1727_v43 = vadd.f32 %v2272_v37, %v1695_v38  ;;  %v1650_v44 = vpop.f32.mrb[45].mxu0  ;;  %v1837_v46 = vadd.f32 %v1836_v39, %v1835_v36  ;;  %v1938_v47 = vadd.f32 %v1937_v42, %v1936_v34 }
 0x218   : > { %v1725_v48 = vadd.f32 %v1693_v45, %v1650_v44  ;;  %v2273_v49 = vpop.f32.mrb[46].mxu0  ;;  %v1787_v59 = vld [vmem:[%s2814_s8 + $0xd0] sm:$0xff] }
 0x219   : > { %v1785_v54 = vld [vmem:[%s2814_s8 + $0xc0] sm:$0xff]  ;;  %1759 = vst.msk [vmem:[%s2814_s8 + $0xf0] sm:$0xff] %vm999_vm9, %v1727_v43  ;;  %v1728_v55 = vadd.f32 %v2273_v49, %v1696_v50  ;;  %v1653_v57 = vpop.f32.mrb[47].mxu0  ;;  %v1940_v58 = vadd.f32 %v1939_v52, %v1938_v47  ;;  %v1839_v60 = vadd.f32 %v1838_v53, %v1837_v46  ;;  %v1890_v8 = vmul.f32 %v1787_v59, %v1787_v59 }
 0x21a   : > { %v1840_v61 = vsel %vm999_vm9, %v1785_v54, 0.0  ;;  %v1888_v62 = vmul.f32 %v1785_v54, %v1785_v54  ;;  %1757 = vst.msk [vmem:[%s2814_s8 + $0xe0] sm:$0xff] %vm999_vm9, %v1725_v48  ;;  %v1726_v1 = vadd.f32 %v1694_v63, %v1653_v57  ;;  %v1788_v5 = vld [vmem:[%s2814_s8 + $0xd8] sm:$0xff]  ;;  %v1844_v13 = vsel %vm999_vm9, %v1787_v59, 0.0 }
 0x21b   : > { %1760 = vst.msk [vmem:[%s2814_s8 + $0xf8] sm:$0xff] %vm999_vm9, %v1728_v55  ;;  %v1841_v2 = vadd.f32 %v1840_v61, %v1839_v60  ;;  %v1942_v3 = vadd.f32 %v1941_v0, %v1940_v58  ;;  %v1786_v7 = vld [vmem:[%s2814_s8 + $0xc8] sm:$0xff]  ;;  %v1891_v14 = vmul.f32 %v1788_v5, %v1788_v5  ;;  %v1947_v56 = vsel %vm999_vm9, %v1890_v8, 0.0 }
 0x21c   : > { %v1943_v4 = vsel %vm999_vm9, %v1888_v62, 0.0  ;;  %v1842_v6 = vsel %vm999_vm9, %v1786_v7, 0.0  ;;  %v1889_v10 = vmul.f32 %v1786_v7, %v1786_v7  ;;  %1758 = vst.msk [vmem:[%s2814_s8 + $0xe8] sm:$0xff] %vm999_vm9, %v1726_v1  ;;  %v1846_v9 = vsel %vm999_vm9, %v1788_v5, 0.0 }
 0x21d   : > { %v1944_v11 = vadd.f32 %v1943_v4, %v1942_v3  ;;  %v1843_v12 = vadd.f32 %v1842_v6, %v1841_v2  ;;  %v1949_v21 = vsel %vm999_vm9, %v1891_v14, 0.0 }
 0x21e   : > { %v1945_v35 = vsel %vm999_vm9, %v1889_v10, 0.0 }
 0x21f   : > { %v1845_v41 = vadd.f32 %v1844_v13, %v1843_v12  ;;  %v1946_v51 = vadd.f32 %v1945_v35, %v1944_v11 }
 0x220   : > { %v1791_v17 = vld [vmem:[%s2814_s8 + $0xf0] sm:$0xff] }
 0x221   : > { %v1789_v15 = vld [vmem:[%s2814_s8 + $0xe0] sm:$0xff]  ;;  %v1948_v16 = vadd.f32 %v1947_v56, %v1946_v51  ;;  %v1847_v18 = vadd.f32 %v1846_v9, %v1845_v41  ;;  %v1894_v27 = vmul.f32 %v1791_v17, %v1791_v17  ;;  %v1852_v32 = vsel %vm999_vm9, %v1791_v17, 0.0 }
 0x222   : > { %v1848_v19 = vsel %vm999_vm9, %v1789_v15, 0.0  ;;  %v1892_v20 = vmul.f32 %v1789_v15, %v1789_v15  ;;  %v1792_v25 = vld [vmem:[%s2814_s8 + $0xf8] sm:$0xff] }
 0x223   : > { %v1849_v22 = vadd.f32 %v1848_v19, %v1847_v18  ;;  %v1950_v23 = vadd.f32 %v1949_v21, %v1948_v16  ;;  %v1790_v26 = vld [vmem:[%s2814_s8 + $0xe8] sm:$0xff]  ;;  %v1895_v33 = vmul.f32 %v1792_v25, %v1792_v25  ;;  %v1955_v38 = vsel %vm999_vm9, %v1894_v27, 0.0 }
 0x224   : > { %v1951_v24 = vsel %vm999_vm9, %v1892_v20, 0.0  ;;  %v1850_v28 = vsel %vm999_vm9, %v1790_v26, 0.0  ;;  %v1893_v29 = vmul.f32 %v1790_v26, %v1790_v26  ;;  %v1854_v39 = vsel %vm999_vm9, %v1792_v25, 0.0 }
 0x225   : > { %v1952_v30 = vadd.f32 %v1951_v24, %v1950_v23  ;;  %v1851_v31 = vadd.f32 %v1850_v28, %v1849_v22  ;;  %v1957_v43 = vsel %vm999_vm9, %v1895_v33, 0.0 }
 0x226   : > { %v1953_v34 = vsel %vm999_vm9, %v1893_v29, 0.0 }
 0x227   : > { %v1853_v36 = vadd.f32 %v1852_v32, %v1851_v31  ;;  %v1954_v37 = vadd.f32 %v1953_v34, %v1952_v30 }
 0x229   : > { %v1855_v40 = vadd.f32 %v1854_v39, %v1853_v36  ;;  %v1956_v42 = vadd.f32 %v1955_v38, %v1954_v37 }
 0x22b   : > { %v1856_v44 = vrot.slane %v1855_v40, 4  ;;  %v1958_v45 = vadd.f32 %v1957_v43, %v1956_v42 }
 0x22d   : > { %v1857_v46 = vadd.f32 %v1856_v44, %v1855_v40  ;;  %v1959_v47 = vrot.slane %v1958_v45, 4 }
 0x22f   : > { %v1858_v48 = vrot.slane %v1857_v46, 2  ;;  %v1960_v49 = vadd.f32 %v1959_v47, %v1958_v45 }
 0x231   : > { %v1859_v50 = vadd.f32 %v1858_v48, %v1857_v46  ;;  %v1961_v52 = vrot.slane %v1960_v49, 2 }
 0x233   : > { %v1860_v53 = vrot.slane %v1859_v50, 1  ;;  %v1962_v54 = vadd.f32 %v1961_v52, %v1960_v49 }
 0x235   : > { %v1861_v55 = vadd.f32 %v1860_v53, %v1859_v50  ;;  %v1963_v57 = vrot.slane %v1962_v54, 1 }
 0x237   : > { %1863 = vst.msk [vmem:[%s235_s12] sm:$0x1] %vm1862_vm10, %v1861_v55  ;;  %v1964_v58 = vadd.f32 %v1963_v57, %v1962_v54 }
 0x239   : > { %1965 = vst.msk [vmem:[%s235_s12 + $0x1] sm:$0x1] %vm1862_vm10, %v1964_v58 }
 0x23a PF: > { %s16_s18 = sadd.s32 1, %s2300_s18  }
 0x23b   : > { %p13_p4 = scmp.ge.s32.totalorder %s16_s18, 4  }
 0x23d   :  { %15 = sbr.rel (!%p13_p4) target bundleno = 1 (0x1), region = 83 }

// kernel: double_conv_forward.4
= control target key start
LH: loop header
LB: loop body
LE: loop exit
PB: predicated region body
PF: predicated region fallthrough
CT: control target
= control target key end

     0   :  { %s2672_s18 = smov 0   ;;  %s3773_s0 = inlined_call_operand.vmem [shape: f32[2,16,16,8], index: 0, kind: input, shape index: {}]   ;;  %s3774_s1 = inlined_call_operand.vmem [shape: f32[1,8], index: 1, kind: input, shape index: {}]   ;;  %s3775_s2 = inlined_call_operand.vmem [shape: f32[1,8], index: 2, kind: input, shape index: {}]   ;;  %s3776_s3 = inlined_call_operand.vmem [shape: bf16[3,24,8], index: 3, kind: input, shape index: {}]   ;;  %s3777_s4 = inlined_call_operand.vmem [shape: f32[2,16,16,8], index: 4, kind: output, shape index: {0}]   ;;  %s3778_s5 = inlined_call_operand.vmem [shape: f32[2,2,8], index: 5, kind: output, shape index: {1}]  }
   0x1 LB: > { %s2367_s19 = sadd.s32 4294967295, %s2637_s18   ;;  %p2371_p0 = scmp.ge.s32.totalorder %s2637_s18, 1  ;;  %s2637_s18 = sphi %s2672_s18, %s16_s18  }
   0x2   : > { %p190_p1 = scmp.lt.s32.totalorder %s2637_s18, 3 }
   0x4   : > { %p191_p2 = pnand %p2371_p0, %p190_p1 }
   0x5   : > { %p222_p3 = scmp.lt.s32.totalorder (!%p191_p2), %s2367_s19, 1  ;;  %vm246_vm0 = vcmask (!%p191_p2), 57344   ;;  %v2685_v0 = vld [vmem:[%s3774_s1] ss:$0 sm:$0xff] (!%p191_p2)  ;;  %v2639_v1 = vmov (!%p191_p2), 0.0   ;;  %vm263_vm1 = vcmask (!%p191_p2), 188544  }
   0x6   : > { %194 = sbr.rel (%p191_p2) target bundleno = 576 (0x240), region = 36  ;;  %255 = vst.msk [vmem:[#allocation2 + $0x90] sm:$0x1] (!%p191_p2), %vm246_vm0, %v2639_v1  ;;  %247 = vst.msk [vmem:[#allocation2 + $0x10] sm:$0x1] (!%p191_p2), %vm246_vm0, %v2639_v1  ;;  %vm420_vm2 = vcmask (!%p191_p2), 64512  }
   0x7   : > { %248 = vst.msk [vmem:[#allocation2 + $0x20] sm:$0x1] (!%p191_p2), %vm246_vm0, %v2639_v1  ;;  %249 = vst.msk [vmem:[#allocation2 + $0x30] sm:$0x1] (!%p191_p2), %vm246_vm0, %v2639_v1  ;;  %v2755_v2 = vld [vmem:[%s3775_s2] ss:$0 sm:$0xff] (!%p191_p2) }
   0x8   : > { %250 = vst.msk [vmem:[#allocation2 + $0x40] sm:$0x1] (!%p191_p2), %vm246_vm0, %v2639_v1  ;;  %251 = vst.msk [vmem:[#allocation2 + $0x50] sm:$0x1] (!%p191_p2), %vm246_vm0, %v2639_v1  ;;  %s2640_s28 = smov (!%p191_p2), 8   ;;  %s2641_s29 = smov (!%p191_p2), 16  }
   0x9   : > { %252 = vst.msk [vmem:[#allocation2 + $0x60] sm:$0x1] (!%p191_p2), %vm246_vm0, %v2639_v1  ;;  %253 = vst.msk [vmem:[#allocation2 + $0x70] sm:$0x1] (!%p191_p2), %vm246_vm0, %v2639_v1  ;;  %vm239_vm3 = vcmask (!%p191_p2), 195584   ;;  %vm1141_vm4 = vcmask (!%p191_p2), 1043456  }
   0xa   : > { %254 = vst.msk [vmem:[#allocation2 + $0x80] sm:$0x1] (!%p191_p2), %vm246_vm0, %v2639_v1  ;;  %256 = vst.msk [vmem:[#allocation2 + $0xa0] sm:$0x1] (!%p191_p2), %vm246_vm0, %v2639_v1  ;;  %vm422_vm5 = vcmask (!%p191_p2), 63488   ;;  %vm710_vm6 = vcmask (!%p191_p2), 130112  }
   0xb   : > { %257 = vst.msk [vmem:[#allocation2 + $0xb0] sm:$0x1] (!%p191_p2), %vm246_vm0, %v2639_v1  ;;  %258 = vst.msk [vmem:[#allocation2 + $0xc0] sm:$0x1] (!%p191_p2), %vm246_vm0, %v2639_v1  ;;  %vm1001_vm7 = vcmask (!%p191_p2), 194688   ;;  %vm999_vm8 = vcmask (!%p191_p2), 195712  }
   0xc   : > { %259 = vst.msk [vmem:[#allocation2 + $0xd0] sm:$0x1] (!%p191_p2), %vm246_vm0, %v2639_v1  ;;  %260 = vst.msk [vmem:[#allocation2 + $0xe0] sm:$0x1] (!%p191_p2), %vm246_vm0, %v2639_v1 }
   0xd   : > { %s3780_s19 = smov (!%p222_p3, %s2367_s19), 1  ;;  %261 = vst.msk [vmem:[#allocation2 + $0xf0] sm:$0x1] %vm246_vm0, %v2639_v1  ;;  %262 = vst.msk [vmem:[#allocation2 + $0x100] sm:$0x1] %vm246_vm0, %v2639_v1 }
   0xe   : > { %272 = vst.msk [vmem:[#allocation2 + $0x9f] sm:$0x1] %vm263_vm1, %v2639_v1  ;;  %264 = vst.msk [vmem:[#allocation2 + $0x1f] sm:$0x1] %vm263_vm1, %v2639_v1  ;;  %s2441_s22 = sshll.u32 %s3780_s19, 8 }
   0xf   : > { %265 = vst.msk [vmem:[#allocation2 + $0x2f] sm:$0x1] %vm263_vm1, %v2639_v1  ;;  %266 = vst.msk [vmem:[#allocation2 + $0x3f] sm:$0x1] %vm263_vm1, %v2639_v1  ;;  %s2762_s27 = scalar_lea.vmem %s3773_s0, %s2441_s22  ;;  %s3410_s24 = scalar_lea.vmem %s3777_s4, %s2441_s22 }
  0x10   : > { %267 = vst.msk [vmem:[#allocation2 + $0x4f] sm:$0x1] %vm263_vm1, %v2639_v1  ;;  %268 = vst.msk [vmem:[#allocation2 + $0x5f] sm:$0x1] %vm263_vm1, %v2639_v1  ;;  %v470_v3 = vld [vmem:[%s2762_s27 + $0x80] sm:$0xff]  ;;  %v468_v4 = vld [vmem:[%s2762_s27 + $0x70] sm:$0xff] }
  0x11   : > { %269 = vst.msk [vmem:[#allocation2 + $0x6f] sm:$0x1] %vm263_vm1, %v2639_v1  ;;  %270 = vst.msk [vmem:[#allocation2 + $0x7f] sm:$0x1] %vm263_vm1, %v2639_v1  ;;  %v471_v5 = vld [vmem:[%s2762_s27 + $0x88] sm:$0xff]  ;;  %v502_v6 = vmul.f32 %v2685_v0, %v470_v3  ;;  %v500_v7 = vmul.f32 %v2685_v0, %v468_v4  ;;  %v469_v9 = vld [vmem:[%s2762_s27 + $0x78] sm:$0xff] }
  0x12   : > { %271 = vst.msk [vmem:[#allocation2 + $0x8f] sm:$0x1] %vm263_vm1, %v2639_v1  ;;  %273 = vst.msk [vmem:[#allocation2 + $0xaf] sm:$0x1] %vm263_vm1, %v2639_v1  ;;  %v503_v8 = vmul.f32 %v2685_v0, %v471_v5  ;;  %v758_v10 = vld [vmem:[%s2762_s27 + $0x79] sm:$0x7f]  ;;  %v501_v12 = vmul.f32 %v2685_v0, %v469_v9 }
  0x13   : > { %274 = vst.msk [vmem:[#allocation2 + $0xbf] sm:$0x1] %vm263_vm1, %v2639_v1  ;;  %275 = vst.msk [vmem:[#allocation2 + $0xcf] sm:$0x1] %vm263_vm1, %v2639_v1  ;;  %v757_v11 = vld [vmem:[%s2762_s27 + $0x71] sm:$0xff]  ;;  %v790_v13 = vmul.f32 %v2685_v0, %v758_v10  ;;  %v534_v15 = vadd.f32 %v2755_v2, %v502_v6  ;;  %v532_v16 = vadd.f32 %v2755_v2, %v500_v7  ;;  %v759_v20 = vld [vmem:[%s2762_s27 + $0x81] sm:$0xff] }
  0x14   : > { %276 = vst.msk [vmem:[#allocation2 + $0xdf] sm:$0x1] %vm263_vm1, %v2639_v1  ;;  %277 = vst.msk [vmem:[#allocation2 + $0xef] sm:$0x1] %vm263_vm1, %v2639_v1  ;;  %v789_v14 = vmul.f32 %v2685_v0, %v757_v11  ;;  %v535_v17 = vadd.f32 %v2755_v2, %v503_v8  ;;  %v760_v18 = vld [vmem:[%s2762_s27 + $0x89] sm:$0x7f]  ;;  %v533_v19 = vadd.f32 %v2755_v2, %v501_v12 }
  0x15   : > { %278 = vst.msk [vmem:[#allocation2 + $0xff] sm:$0x1] %vm263_vm1, %v2639_v1  ;;  %279 = vst.msk [vmem:[#allocation2 + $0x10f] sm:$0x1] %vm263_vm1, %v2639_v1  ;;  %v472_v21 = vld [vmem:[%s2762_s27 + $0x90] sm:$0xff]  ;;  %v566_v22 = vmax.f32 %v534_v15, 0.0  ;;  %v822_v25 = vadd.f32 %v2755_v2, %v790_v13  ;;  %v792_v27 = vmul.f32 %v2685_v0, %v760_v18  ;;  %v791_v30 = vmul.f32 %v2685_v0, %v759_v20 }
  0x16   : > { %v564_v23 = vmax.f32 %v532_v16, 0.0  ;;  %v474_v24 = vld [vmem:[%s2762_s27 + $0xa0] sm:$0xff]  ;;  %v821_v26 = vadd.f32 %v2755_v2, %v789_v14  ;;  %v567_v28 = vmax.f32 %v535_v17, 0.0  ;;  %v565_v29 = vmax.f32 %v533_v19, 0.0  ;;  %v473_v32 = vld [vmem:[%s2762_s27 + $0x98] sm:$0xff]  ;;  %v476_v43 = vld [vmem:[%s2762_s27 + $0xb0] sm:$0xff] }
  0x17   : > { %646 = vrot.lane.b32.xlu1 %v566_v22, %s2640_s28  ;;  %v504_v31 = vmul.f32 %v2685_v0, %v472_v21  ;;  %438 = vst.msk [vmem:[#allocation2 + $0x91] sm:$0xff] %vm420_vm2, %v566_v22  ;;  %v506_v33 = vmul.f32 %v2685_v0, %v474_v24  ;;  %v854_v35 = vmax.f32 %v822_v25, 0.0  ;;  %v824_v36 = vadd.f32 %v2755_v2, %v792_v27  ;;  %v454_v38 = vld [vmem:[%s2762_s27] sm:$0xff]  ;;  %v475_v44 = vld [vmem:[%s2762_s27 + $0xa8] sm:$0xff]  ;;  %v762_v53 = vld [vmem:[%s2762_s27 + $0x99] sm:$0x7f] }
  0x18   : > { %642 = vrot.lane.b32.xlu0 %v564_v23, %s2640_s28  ;;  %436 = vst.msk [vmem:[#allocation2 + $0x81] sm:$0xff] %vm420_vm2, %v564_v23  ;;  %v853_v39 = vmax.f32 %v821_v26, 0.0  ;;  %v823_v40 = vadd.f32 %v2755_v2, %v791_v30  ;;  %v505_v41 = vmul.f32 %v2685_v0, %v473_v32  ;;  %v486_v46 = vmul.f32 %v2685_v0, %v454_v38  ;;  %v478_v49 = vld [vmem:[%s2762_s27 + $0xc0] sm:$0xff]  ;;  %v761_v54 = vld [vmem:[%s2762_s27 + $0x91] sm:$0xff]  ;;  %v764_v4 = vld [vmem:[%s2762_s27 + $0xa9] sm:$0x7f] }
  0x19   : > { %v536_v34 = vadd.f32 %v2755_v2, %v504_v31  ;;  %v2798_v37 = vadd.f32 %v2755_v2, %v506_v33  ;;  %v856_v47 = vmax.f32 %v824_v36, 0.0  ;;  %v508_v48 = vmul.f32 %v2685_v0, %v476_v43  ;;  %v456_v59 = vld [vmem:[%s2762_s27 + $0x10] sm:$0xff]  ;;  %v763_v5 = vld [vmem:[%s2762_s27 + $0xa1] sm:$0xff]  ;;  %240 = vst.msk [vmem:[#allocation2] sm:$0xff] %vm239_vm3, %v2639_v1  ;;  %241 = vst.msk [vmem:[#allocation2 + $0x8] sm:$0xff] %vm239_vm3, %v2639_v1  ;;  %s2376_s22 = sshll.u32 %s3780_s19, 1 }
  0x1a   : > { %v855_v50 = vmax.f32 %v823_v40, 0.0  ;;  %v537_v51 = vadd.f32 %v2755_v2, %v505_v41  ;;  %v507_v52 = vmul.f32 %v2685_v0, %v475_v44  ;;  %v2822_v55 = vadd.f32 %v2755_v2, %v486_v46  ;;  %v458_v8 = vld [vmem:[%s2762_s27 + $0x20] sm:$0xff]  ;;  %243 = vst.msk [vmem:[#allocation2 + $0x110] sm:$0xff] %vm239_vm3, %v2639_v1  ;;  %244 = vst.msk [vmem:[#allocation2 + $0x118] sm:$0xff] %vm239_vm3, %v2639_v1  ;;  %v455_v17 = vld [vmem:[%s2762_s27 + $0x8] sm:$0xff] }
  0x1b   : > { %648 = vrot.lane.b32.xlu1 %v567_v28, %s2640_s28  ;;  %v568_v42 = vmax.f32 %v536_v34, 0.0  ;;  %v570_v45 = vmax.f32 %v2798_v37, 0.0  ;;  %v2825_v56 = vadd.f32 %v2755_v2, %v508_v48  ;;  %v510_v58 = vmul.f32 %v2685_v0, %v478_v49  ;;  %v2624_v16 = vld [vmem:[%s3776_s3] sm:$0xff]   ;;  %v480_v19 = vld [vmem:[%s2762_s27 + $0xd0] sm:$0xff]  ;;  %v2880_v20 = vld [vmem:[%s3776_s3 + $0x8] ss:$0 sps:$4 sm:$0xff]  }
  0x1c   : > { %644 = vrot.lane.b32.xlu0 %v565_v29, %s2640_s28  ;;  %v550_v57 = vmax.f32 %v2822_v55, 0.0  ;;  %v794_v60 = vmul.f32 %v2685_v0, %v762_v53  ;;  %v793_v61 = vmul.f32 %v2685_v0, %v761_v54  ;;  %v569_v63 = vmax.f32 %v537_v51, 0.0  ;;  %2605 = vmatprep.subr.bf16.mxu1 %v2624_v16  ;;  %v482_v25 = vld [vmem:[%s2762_s27 + $0xe0] sm:$0xff]  ;;  %v744_v28 = vld [vmem:[%s2762_s27 + $0x9] sm:$0x7f]  ;;  %v460_v34 = vld [vmem:[%s2762_s27 + $0x30] sm:$0xff] }
  0x1d   : > { %440 = vst.msk [vmem:[#allocation2 + $0xa1] sm:$0xff] %vm420_vm2, %v568_v42  ;;  %442 = vst.msk [vmem:[#allocation2 + $0xb1] sm:$0xff] %vm420_vm2, %v570_v45  ;;  %v572_v62 = vmax.f32 %v2825_v56, 0.0  ;;  %v539_v3 = vadd.f32 %v2755_v2, %v507_v52  ;;  %v2839_v6 = vadd.f32 %v2755_v2, %v510_v58  ;;  %v488_v7 = vmul.f32 %v2685_v0, %v456_v59  ;;  %v743_v31 = vld [vmem:[%s2762_s27 + $0x1] sm:$0xff]  ;;  %v477_v40 = vld [vmem:[%s2762_s27 + $0xb8] sm:$0xff] }
  0x1e   : > { %421 = vst.msk [vmem:[#allocation2 + $0x11] sm:$0xff] %vm420_vm2, %v550_v57  ;;  %v826_v10 = vadd.f32 %v2755_v2, %v794_v60  ;;  %v796_v11 = vmul.f32 %v2685_v0, %v764_v4  ;;  %v795_v12 = vmul.f32 %v2685_v0, %v763_v5  ;;  %v825_v14 = vadd.f32 %v2755_v2, %v793_v61  ;;  %v462_v44 = vld [vmem:[%s2762_s27 + $0x40] sm:$0xff]  ;;  %v479_v51 = vld [vmem:[%s2762_s27 + $0xc8] sm:$0xff]  ;;  %v464_v54 = vld [vmem:[%s2762_s27 + $0x50] sm:$0xff] }
  0x1f   : > { %933 = vrot.lane.b32.xlu1 %v854_v35, %s2641_s29  ;;  %444 = vst.msk [vmem:[#allocation2 + $0xc1] sm:$0xff] %vm420_vm2, %v572_v62  ;;  %v574_v9 = vmax.f32 %v2839_v6, 0.0  ;;  %v2862_v13 = vadd.f32 %v2755_v2, %v488_v7  ;;  %v571_v1 = vmax.f32 %v539_v3, 0.0  ;;  %v490_v15 = vmul.f32 %v2685_v0, %v458_v8  ;;  %2497 = vmatprep.subr.bf16.mxu0 %v2624_v16  ;;  %v466_v61 = vld [vmem:[%s2762_s27 + $0x60] sm:$0xff]  ;;  %v766_v7 = vld [vmem:[%s2762_s27 + $0xb9] sm:$0x7f] }
  0x20   : > { %931 = vrot.lane.b32.xlu0 %v853_v39, %s2641_s29  ;;  %v858_v22 = vmax.f32 %v826_v10, 0.0  ;;  %v828_v23 = vadd.f32 %v2755_v2, %v796_v11  ;;  %v827_v24 = vadd.f32 %v2755_v2, %v795_v12  ;;  %2607 = vmatpush3.bf16.msra.mxu1 %v2624_v16  ;;  %v857_v26 = vmax.f32 %v825_v14, 0.0  ;;  %v765_v8 = vld [vmem:[%s2762_s27 + $0xb1] sm:$0xff]  ;;  %v297_v12 = vld [vmem:[%s2762_s27 + $0x88] sm:$0x7f] }
  0x21   : > { %446 = vst.msk [vmem:[#allocation2 + $0xd1] sm:$0xff] %vm420_vm2, %v574_v9  ;;  %v552_v18 = vmax.f32 %v2862_v13, 0.0  ;;  %v2883_v21 = vadd.f32 %v2755_v2, %v490_v15  ;;  %2498 = vmatpush3.bf16.msra.mxu0 %v2624_v16  ;;  %v487_v27 = vmul.f32 %v2685_v0, %v455_v17  ;;  %v512_v30 = vmul.f32 %v2685_v0, %v480_v19  ;;  %v457_v16 = vld [vmem:[%s2762_s27 + $0x18] sm:$0xff]  ;;  %v1034_v6 = vld [vmem:[#allocation2 + $0x8] sm:$0xff] }
  0x22   : > { %2610 = vmatprep.subr.msk.bf16.mxu1 %vm1141_vm4, %v2880_v20  ;;  %v514_v33 = vmul.f32 %v2685_v0, %v482_v25  ;;  %2609 = vmatprep.subr.msk.bf16.mxu0 %vm1141_vm4, %v2880_v20  ;;  %v860_v35 = vmax.f32 %v828_v23, 0.0  ;;  %v859_v36 = vmax.f32 %v827_v24, 0.0  ;;  %v776_v37 = vmul.f32 %v2685_v0, %v744_v28  ;;  %v768_v24 = vld [vmem:[%s2762_s27 + $0xc9] sm:$0x7f] }
  0x23   : > { %937 = vrot.lane.b32.xlu1 %v856_v47, %s2641_s29  ;;  %424 = vst.msk [vmem:[#allocation2 + $0x21] sm:$0xff] %vm420_vm2, %v552_v18  ;;  %v554_v29 = vmax.f32 %v2883_v21, 0.0  ;;  %v2903_v32 = vadd.f32 %v2755_v2, %v512_v30  ;;  %v519_v38 = vadd.f32 %v2755_v2, %v487_v27  ;;  %v775_v39 = vmul.f32 %v2685_v0, %v743_v31 }
  0x24   : > { %935 = vrot.lane.b32.xlu0 %v855_v50, %s2641_s29  ;;  %v492_v43 = vmul.f32 %v2685_v0, %v460_v34  ;;  %v509_v46 = vmul.f32 %v2685_v0, %v477_v40  ;;  %v808_v49 = vadd.f32 %v2755_v2, %v776_v37  ;;  %v494_v52 = vmul.f32 %v2685_v0, %v462_v44  ;;  %v281_v34 = vld [vmem:[%s2762_s27 + $0x8] sm:$0x7f]  ;;  %v484_v40 = vld [vmem:[%s2762_s27 + $0xf0] sm:$0xff] }
  0x25   : > { %426 = vst.msk [vmem:[#allocation2 + $0x31] sm:$0xff] %vm420_vm2, %v554_v29  ;;  %v576_v41 = vmax.f32 %v2903_v32, 0.0  ;;  %v551_v48 = vmax.f32 %v519_v38, 0.0  ;;  %v807_v50 = vadd.f32 %v2755_v2, %v775_v39  ;;  %v511_v60 = vmul.f32 %v2685_v0, %v479_v51  ;;  %v767_v37 = vld [vmem:[%s2762_s27 + $0xc1] sm:$0xff] }
  0x26   : > { %v2930_v47 = vadd.f32 %v2755_v2, %v492_v43  ;;  %v2944_v58 = vadd.f32 %v2755_v2, %v494_v52  ;;  %v541_v59 = vadd.f32 %v2755_v2, %v509_v46  ;;  %v496_v5 = vmul.f32 %v2685_v0, %v464_v54  ;;  %v305_v54 = vld [vmem:[%s2762_s27 + $0xc8] sm:$0x7f] }
  0x27   : > { %652 = vrot.lane.b32.xlu1 %v569_v63, %s2640_s28  ;;  %448 = vst.msk [vmem:[#allocation2 + $0xe1] sm:$0xff] %vm420_vm2, %v576_v41  ;;  %v840_v63 = vmax.f32 %v808_v49, 0.0  ;;  %v839_v3 = vmax.f32 %v807_v50, 0.0  ;;  %v498_v11 = vmul.f32 %v2685_v0, %v466_v61  ;;  %v798_v14 = vmul.f32 %v2685_v0, %v766_v7  ;;  %v459_v61 = vld [vmem:[%s2762_s27 + $0x28] sm:$0xff] }
  0x28   : > { %650 = vrot.lane.b32.xlu0 %v568_v42, %s2640_s28  ;;  %v2920_v42 = vadd.f32 %v2755_v2, %v514_v33  ;;  %v556_v53 = vmax.f32 %v2930_v47, 0.0  ;;  %v558_v4 = vmax.f32 %v2944_v58, 0.0  ;;  %v2961_v10 = vadd.f32 %v2755_v2, %v496_v5  ;;  %v301_v33 = vld [vmem:[%s2762_s27 + $0xa8] sm:$0x7f]  ;;  %v3155_v47 = vld [vmem:[%s3776_s3 + $0x18] sm:$0xff]  }
  0x29   : > { %v573_v55 = vmax.f32 %v541_v59, 0.0  ;;  %v797_v15 = vmul.f32 %v2685_v0, %v765_v8  ;;  %v2977_v19 = vadd.f32 %v2755_v2, %v498_v11  ;;  %v335_v23 = vmul.f32 %v2685_v0, %v297_v12  ;;  %v1033_v8 = vld [vmem:[#allocation2] sm:$0xff] }
  0x2a   : > { %428 = vst.msk [vmem:[#allocation2 + $0x41] sm:$0xff] %vm420_vm2, %v556_v53  ;;  %430 = vst.msk [vmem:[#allocation2 + $0x51] sm:$0xff] %vm420_vm2, %v558_v4  ;;  %v560_v17 = vmax.f32 %v2961_v10, 0.0  ;;  %v489_v28 = vmul.f32 %v2685_v0, %v457_v16  ;;  %v1143_v39 = vsel %vm1141_vm4, %v2880_v20, 0  ;;  %v339_v46 = vmul.f32 %v2685_v0, %v301_v33  ;;  %v303_v20 = vld [vmem:[%s2762_s27 + $0xb8] sm:$0x7f] }
  0x2b   : > { %656 = vrot.lane.b32.xlu1 %v571_v1, %s2640_s28  ;;  %v295_v1 = vld [vmem:[%s2762_s27 + $0x78] sm:$0x7f]  ;;  %v562_v25 = vmax.f32 %v2977_v19, 0.0  ;;  %v373_v30 = vadd.f32 %v2755_v2, %v335_v23  ;;  %2608 = vmatpush3.bf16.msra.mxu1 %v1143_v39  ;;  %v799_v50 = vmul.f32 %v2685_v0, %v767_v37  ;;  %v516_v52 = vmul.f32 %v2685_v0, %v484_v40 }
  0x2c   : > { %654 = vrot.lane.b32.xlu0 %v570_v45, %s2640_s28  ;;  %v578_v45 = vmax.f32 %v2920_v42, 0.0  ;;  %432 = vst.msk [vmem:[#allocation2 + $0x61] sm:$0xff] %vm420_vm2, %v560_v17  ;;  %2500 = vmatpush3.bf16.msra.mxu0 %v1143_v39  ;;  %v521_v49 = vadd.f32 %v2755_v2, %v489_v28  ;;  %v341_v7 = vmul.f32 %v2685_v0, %v303_v20  ;;  %v746_v28 = vld [vmem:[%s2762_s27 + $0x19] sm:$0x7f] }
  0x2d   : > { %434 = vst.msk [vmem:[#allocation2 + $0x71] sm:$0xff] %vm420_vm2, %v562_v25  ;;  %v405_v43 = vmax.f32 %v373_v30, 0.0  ;;  %v3026_v5 = vadd.f32 %v2755_v2, %v516_v52  ;;  %v745_v30 = vld [vmem:[%s2762_s27 + $0x11] sm:$0xff]  ;;  %2569 = vmatprep.subr.bf16.mxu0 %v3155_v47 }
  0x2e   : > { %450 = vst.msk [vmem:[#allocation2 + $0xf1] sm:$0xff] %vm420_vm2, %v578_v45  ;;  %v553_v23 = vmax.f32 %v521_v49, 0.0  ;;  %v307_v40 = vld [vmem:[%s2762_s27 + $0xd8] sm:$0x7f] }
  0x2f   : > { %941 = vrot.lane.b32.xlu1 %v858_v22, %s2641_s29  ;;  %v299_v22 = vld [vmem:[%s2762_s27 + $0x98] sm:$0x7f]  ;;  %439 = vst.msk [vmem:[#allocation2 + $0x99] sm:$0x7f] %vm422_vm5, %v405_v43  ;;  %v580_v16 = vmax.f32 %v3026_v5, 0.0  ;;  %v778_v43 = vmul.f32 %v2685_v0, %v746_v28 }
  0x30   : > { %939 = vrot.lane.b32.xlu0 %v857_v26, %s2641_s29  ;;  %v333_v26 = vmul.f32 %v2685_v0, %v295_v1  ;;  %v337_v31 = vmul.f32 %v2685_v0, %v299_v22  ;;  %v285_v1 = vld [vmem:[%s2762_s27 + $0x28] sm:$0x7f]  ;;  %v379_v22 = vadd.f32 %v2755_v2, %v341_v7 }
  0x31   : > { %v323_v33 = vmul.f32 %v2685_v0, %v285_v1  ;;  %452 = vst.msk [vmem:[#allocation2 + $0x101] sm:$0xff] %vm420_vm2, %v580_v16  ;;  %v810_v52 = vadd.f32 %v2755_v2, %v778_v43 }
  0x32   : > { %v371_v38 = vadd.f32 %v2755_v2, %v333_v26  ;;  %v375_v56 = vadd.f32 %v2755_v2, %v337_v31  ;;  %v1065_v26 = vpack.c.bf16 %v1034_v6, %v1033_v8  ;;  %v411_v31 = vmax.f32 %v379_v22, 0.0  ;;  %v769_v22 = vld [vmem:[%s2762_s27 + $0xd1] sm:$0xff] }
  0x33   : > { %945 = vrot.lane.b32.xlu1 %v860_v35, %s2641_s29  ;;  %v830_v35 = vadd.f32 %v2755_v2, %v798_v14  ;;  %v831_v14 = vadd.f32 %v2755_v2, %v799_v50  ;;  %v361_v39 = vadd.f32 %v2755_v2, %v323_v33  ;;  %v842_v8 = vmax.f32 %v810_v52, 0.0 }
  0x34   : > { %943 = vrot.lane.b32.xlu0 %v859_v36, %s2641_s29  ;;  %v829_v36 = vadd.f32 %v2755_v2, %v797_v15  ;;  %v403_v44 = vmax.f32 %v371_v38, 0.0  ;;  %v407_v51 = vmax.f32 %v375_v56, 0.0  ;;  %v491_v15 = vmul.f32 %v2685_v0, %v459_v61  ;;  %2501 = vmatprep.mubr.msk.bf16.mxu0 %vm239_vm3, %v1065_v26  ;;  %445 = vst.msk [vmem:[#allocation2 + $0xc9] sm:$0x7f] %vm422_vm5, %v411_v31 }
  0x35   : > { %v862_v59 = vmax.f32 %v830_v35, 0.0  ;;  %v863_v37 = vmax.f32 %v831_v14, 0.0  ;;  %v777_v56 = vmul.f32 %v2685_v0, %v745_v30  ;;  %v393_v20 = vmax.f32 %v361_v39, 0.0  ;;  %v461_v30 = vld [vmem:[%s2762_s27 + $0x38] sm:$0xff]  ;;  %v771_v39 = vld [vmem:[%s2762_s27 + $0xe1] sm:$0xff] }
  0x36   : > { %437 = vst.msk [vmem:[#allocation2 + $0x89] sm:$0x7f] %vm422_vm5, %v403_v44  ;;  %441 = vst.msk [vmem:[#allocation2 + $0xa9] sm:$0x7f] %vm422_vm5, %v407_v51  ;;  %v523_v38 = vadd.f32 %v2755_v2, %v491_v15  ;;  %v747_v44 = vld [vmem:[%s2762_s27 + $0x21] sm:$0xff]  ;;  %v801_v28 = vmul.f32 %v2685_v0, %v769_v22  ;;  %v493_v33 = vmul.f32 %v2685_v0, %v461_v30 }
  0x37   : > { %616 = vrot.lane.b32.xlu1 %v551_v48, %s2640_s28  ;;  %v319_v48 = vmul.f32 %v2685_v0, %v281_v34  ;;  %v779_v50 = vmul.f32 %v2685_v0, %v747_v44  ;;  %427 = vst.msk [vmem:[#allocation2 + $0x39] sm:$0x7f] %vm422_vm5, %v393_v20  ;;  %v309_v51 = vld [vmem:[%s2762_s27 + $0xe8] sm:$0x7f]  ;;  %v770_v15 = vld [vmem:[%s2762_s27 + $0xd9] sm:$0x7f] }
  0x38   : > { %614 = vrot.lane.b32.xlu0 %v550_v57, %s2640_s28  ;;  %v543_v57 = vadd.f32 %v2755_v2, %v511_v60  ;;  %v861_v60 = vmax.f32 %v829_v36, 0.0  ;;  %v555_v13 = vmax.f32 %v523_v38, 0.0  ;;  %v347_v61 = vmul.f32 %v2685_v0, %v309_v51  ;;  %v772_v38 = vld [vmem:[%s2762_s27 + $0xe9] sm:$0x7f] }
  0x39   : > { %v525_v44 = vadd.f32 %v2755_v2, %v493_v33  ;;  %v3127_v20 = vld [vmem:[%s3776_s3 + $0xc] sm:$0xff]  }
  0x3a   : > { %v575_v27 = vmax.f32 %v543_v57, 0.0  ;;  %v343_v57 = vmul.f32 %v2685_v0, %v305_v54  ;;  %v809_v54 = vadd.f32 %v2755_v2, %v777_v56  ;;  %v804_v56 = vmul.f32 %v2685_v0, %v772_v38  ;;  %2533 = vmatprep.subr.bf16.mxu1 %v3127_v20  ;;  %v753_v33 = vld [vmem:[%s2762_s27 + $0x51] sm:$0xff]  ;;  %v756_v38 = vld [vmem:[%s2762_s27 + $0x69] sm:$0x7f] }
  0x3b   : > { %905 = vrot.lane.b32.xlu1 %v840_v63, %s2641_s29  ;;  %v377_v63 = vadd.f32 %v2755_v2, %v339_v46 }
  0x3c   : > { %903 = vrot.lane.b32.xlu0 %v839_v3, %s2641_s29  ;;  %v357_v3 = vadd.f32 %v2755_v2, %v319_v48  ;;  %v345_v48 = vmul.f32 %v2685_v0, %v307_v40  ;;  %v841_v6 = vmax.f32 %v809_v54, 0.0  ;;  %v291_v54 = vld [vmem:[%s2762_s27 + $0x58] sm:$0x7f] }
  0x3d   : > { %v409_v12 = vmax.f32 %v377_v63, 0.0  ;;  %v385_v63 = vadd.f32 %v2755_v2, %v347_v61 }
  0x3e   : > { %v383_v49 = vadd.f32 %v2755_v2, %v345_v48 }
  0x3f   : > { %660 = vrot.lane.b32.xlu1 %v573_v55, %s2640_s28  ;;  %v389_v55 = vmax.f32 %v357_v3, 0.0  ;;  %443 = vst.msk [vmem:[#allocation2 + $0xb9] sm:$0x7f] %vm422_vm5, %v409_v12  ;;  %v483_v12 = vld [vmem:[%s2762_s27 + $0xe8] sm:$0xff] }
  0x40   : > { %658 = vrot.lane.b32.xlu0 %v572_v62, %s2640_s28  ;;  %v800_v62 = vmul.f32 %v2685_v0, %v768_v24  ;;  %v381_v24 = vadd.f32 %v2755_v2, %v343_v57  ;;  %v287_v57 = vld [vmem:[%s2762_s27 + $0x38] sm:$0x7f] }
  0x41   : > { %423 = vst.msk [vmem:[#allocation2 + $0x19] sm:$0x7f] %vm422_vm5, %v389_v55  ;;  %v325_v14 = vmul.f32 %v2685_v0, %v287_v57  ;;  %v465_v57 = vld [vmem:[%s2762_s27 + $0x58] sm:$0xff] }
  0x42   : > { %v832_v11 = vadd.f32 %v2755_v2, %v800_v62  ;;  %v413_v34 = vmax.f32 %v381_v24, 0.0  ;;  %v748_v62 = vld [vmem:[%s2762_s27 + $0x29] sm:$0x7f] }
  0x43   : > { %664 = vrot.lane.b32.xlu1 %v575_v27, %s2640_s28 }
  0x44   : > { %662 = vrot.lane.b32.xlu0 %v574_v9, %s2640_s28  ;;  %v283_v9 = vld [vmem:[%s2762_s27 + $0x18] sm:$0x7f]  ;;  %v864_v36 = vmax.f32 %v832_v11, 0.0  ;;  %447 = vst.msk [vmem:[#allocation2 + $0xd9] sm:$0x7f] %vm422_vm5, %v413_v34  ;;  %v417_v11 = vmax.f32 %v385_v63, 0.0 }
  0x45   : > { %v321_v27 = vmul.f32 %v2685_v0, %v283_v9  ;;  %v811_v9 = vadd.f32 %v2755_v2, %v779_v50  ;;  %v289_v34 = vld [vmem:[%s2762_s27 + $0x48] sm:$0x7f]  ;;  %v749_v50 = vld [vmem:[%s2762_s27 + $0x31] sm:$0xff] }
  0x46   : > { %451 = vst.msk [vmem:[#allocation2 + $0xf9] sm:$0x7f] %vm422_vm5, %v417_v11  ;;  %v327_v40 = vmul.f32 %v2685_v0, %v289_v34  ;;  %v781_v61 = vmul.f32 %v2685_v0, %v749_v50  ;;  %v752_v63 = vld [vmem:[%s2762_s27 + $0x49] sm:$0x7f] }
  0x47   : > { %949 = vrot.lane.b32.xlu1 %v862_v59, %s2641_s29  ;;  %v359_v35 = vadd.f32 %v2755_v2, %v321_v27  ;;  %v481_v59 = vld [vmem:[%s2762_s27 + $0xd8] sm:$0xff]  ;;  %v843_v1 = vmax.f32 %v811_v9, 0.0  ;;  %v802_v27 = vmul.f32 %v2685_v0, %v770_v15  ;;  %v784_v9 = vmul.f32 %v2685_v0, %v752_v63 }
  0x48   : > { %947 = vrot.lane.b32.xlu0 %v861_v60, %s2641_s29  ;;  %v415_v60 = vmax.f32 %v383_v49, 0.0  ;;  %v513_v7 = vmul.f32 %v2685_v0, %v481_v59  ;;  %v365_v43 = vadd.f32 %v2755_v2, %v327_v40  ;;  %v836_v49 = vadd.f32 %v2755_v2, %v804_v56 }
  0x49   : > { %v391_v46 = vmax.f32 %v359_v35, 0.0  ;;  %v497_v15 = vmul.f32 %v2685_v0, %v465_v57  ;;  %v788_v40 = vmul.f32 %v2685_v0, %v756_v38 }
  0x4a   : > { %449 = vst.msk [vmem:[#allocation2 + $0xe9] sm:$0x7f] %vm422_vm5, %v415_v60  ;;  %v545_v55 = vadd.f32 %v2755_v2, %v513_v7  ;;  %v397_v48 = vmax.f32 %v365_v43, 0.0  ;;  %v868_v51 = vmax.f32 %v836_v49, 0.0  ;;  %v329_v7 = vmul.f32 %v2685_v0, %v291_v54  ;;  %v774_v49 = vld [vmem:[%s2762_s27 + $0xf9] sm:$0x7f] }
  0x4b   : > { %620 = vrot.lane.b32.xlu1 %v553_v23, %s2640_s28  ;;  %425 = vst.msk [vmem:[#allocation2 + $0x29] sm:$0x7f] %vm422_vm5, %v391_v46  ;;  %v363_v23 = vadd.f32 %v2755_v2, %v325_v14  ;;  %v463_v46 = vld [vmem:[%s2762_s27 + $0x48] sm:$0xff]  ;;  %v816_v14 = vadd.f32 %v2755_v2, %v784_v9  ;;  %v806_v19 = vmul.f32 %v2685_v0, %v774_v49 }
  0x4c   : > { %618 = vrot.lane.b32.xlu0 %v552_v18, %s2640_s28  ;;  %v780_v18 = vmul.f32 %v2685_v0, %v748_v62  ;;  %v577_v24 = vmax.f32 %v545_v55, 0.0  ;;  %v803_v62 = vmul.f32 %v2685_v0, %v771_v39  ;;  %431 = vst.msk [vmem:[#allocation2 + $0x59] sm:$0x7f] %vm422_vm5, %v397_v48  ;;  %v495_v42 = vmul.f32 %v2685_v0, %v463_v46  ;;  %v755_v39 = vld [vmem:[%s2762_s27 + $0x61] sm:$0xff] }
  0x4d   : > { %v395_v31 = vmax.f32 %v363_v23, 0.0  ;;  %v813_v55 = vadd.f32 %v2755_v2, %v781_v61  ;;  %v838_v54 = vadd.f32 %v2755_v2, %v806_v19 }
  0x4e   : > { %v812_v3 = vadd.f32 %v2755_v2, %v780_v18  ;;  %v750_v18 = vld [vmem:[%s2762_s27 + $0x39] sm:$0x7f]  ;;  %v527_v52 = vadd.f32 %v2755_v2, %v495_v42  ;;  %v773_v42 = vld [vmem:[%s2762_s27 + $0xf1] sm:$0xff] }
  0x4f   : > { %953 = vrot.lane.b32.xlu1 %v864_v36, %s2641_s29  ;;  %429 = vst.msk [vmem:[#allocation2 + $0x49] sm:$0x7f] %vm422_vm5, %v395_v31  ;;  %v834_v36 = vadd.f32 %v2755_v2, %v802_v27  ;;  %v782_v60 = vmul.f32 %v2685_v0, %v750_v18  ;;  %v845_v23 = vmax.f32 %v813_v55, 0.0  ;;  %v467_v27 = vld [vmem:[%s2762_s27 + $0x68] sm:$0xff]  ;;  %v529_v31 = vadd.f32 %v2755_v2, %v497_v15  ;;  %v2630_v55 = vld [vmem:[%s3774_s1] ss:$0 sm:$0xff] }
  0x50   : > { %951 = vrot.lane.b32.xlu0 %v863_v37, %s2641_s29  ;;  %v844_v21 = vmax.f32 %v812_v3, 0.0  ;;  %v833_v37 = vadd.f32 %v2755_v2, %v801_v28  ;;  %v751_v3 = vld [vmem:[%s2762_s27 + $0x41] sm:$0xff]  ;;  %v848_v28 = vmax.f32 %v816_v14, 0.0  ;;  %v499_v58 = vmul.f32 %v2685_v0, %v467_v27 }
  0x51   : > { %v866_v32 = vmax.f32 %v834_v36, 0.0  ;;  %v783_v11 = vmul.f32 %v2685_v0, %v751_v3  ;;  %v561_v34 = vmax.f32 %v529_v31, 0.0 }
  0x53   : > { %624 = vrot.lane.b32.xlu1 %v555_v13, %s2640_s28  ;;  %v835_v13 = vadd.f32 %v2755_v2, %v803_v62 }
  0x54   : > { %622 = vrot.lane.b32.xlu0 %v554_v29, %s2640_s28  ;;  %v515_v29 = vmul.f32 %v2685_v0, %v483_v12  ;;  %v814_v12 = vadd.f32 %v2755_v2, %v782_v60 }
  0x55   : > { %v867_v59 = vmax.f32 %v835_v13, 0.0 }
  0x56   : > { %v547_v26 = vadd.f32 %v2755_v2, %v515_v29  ;;  %v846_v22 = vmax.f32 %v814_v12, 0.0 }
  0x57   : > { %909 = vrot.lane.b32.xlu1 %v842_v8, %s2641_s29  ;;  %v367_v8 = vadd.f32 %v2755_v2, %v329_v7 }
  0x58   : > { %907 = vrot.lane.b32.xlu0 %v841_v6, %s2641_s29  ;;  %v579_v35 = vmax.f32 %v547_v26, 0.0  ;;  %v559_v6 = vmax.f32 %v527_v52, 0.0 }
  0x5b   : > { %913 = vrot.lane.b32.xlu1 %v844_v21, %s2641_s29  ;;  %v399_v21 = vmax.f32 %v367_v8, 0.0 }
  0x5c   : > { %911 = vrot.lane.b32.xlu0 %v843_v1, %s2641_s29 }
  0x5d   : > { %433 = vst.msk [vmem:[#allocation2 + $0x69] sm:$0x7f] %vm422_vm5, %v399_v21 }
  0x5f   : > { %668 = vrot.lane.b32.xlu1 %v577_v24, %s2640_s28  ;;  %v815_v24 = vadd.f32 %v2755_v2, %v783_v11 }
  0x60   : > { %666 = vrot.lane.b32.xlu0 %v576_v41, %s2640_s28  ;;  %v865_v41 = vmax.f32 %v833_v37, 0.0  ;;  %v785_v37 = vmul.f32 %v2685_v0, %v753_v33 }
  0x61   : > { %v847_v30 = vmax.f32 %v815_v24, 0.0 }
  0x62   : > { %v817_v62 = vadd.f32 %v2755_v2, %v785_v37 }
  0x63   : > { %672 = vrot.lane.b32.xlu1 %v579_v35, %s2640_s28  ;;  %v531_v35 = vadd.f32 %v2755_v2, %v499_v58 }
  0x64   : > { %670 = vrot.lane.b32.xlu0 %v578_v45, %s2640_s28  ;;  %v557_v45 = vmax.f32 %v525_v44, 0.0  ;;  %v820_v44 = vadd.f32 %v2755_v2, %v788_v40  ;;  %v849_v48 = vmax.f32 %v817_v62, 0.0 }
  0x65   : > { %v563_v43 = vmax.f32 %v531_v35, 0.0 }
  0x67   : > { %957 = vrot.lane.b32.xlu1 %v866_v32, %s2641_s29  ;;  %v787_v32 = vmul.f32 %v2685_v0, %v755_v39 }
  0x68   : > { %955 = vrot.lane.b32.xlu0 %v865_v41, %s2641_s29  ;;  %v485_v41 = vld [vmem:[%s2762_s27 + $0xf8] sm:$0xff] }
  0x69   : > { %v819_v10 = vadd.f32 %v2755_v2, %v787_v32 }
  0x6b   : > { %628 = vrot.lane.b32.xlu1 %v557_v45, %s2640_s28  ;;  %v852_v45 = vmax.f32 %v820_v44, 0.0  ;;  %v851_v13 = vmax.f32 %v819_v10, 0.0  ;;  %v2629_v44 = vld [vmem:[%s3776_s3 + $0x20] ss:$0 sps:$4 sm:$0xff]  }
  0x6c   : > { %626 = vrot.lane.b32.xlu0 %v556_v53, %s2640_s28  ;;  %v293_v53 = vld [vmem:[%s2762_s27 + $0x68] sm:$0x7f]  ;;  %v1818_v10 = vsel %vm1141_vm4, %v2629_v44, 0 }
  0x6d   : > { %v331_v1 = vmul.f32 %v2685_v0, %v293_v53  ;;  %v311_v53 = vld [vmem:[%s2762_s27 + $0xf8] sm:$0x7f] }
  0x6e   : > { %v349_v57 = vmul.f32 %v2630_v55, %v311_v53 }
  0x6f   : > { %961 = vrot.lane.b32.xlu1 %v868_v51, %s2641_s29  ;;  %v369_v29 = vadd.f32 %v2755_v2, %v331_v1 }
  0x70   : > { %959 = vrot.lane.b32.xlu0 %v867_v59, %s2641_s29  ;;  %v387_v21 = vadd.f32 %v2755_v2, %v349_v57 }
  0x71   : > { %v401_v26 = vmax.f32 %v369_v29, 0.0 }
  0x72   : > { %v419_v24 = vmax.f32 %v387_v21, 0.0 }
  0x73   : > { %632 = vrot.lane.b32.xlu1 %v559_v6, %s2640_s28  ;;  %435 = vst.msk [vmem:[#allocation2 + $0x79] sm:$0x7f] %vm422_vm5, %v401_v26 }
  0x74   : > { %630 = vrot.lane.b32.xlu0 %v558_v4, %s2640_s28  ;;  %v754_v4 = vld [vmem:[%s2762_s27 + $0x59] sm:$0x7f]  ;;  %453 = vst.msk [vmem:[#allocation2 + $0x109] sm:$0x7f] %vm422_vm5, %v419_v24  ;;  %s235_s27 = scalar_lea.vmem %s3778_s5, %s2376_s22 }
  0x75   : > { %v786_v36 = vmul.f32 %v2685_v0, %v754_v4 }
  0x77   : > { %917 = vrot.lane.b32.xlu1 %v846_v22, %s2641_s29  ;;  %v818_v56 = vadd.f32 %v2755_v2, %v786_v36 }
  0x78   : > { %915 = vrot.lane.b32.xlu0 %v845_v23, %s2641_s29  ;;  %v2628_v23 = vld [vmem:[%s3776_s3 + $0x14] ss:$0 sps:$4 sm:$0xff]  }
  0x79   : > { %v850_v46 = vmax.f32 %v818_v56, 0.0  ;;  %v1448_v27 = vsel %vm1141_vm4, %v2628_v23, 0 }
  0x7b   : > { %921 = vrot.lane.b32.xlu1 %v848_v28, %s2641_s29 }
  0x7c   : > { %919 = vrot.lane.b32.xlu0 %v847_v30, %s2641_s29 }
  0x7f   : > { %636 = vrot.lane.b32.xlu1 %v561_v34, %s2640_s28 }
  0x80   : > { %634 = vrot.lane.b32.xlu0 %v560_v17, %s2640_s28  ;;  %v517_v17 = vmul.f32 %v2685_v0, %v485_v41 }
  0x82   : > { %v549_v18 = vadd.f32 %v2755_v2, %v517_v17 }
  0x83   : > { %640 = vrot.lane.b32.xlu1 %v563_v43, %s2640_s28 }
  0x84   : > { %638 = vrot.lane.b32.xlu0 %v562_v25, %s2640_s28  ;;  %v805_v25 = vmul.f32 %v2685_v0, %v773_v42  ;;  %v581_v52 = vmax.f32 %v549_v18, 0.0  ;;  %v870_v0 = vmax.f32 %v838_v54, 0.0 }
  0x86   : > { %v837_v59 = vadd.f32 %v2755_v2, %v805_v25 }
  0x87   : > { %925 = vrot.lane.b32.xlu1 %v850_v46, %s2641_s29 }
  0x88   : > { %923 = vrot.lane.b32.xlu0 %v849_v48, %s2641_s29  ;;  %v869_v63 = vmax.f32 %v837_v59, 0.0 }
  0x89   : > { %v647_v50 = vpop.permute.xlu1 %646 }
  0x8a   : > { %v643_v51 = vpop.permute.xlu0 %642  ;;  %727 = vst.msk [vmem:[#allocation2 + $0x90] sm:$0xff] %vm710_vm6, %v647_v50 }
  0x8b   : > { %725 = vst.msk [vmem:[#allocation2 + $0x80] sm:$0xff] %vm710_vm6, %v643_v51  ;;  %929 = vrot.lane.b32.xlu1 %v852_v45, %s2641_s29 }
  0x8c   : > { %927 = vrot.lane.b32.xlu0 %v851_v13, %s2641_s29 }
  0x8d   : > { %v649_v60 = vpop.permute.xlu1 %648 }
  0x8e   : > { %v645_v61 = vpop.permute.xlu0 %644  ;;  %728 = vst.msk [vmem:[#allocation2 + $0x98] sm:$0xff] %vm710_vm6, %v649_v60 }
  0x8f   : > { %726 = vst.msk [vmem:[#allocation2 + $0x88] sm:$0xff] %vm710_vm6, %v645_v61  ;;  %676 = vrot.lane.b32.xlu1 %v581_v52, %s2640_s28 }
  0x90   : > { %674 = vrot.lane.b32.xlu0 %v580_v16, %s2640_s28 }
  0x91   : > { %v934_v3 = vpop.permute.xlu1 %933 }
  0x92   : > { %v932_v7 = vpop.permute.xlu0 %931  ;;  %1016 = vst.msk [vmem:[#allocation2 + $0x88] sm:$0x7f] %vm1001_vm7, %v934_v3 }
  0x93   : > { %1015 = vst.msk [vmem:[#allocation2 + $0x80] sm:$0xff] %vm999_vm8, %v932_v7  ;;  %965 = vrot.lane.b32.xlu1 %v870_v0, %s2641_s29 }
  0x94   : > { %963 = vrot.lane.b32.xlu0 %v869_v63, %s2641_s29 }
  0x95   : > { %v938_v8 = vpop.permute.xlu1 %937 }
  0x96   : > { %v936_v6 = vpop.permute.xlu0 %935  ;;  %1018 = vst.msk [vmem:[#allocation2 + $0x98] sm:$0x7f] %vm1001_vm7, %v938_v8 }
  0x97   : > { %1017 = vst.msk [vmem:[#allocation2 + $0x90] sm:$0xff] %vm999_vm8, %v936_v6 }
  0x99   : > { %v653_v5 = vpop.permute.xlu1 %652  ;;  %v1050_v11 = vld [vmem:[#allocation2 + $0x88] sm:$0xff] }
  0x9a   : > { %v651_v16 = vpop.permute.xlu0 %650  ;;  %v1049_v9 = vld [vmem:[#allocation2 + $0x80] sm:$0xff]  ;;  %730 = vst.msk [vmem:[#allocation2 + $0xa8] sm:$0xff] %vm710_vm6, %v653_v5 }
  0x9b   : > { %729 = vst.msk [vmem:[#allocation2 + $0xa0] sm:$0xff] %vm710_vm6, %v651_v16  ;;  %v3233_v12 = vpack.c.bf16 %v1050_v11, %v1049_v9 }
  0x9d   : > { %2517 = vmatprep.mubr.msk.bf16.mxu1 %vm239_vm3, %v3233_v12  ;;  %v657_v1 = vpop.permute.xlu1 %656  ;;  %v1052_v15 = vld [vmem:[#allocation2 + $0x98] sm:$0xff] }
  0x9e   : > { %v655_v29 = vpop.permute.xlu0 %654  ;;  %v1051_v14 = vld [vmem:[#allocation2 + $0x90] sm:$0xff]  ;;  %732 = vst.msk [vmem:[#allocation2 + $0xb8] sm:$0xff] %vm710_vm6, %v657_v1 }
  0x9f   : > { %731 = vst.msk [vmem:[#allocation2 + $0xb0] sm:$0xff] %vm710_vm6, %v655_v29  ;;  %v3243_v22 = vpack.c.bf16 %v1052_v15, %v1051_v14 }
  0xa1   : > { %2518 = vmatmul.mubr.msk.bf16.vlgmr.msra.gmra.mrb[0].mxu1 %vm239_vm3, %v3243_v22  ;;  %v942_v2 = vpop.permute.xlu1 %941 }
  0xa2   : > { %v940_v26 = vpop.permute.xlu0 %939  ;;  %2534 = vmatpush3.bf16.msra.mxu1 %v3127_v20  ;;  %1020 = vst.msk [vmem:[#allocation2 + $0xa8] sm:$0x7f] %vm1001_vm7, %v942_v2 }
  0xa3   : > { %1019 = vst.msk [vmem:[#allocation2 + $0xa0] sm:$0xff] %vm999_vm8, %v940_v26  ;;  %2611 = vmatprep.subr.msk.bf16.mxu1 %vm1141_vm4, %v2628_v23 }
  0xa5   : > { %v946_v28 = vpop.permute.xlu1 %945 }
  0xa6   : > { %v944_v30 = vpop.permute.xlu0 %943  ;;  %2536 = vmatpush3.bf16.msra.mxu1 %v1448_v27  ;;  %1022 = vst.msk [vmem:[#allocation2 + $0xb8] sm:$0x7f] %vm1001_vm7, %v946_v28 }
  0xa7   : > { %1021 = vst.msk [vmem:[#allocation2 + $0xb0] sm:$0xff] %vm999_vm8, %v944_v30 }
  0xa9   : > { %v617_v31 = vpop.permute.xlu1 %616  ;;  %v1054_v33 = vld [vmem:[#allocation2 + $0xa8] sm:$0xff] }
  0xaa   : > { %v615_v58 = vpop.permute.xlu0 %614  ;;  %v1053_v4 = vld [vmem:[#allocation2 + $0xa0] sm:$0xff]  ;;  %712 = vst.msk [vmem:[#allocation2 + $0x18] sm:$0xff] %vm710_vm6, %v617_v31 }
  0xab   : > { %711 = vst.msk [vmem:[#allocation2 + $0x10] sm:$0xff] %vm710_vm6, %v615_v58  ;;  %v3260_v20 = vpack.c.bf16 %v1054_v33, %v1053_v4 }
  0xad   : > { %2521 = vmatprep.mubr.msk.bf16.mxu1 %vm239_vm3, %v3260_v20  ;;  %v906_v34 = vpop.permute.xlu1 %905  ;;  %v1056_v37 = vld [vmem:[#allocation2 + $0xb8] sm:$0xff] }
  0xae   : > { %v904_v35 = vpop.permute.xlu0 %903  ;;  %v1055_v36 = vld [vmem:[#allocation2 + $0xb0] sm:$0xff]  ;;  %1002 = vst.msk [vmem:[#allocation2 + $0x18] sm:$0x7f] %vm1001_vm7, %v906_v34 }
  0xaf   : > { %1000 = vst.msk [vmem:[#allocation2 + $0x10] sm:$0xff] %vm999_vm8, %v904_v35  ;;  %v3266_v38 = vpack.c.bf16 %v1056_v37, %v1055_v36 }
  0xb1   : > { %2522 = vmatmul.mubr.msk.bf16.gmra.mrb[4].mxu1 %vm239_vm3, %v3266_v38  ;;  %v661_v39 = vpop.permute.xlu1 %660 }
  0xb2   : > { %v659_v40 = vpop.permute.xlu0 %658  ;;  %734 = vst.msk [vmem:[#allocation2 + $0xc8] sm:$0xff] %vm710_vm6, %v661_v39 }
  0xb3   : > { %733 = vst.msk [vmem:[#allocation2 + $0xc0] sm:$0xff] %vm710_vm6, %v659_v40 }
  0xb5   : > { %v665_v43 = vpop.permute.xlu1 %664  ;;  %v1036_v32 = vld [vmem:[#allocation2 + $0x18] sm:$0xff] }
  0xb6   : > { %v663_v56 = vpop.permute.xlu0 %662  ;;  %v1035_v62 = vld [vmem:[#allocation2 + $0x10] sm:$0xff]  ;;  %736 = vst.msk [vmem:[#allocation2 + $0xd8] sm:$0xff] %vm710_vm6, %v665_v43 }
  0xb7   : > { %735 = vst.msk [vmem:[#allocation2 + $0xd0] sm:$0xff] %vm710_vm6, %v663_v56  ;;  %v3274_v41 = vpack.c.bf16 %v1036_v32, %v1035_v62 }
  0xb9   : > { %2502 = vmatmul.mubr.msk.bf16.vlgmr.msra.gmra.mrb[0].mxu0 %vm239_vm3, %v3274_v41  ;;  %v950_v46 = vpop.permute.xlu1 %949 }
  0xba   : > { %v948_v48 = vpop.permute.xlu0 %947  ;;  %2570 = vmatpush3.bf16.msra.mxu0 %v3155_v47  ;;  %1024 = vst.msk [vmem:[#allocation2 + $0xc8] sm:$0x7f] %vm1001_vm7, %v950_v46 }
  0xbb   : > { %1023 = vst.msk [vmem:[#allocation2 + $0xc0] sm:$0xff] %vm999_vm8, %v948_v48  ;;  %2612 = vmatprep.subr.msk.bf16.mxu0 %vm1141_vm4, %v2629_v44 }
  0xbd   : > { %v621_v17 = vpop.permute.xlu1 %620 }
  0xbe   : > { %v619_v49 = vpop.permute.xlu0 %618  ;;  %2572 = vmatpush3.bf16.msra.mxu0 %v1818_v10  ;;  %714 = vst.msk [vmem:[#allocation2 + $0x28] sm:$0xff] %vm710_vm6, %v621_v17 }
  0xbf   : > { %713 = vst.msk [vmem:[#allocation2 + $0x20] sm:$0xff] %vm710_vm6, %v619_v49 }
  0xc1   : > { %v954_v42 = vpop.permute.xlu1 %953  ;;  %v1058_v18 = vld [vmem:[#allocation2 + $0xc8] sm:$0xff] }
  0xc2   : > { %v952_v45 = vpop.permute.xlu0 %951  ;;  %v1057_v13 = vld [vmem:[#allocation2 + $0xc0] sm:$0xff]  ;;  %1026 = vst.msk [vmem:[#allocation2 + $0xd8] sm:$0x7f] %vm1001_vm7, %v954_v42 }
  0xc3   : > { %1025 = vst.msk [vmem:[#allocation2 + $0xd0] sm:$0xff] %vm999_vm8, %v952_v45  ;;  %v3290_v47 = vpack.c.bf16 %v1058_v18, %v1057_v13 }
  0xc5   : > { %2525 = vmatprep.mubr.msk.bf16.mxu1 %vm239_vm3, %v3290_v47  ;;  %v625_v19 = vpop.permute.xlu1 %624 }
  0xc6   : > { %v623_v25 = vpop.permute.xlu0 %622  ;;  %716 = vst.msk [vmem:[#allocation2 + $0x38] sm:$0xff] %vm710_vm6, %v625_v19 }
  0xc7   : > { %715 = vst.msk [vmem:[#allocation2 + $0x30] sm:$0xff] %vm710_vm6, %v623_v25 }
  0xc9   : > { %v910_v50 = vpop.permute.xlu1 %909  ;;  %v1060_v54 = vld [vmem:[#allocation2 + $0xd8] sm:$0xff] }
  0xca   : > { %v908_v51 = vpop.permute.xlu0 %907  ;;  %v1059_v52 = vld [vmem:[#allocation2 + $0xd0] sm:$0xff]  ;;  %1004 = vst.msk [vmem:[#allocation2 + $0x28] sm:$0x7f] %vm1001_vm7, %v910_v50 }
  0xcb   : > { %1003 = vst.msk [vmem:[#allocation2 + $0x20] sm:$0xff] %vm999_vm8, %v908_v51  ;;  %v3298_v59 = vpack.c.bf16 %v1060_v54, %v1059_v52 }
  0xcd   : > { %2526 = vmatmul.mubr.msk.bf16.gmra.mrb[8].mxu1 %vm239_vm3, %v3298_v59  ;;  %v914_v60 = vpop.permute.xlu1 %913 }
  0xce   : > { %v912_v61 = vpop.permute.xlu0 %911  ;;  %1006 = vst.msk [vmem:[#allocation2 + $0x38] sm:$0x7f] %vm1001_vm7, %v914_v60 }
  0xcf   : > { %1005 = vst.msk [vmem:[#allocation2 + $0x30] sm:$0xff] %vm999_vm8, %v912_v61 }
  0xd1   : > { %v669_v0 = vpop.permute.xlu1 %668  ;;  %v1038_v7 = vld [vmem:[#allocation2 + $0x28] sm:$0xff] }
  0xd2   : > { %v667_v63 = vpop.permute.xlu0 %666  ;;  %v1037_v3 = vld [vmem:[#allocation2 + $0x20] sm:$0xff]  ;;  %738 = vst.msk [vmem:[#allocation2 + $0xe8] sm:$0xff] %vm710_vm6, %v669_v0 }
  0xd3   : > { %737 = vst.msk [vmem:[#allocation2 + $0xe0] sm:$0xff] %vm710_vm6, %v667_v63  ;;  %v3306_v8 = vpack.c.bf16 %v1038_v7, %v1037_v3 }
  0xd5   : > { %2505 = vmatprep.mubr.msk.bf16.mxu0 %vm239_vm3, %v3306_v8  ;;  %v673_v6 = vpop.permute.xlu1 %672  ;;  %v1040_v9 = vld [vmem:[#allocation2 + $0x38] sm:$0xff] }
  0xd6   : > { %v671_v5 = vpop.permute.xlu0 %670  ;;  %v1039_v16 = vld [vmem:[#allocation2 + $0x30] sm:$0xff]  ;;  %740 = vst.msk [vmem:[#allocation2 + $0xf8] sm:$0xff] %vm710_vm6, %v673_v6 }
  0xd7   : > { %739 = vst.msk [vmem:[#allocation2 + $0xf0] sm:$0xff] %vm710_vm6, %v671_v5  ;;  %v3312_v11 = vpack.c.bf16 %v1040_v9, %v1039_v16 }
  0xd9   : > { %2506 = vmatmul.mubr.msk.bf16.gmra.mrb[4].mxu0 %vm239_vm3, %v3312_v11  ;;  %v958_v53 = vpop.permute.xlu1 %957 }
  0xda   : > { %v956_v55 = vpop.permute.xlu0 %955  ;;  %1028 = vst.msk [vmem:[#allocation2 + $0xe8] sm:$0x7f] %vm1001_vm7, %v958_v53 }
  0xdb   : > { %1027 = vst.msk [vmem:[#allocation2 + $0xe0] sm:$0xff] %vm999_vm8, %v956_v55 }
  0xdd   : > { %v629_v57 = vpop.permute.xlu1 %628 }
  0xde   : > { %v627_v21 = vpop.permute.xlu0 %626  ;;  %718 = vst.msk [vmem:[#allocation2 + $0x48] sm:$0xff] %vm710_vm6, %v629_v57 }
  0xdf   : > { %717 = vst.msk [vmem:[#allocation2 + $0x40] sm:$0xff] %vm710_vm6, %v627_v21 }
  0xe1   : > { %v962_v1 = vpop.permute.xlu1 %961  ;;  %v1062_v15 = vld [vmem:[#allocation2 + $0xe8] sm:$0xff] }
  0xe2   : > { %v960_v29 = vpop.permute.xlu0 %959  ;;  %v1061_v14 = vld [vmem:[#allocation2 + $0xe0] sm:$0xff]  ;;  %1030 = vst.msk [vmem:[#allocation2 + $0xf8] sm:$0x7f] %vm1001_vm7, %v962_v1 }
  0xe3   : > { %1029 = vst.msk [vmem:[#allocation2 + $0xf0] sm:$0xff] %vm999_vm8, %v960_v29  ;;  %v3322_v23 = vpack.c.bf16 %v1062_v15, %v1061_v14 }
  0xe5   : > { %2529 = vmatprep.mubr.msk.bf16.mxu1 %vm239_vm3, %v3322_v23  ;;  %v633_v24 = vpop.permute.xlu1 %632 }
  0xe6   : > { %v631_v2 = vpop.permute.xlu0 %630  ;;  %720 = vst.msk [vmem:[#allocation2 + $0x58] sm:$0xff] %vm710_vm6, %v633_v24 }
  0xe7   : > { %719 = vst.msk [vmem:[#allocation2 + $0x50] sm:$0xff] %vm710_vm6, %v631_v2 }
  0xe9   : > { %v918_v26 = vpop.permute.xlu1 %917  ;;  %v1064_v30 = vld [vmem:[#allocation2 + $0xf8] sm:$0xff] }
  0xea   : > { %v916_v27 = vpop.permute.xlu0 %915  ;;  %v1063_v28 = vld [vmem:[#allocation2 + $0xf0] sm:$0xff]  ;;  %1008 = vst.msk [vmem:[#allocation2 + $0x48] sm:$0x7f] %vm1001_vm7, %v918_v26 }
  0xeb   : > { %1007 = vst.msk [vmem:[#allocation2 + $0x40] sm:$0xff] %vm999_vm8, %v916_v27  ;;  %v3330_v31 = vpack.c.bf16 %v1064_v30, %v1063_v28 }
  0xed   : > { %2530 = vmatmul.mubr.msk.bf16.gmra.mrb[12].mxu1 %vm239_vm3, %v3330_v31  ;;  %v922_v58 = vpop.permute.xlu1 %921 }
  0xee   : > { %v920_v4 = vpop.permute.xlu0 %919  ;;  %2537 = vmatprep.mubr.msk.bf16.mxu1 %vm239_vm3, %v3274_v41  ;;  %1010 = vst.msk [vmem:[#allocation2 + $0x58] sm:$0x7f] %vm1001_vm7, %v922_v58 }
  0xef   : > { %1009 = vst.msk [vmem:[#allocation2 + $0x50] sm:$0xff] %vm999_vm8, %v920_v4 }
  0xf1   : > { %v637_v33 = vpop.permute.xlu1 %636  ;;  %v1042_v36 = vld [vmem:[#allocation2 + $0x48] sm:$0xff] }
  0xf2   : > { %v635_v34 = vpop.permute.xlu0 %634  ;;  %v1041_v35 = vld [vmem:[#allocation2 + $0x40] sm:$0xff]  ;;  %722 = vst.msk [vmem:[#allocation2 + $0x68] sm:$0xff] %vm710_vm6, %v637_v33 }
  0xf3   : > { %721 = vst.msk [vmem:[#allocation2 + $0x60] sm:$0xff] %vm710_vm6, %v635_v34  ;;  %v1069_v37 = vpack.c.bf16 %v1042_v36, %v1041_v35 }
  0xf5   : > { %2509 = vmatprep.mubr.msk.bf16.mxu0 %vm239_vm3, %v1069_v37  ;;  %2538 = vmatmul.mubr.msk.bf16.vlgmr.msra.gmra.mrb[16].mxu1 %vm239_vm3, %v3306_v8  ;;  %v641_v39 = vpop.permute.xlu1 %640  ;;  %v1044_v56 = vld [vmem:[#allocation2 + $0x58] sm:$0xff] }
  0xf6   : > { %v639_v40 = vpop.permute.xlu0 %638  ;;  %2541 = vmatprep.mubr.msk.bf16.mxu1 %vm239_vm3, %v3312_v11  ;;  %v1043_v43 = vld [vmem:[#allocation2 + $0x50] sm:$0xff]  ;;  %724 = vst.msk [vmem:[#allocation2 + $0x78] sm:$0xff] %vm710_vm6, %v641_v39 }
  0xf7   : > { %723 = vst.msk [vmem:[#allocation2 + $0x70] sm:$0xff] %vm710_vm6, %v639_v40  ;;  %v1070_v62 = vpack.c.bf16 %v1044_v56, %v1043_v43 }
  0xf9   : > { %2510 = vmatmul.mubr.msk.bf16.gmra.mrb[8].mxu0 %vm239_vm3, %v1070_v62  ;;  %v926_v32 = vpop.permute.xlu1 %925 }
  0xfa   : > { %v924_v41 = vpop.permute.xlu0 %923  ;;  %1012 = vst.msk [vmem:[#allocation2 + $0x68] sm:$0x7f] %vm1001_vm7, %v926_v32 }
  0xfb   : > { %1011 = vst.msk [vmem:[#allocation2 + $0x60] sm:$0xff] %vm999_vm8, %v924_v41 }
  0xfd   : > { %2542 = vmatmul.mubr.msk.bf16.gmra.mrb[20].mxu1 %vm239_vm3, %v1069_v37  ;;  %v930_v44 = vpop.permute.xlu1 %929 }
  0xfe   : > { %v928_v46 = vpop.permute.xlu0 %927  ;;  %2545 = vmatprep.mubr.msk.bf16.mxu1 %vm239_vm3, %v1070_v62  ;;  %1014 = vst.msk [vmem:[#allocation2 + $0x78] sm:$0x7f] %vm1001_vm7, %v930_v44 }
  0xff   : > { %1013 = vst.msk [vmem:[#allocation2 + $0x70] sm:$0xff] %vm999_vm8, %v928_v46 }
 0x101   : > { %v1046_v10 = vld [vmem:[#allocation2 + $0x68] sm:$0xff]  ;;  %v677_v17 = vpop.permute.xlu1 %676 }
 0x102   : > { %v1045_v48 = vld [vmem:[#allocation2 + $0x60] sm:$0xff]  ;;  %v675_v49 = vpop.permute.xlu0 %674  ;;  %742 = vst.msk [vmem:[#allocation2 + $0x108] sm:$0xff] %vm710_vm6, %v677_v17 }
 0x103   : > { %v1071_v42 = vpack.c.bf16 %v1046_v10, %v1045_v48  ;;  %741 = vst.msk [vmem:[#allocation2 + $0x100] sm:$0xff] %vm710_vm6, %v675_v49 }
 0x105   : > { %2513 = vmatprep.mubr.msk.bf16.mxu0 %vm239_vm3, %v1071_v42  ;;  %2546 = vmatmul.mubr.msk.bf16.gmra.mrb[24].mxu1 %vm239_vm3, %v1071_v42  ;;  %v1048_v13 = vld [vmem:[#allocation2 + $0x78] sm:$0xff]  ;;  %v966_v18 = vpop.permute.xlu1 %965 }
 0x106   : > { %v1047_v45 = vld [vmem:[#allocation2 + $0x70] sm:$0xff]  ;;  %v964_v19 = vpop.permute.xlu0 %963  ;;  %1032 = vst.msk [vmem:[#allocation2 + $0x108] sm:$0x7f] %vm1001_vm7, %v966_v18 }
 0x107   : > { %v1072_v25 = vpack.c.bf16 %v1048_v13, %v1047_v45  ;;  %1031 = vst.msk [vmem:[#allocation2 + $0x100] sm:$0xff] %vm999_vm8, %v964_v19 }
 0x109   : > { %2514 = vmatmul.mubr.msk.bf16.gmra.mrb[12].mxu0 %vm239_vm3, %v1072_v25  ;;  %2549 = vmatprep.mubr.msk.bf16.mxu1 %vm239_vm3, %v1072_v25 }
 0x10a   : > { %2573 = vmatprep.mubr.msk.bf16.mxu0 %vm239_vm3, %v3306_v8 }
 0x10d   : > { %2550 = vmatmul.mubr.msk.bf16.gmra.mrb[28].mxu1 %vm239_vm3, %v3233_v12  ;;  %v1369_v51 = vld [vmem:[#allocation2 + $0x108] sm:$0xff] }
 0x10e   : > { %2553 = vmatprep.mubr.msk.bf16.mxu1 %vm239_vm3, %v3243_v22  ;;  %v1368_v50 = vld [vmem:[#allocation2 + $0x100] sm:$0xff] }
 0x10f   : > { %v1385_v52 = vpack.c.bf16 %v1369_v51, %v1368_v50 }
 0x111   : > { %2574 = vmatmul.mubr.msk.bf16.vlgmr.msra.gmra.mrb[16].mxu0 %vm239_vm3, %v3312_v11 }
 0x112   : > { %2577 = vmatprep.mubr.msk.bf16.mxu0 %vm239_vm3, %v1069_v37 }
 0x115   : > { %2554 = vmatmul.mubr.msk.bf16.gmra.mrb[32].mxu1 %vm239_vm3, %v3260_v20 }
 0x116   : > { %2557 = vmatprep.mubr.msk.bf16.mxu1 %vm239_vm3, %v3266_v38 }
 0x119   : > { %2578 = vmatmul.mubr.msk.bf16.gmra.mrb[20].mxu0 %vm239_vm3, %v1070_v62 }
 0x11a   : > { %2581 = vmatprep.mubr.msk.bf16.mxu0 %vm239_vm3, %v1071_v42 }
 0x11d   : > { %2558 = vmatmul.mubr.msk.bf16.gmra.mrb[36].mxu1 %vm239_vm3, %v3290_v47 }
 0x11e   : > { %2561 = vmatprep.mubr.msk.bf16.mxu1 %vm239_vm3, %v3298_v59 }
 0x121   : > { %2582 = vmatmul.mubr.msk.bf16.gmra.mrb[24].mxu0 %vm239_vm3, %v1072_v25 }
 0x122   : > { %2585 = vmatprep.mubr.msk.bf16.mxu0 %vm239_vm3, %v3233_v12  ;;  %v1738_v12 = vld [vmem:[#allocation2 + $0x110] sm:$0xff] }
 0x125   : > { %2562 = vmatmul.mubr.msk.bf16.gmra.mrb[40].mxu1 %vm239_vm3, %v3322_v23 }
 0x126   : > { %2565 = vmatprep.mubr.msk.bf16.mxu1 %vm239_vm3, %v3330_v31 }
 0x129   : > { %2586 = vmatmul.mubr.msk.bf16.gmra.mrb[28].mxu0 %vm239_vm3, %v3243_v22  ;;  %v1739_v22 = vld [vmem:[#allocation2 + $0x118] sm:$0xff] }
 0x12a   : > { %2589 = vmatprep.mubr.msk.bf16.mxu0 %vm239_vm3, %v3260_v20  ;;  %v1755_v20 = vpack.c.bf16 %v1739_v22, %v1738_v12 }
 0x12d   : > { %2566 = vmatmul.mubr.msk.bf16.gmra.mrb[44].mxu1 %vm239_vm3, %v1385_v52 }
 0x131   : > { %2590 = vmatmul.mubr.msk.bf16.gmra.mrb[32].mxu0 %vm239_vm3, %v3266_v38 }
 0x132   : > { %2593 = vmatprep.mubr.msk.bf16.mxu0 %vm239_vm3, %v3290_v47 }
 0x139   : > { %2594 = vmatmul.mubr.msk.bf16.gmra.mrb[36].mxu0 %vm239_vm3, %v3298_v59 }
 0x13a   : > { %2597 = vmatprep.mubr.msk.bf16.mxu0 %vm239_vm3, %v3322_v23 }
 0x141   : > { %2598 = vmatmul.mubr.msk.bf16.gmra.mrb[40].mxu0 %vm239_vm3, %v3330_v31 }
 0x142   : > { %2601 = vmatprep.mubr.msk.bf16.mxu0 %vm239_vm3, %v1385_v52 }
 0x149   : > { %2602 = vmatmul.mubr.msk.bf16.gmra.mrb[44].mxu0 %vm239_vm3, %v1755_v20 }
 0x174   : > { %v2519_v38 = vpop.f32.mrb[0].mxu1 }
 0x175   : > { %1324 = vst.msk [vmem:[%s3410_s24 + $0x90] sm:$0xff] %vm420_vm2, %v2519_v38  ;;  %v1243_v47 = vpop.f32.mrb[1].mxu1 }
 0x176   : > { %1322 = vst.msk [vmem:[%s3410_s24 + $0x80] sm:$0xff] %vm420_vm2, %v1243_v47  ;;  %v2520_v54 = vpop.f32.mrb[2].mxu1 }
 0x177   : > { %1325 = vst.msk [vmem:[%s3410_s24 + $0x98] sm:$0xff] %vm420_vm2, %v2520_v54  ;;  %v1246_v59 = vpop.f32.mrb[3].mxu1 }
 0x178   : > { %1323 = vst.msk [vmem:[%s3410_s24 + $0x88] sm:$0xff] %vm420_vm2, %v1246_v59 }
 0x184   : > { %v2523_v60 = vpop.f32.mrb[4].mxu1 }
 0x185   : > { %1328 = vst.msk [vmem:[%s3410_s24 + $0xb0] sm:$0xff] %vm420_vm2, %v2523_v60  ;;  %v1259_v61 = vpop.f32.mrb[5].mxu1 }
 0x186   : > { %1326 = vst.msk [vmem:[%s3410_s24 + $0xa0] sm:$0xff] %vm420_vm2, %v1259_v61  ;;  %v2524_v0 = vpop.f32.mrb[6].mxu1 }
 0x187   : > { %1329 = vst.msk [vmem:[%s3410_s24 + $0xb8] sm:$0xff] %vm420_vm2, %v2524_v0  ;;  %v1262_v63 = vpop.f32.mrb[7].mxu1 }
 0x188   : > { %1327 = vst.msk [vmem:[%s3410_s24 + $0xa8] sm:$0xff] %vm420_vm2, %v1262_v63 }
 0x18c   : > { %v2503_v3 = vpop.f32.mrb[0].mxu0 }
 0x18d   : > { %1308 = vst.msk [vmem:[%s3410_s24 + $0x10] sm:$0xff] %vm420_vm2, %v2503_v3  ;;  %v1179_v7 = vpop.f32.mrb[1].mxu0 }
 0x18e   : > { %1306 = vst.msk [vmem:[%s3410_s24] sm:$0xff] %vm420_vm2, %v1179_v7  ;;  %v2504_v8 = vpop.f32.mrb[2].mxu0 }
 0x18f   : > { %1309 = vst.msk [vmem:[%s3410_s24 + $0x18] sm:$0xff] %vm420_vm2, %v2504_v8  ;;  %v1182_v6 = vpop.f32.mrb[3].mxu0 }
 0x190   : > { %1307 = vst.msk [vmem:[%s3410_s24 + $0x8] sm:$0xff] %vm420_vm2, %v1182_v6 }
 0x194   : > { %v1613_v24 = vld [vmem:[%s3410_s24 + $0x10] sm:$0xff] }
 0x195   : > { %v1611_v27 = vld [vmem:[%s3410_s24] sm:$0xff] }
 0x196   : > { %v1614_v31 = vld [vmem:[%s3410_s24 + $0x18] sm:$0xff] }
 0x197   : > { %v1612_v33 = vld [vmem:[%s3410_s24 + $0x8] sm:$0xff] }
 0x1a0   : > { %v2527_v5 = vpop.f32.mrb[8].mxu1 }
 0x1a1   : > { %1332 = vst.msk [vmem:[%s3410_s24 + $0xd0] sm:$0xff] %vm420_vm2, %v2527_v5  ;;  %v1275_v16 = vpop.f32.mrb[9].mxu1 }
 0x1a2   : > { %1330 = vst.msk [vmem:[%s3410_s24 + $0xc0] sm:$0xff] %vm420_vm2, %v1275_v16  ;;  %v2528_v9 = vpop.f32.mrb[10].mxu1 }
 0x1a3   : > { %1333 = vst.msk [vmem:[%s3410_s24 + $0xd8] sm:$0xff] %vm420_vm2, %v2528_v9  ;;  %v1278_v11 = vpop.f32.mrb[11].mxu1 }
 0x1a4   : > { %1331 = vst.msk [vmem:[%s3410_s24 + $0xc8] sm:$0xff] %vm420_vm2, %v1278_v11 }
 0x1ac   : > { %v2507_v53 = vpop.f32.mrb[4].mxu0 }
 0x1ad   : > { %1312 = vst.msk [vmem:[%s3410_s24 + $0x30] sm:$0xff] %vm420_vm2, %v2507_v53  ;;  %v1195_v55 = vpop.f32.mrb[5].mxu0 }
 0x1ae   : > { %1310 = vst.msk [vmem:[%s3410_s24 + $0x20] sm:$0xff] %vm420_vm2, %v1195_v55  ;;  %v2508_v57 = vpop.f32.mrb[6].mxu0 }
 0x1af   : > { %1313 = vst.msk [vmem:[%s3410_s24 + $0x38] sm:$0xff] %vm420_vm2, %v2508_v57  ;;  %v1198_v21 = vpop.f32.mrb[7].mxu0 }
 0x1b0   : > { %1311 = vst.msk [vmem:[%s3410_s24 + $0x28] sm:$0xff] %vm420_vm2, %v1198_v21 }
 0x1b4   : > { %v1617_v43 = vld [vmem:[%s3410_s24 + $0x30] sm:$0xff] }
 0x1b5   : > { %v1615_v32 = vld [vmem:[%s3410_s24 + $0x20] sm:$0xff] }
 0x1b6   : > { %v1618_v46 = vld [vmem:[%s3410_s24 + $0x38] sm:$0xff] }
 0x1b7   : > { %v1616_v17 = vld [vmem:[%s3410_s24 + $0x28] sm:$0xff] }
 0x1c0   : > { %v2531_v1 = vpop.f32.mrb[12].mxu1 }
 0x1c1   : > { %1336 = vst.msk [vmem:[%s3410_s24 + $0xf0] sm:$0xff] %vm420_vm2, %v2531_v1  ;;  %v1291_v29 = vpop.f32.mrb[13].mxu1 }
 0x1c2   : > { %1334 = vst.msk [vmem:[%s3410_s24 + $0xe0] sm:$0xff] %vm420_vm2, %v1291_v29  ;;  %v2532_v14 = vpop.f32.mrb[14].mxu1 }
 0x1c3   : > { %1337 = vst.msk [vmem:[%s3410_s24 + $0xf8] sm:$0xff] %vm420_vm2, %v2532_v14  ;;  %v1294_v15 = vpop.f32.mrb[15].mxu1 }
 0x1c4   : > { %1335 = vst.msk [vmem:[%s3410_s24 + $0xe8] sm:$0xff] %vm420_vm2, %v1294_v15 }
 0x1c8   : > { %v2539_v23 = vpop.f32.mrb[16].mxu1 }
 0x1c9   : > { %v1645_v2 = vadd.f32 %v2539_v23, %v1613_v24  ;;  %v1484_v26 = vpop.f32.mrb[17].mxu1 }
 0x1ca   : > { %v1643_v28 = vadd.f32 %v1611_v27, %v1484_v26  ;;  %v2540_v30 = vpop.f32.mrb[18].mxu1 }
 0x1cb   : > { %1677 = vst.msk [vmem:[%s3410_s24 + $0x10] sm:$0xff] %vm420_vm2, %v1645_v2  ;;  %v1646_v58 = vadd.f32 %v2540_v30, %v1614_v31  ;;  %v1487_v4 = vpop.f32.mrb[19].mxu1 }
 0x1cc   : > { %1675 = vst.msk [vmem:[%s3410_s24] sm:$0xff] %vm420_vm2, %v1643_v28  ;;  %v1644_v34 = vadd.f32 %v1612_v33, %v1487_v4  ;;  %v2511_v35 = vpop.f32.mrb[8].mxu0  ;;  %v1629_v28 = vld [vmem:[%s3410_s24 + $0x90] sm:$0xff] }
 0x1cd   : > { %1678 = vst.msk [vmem:[%s3410_s24 + $0x18] sm:$0xff] %vm420_vm2, %v1646_v58  ;;  %1316 = vst.msk [vmem:[%s3410_s24 + $0x50] sm:$0xff] %vm420_vm2, %v2511_v35  ;;  %v1211_v36 = vpop.f32.mrb[9].mxu0  ;;  %v1627_v58 = vld [vmem:[%s3410_s24 + $0x80] sm:$0xff] }
 0x1ce   : > { %1676 = vst.msk [vmem:[%s3410_s24 + $0x8] sm:$0xff] %vm420_vm2, %v1644_v34  ;;  %1314 = vst.msk [vmem:[%s3410_s24 + $0x40] sm:$0xff] %vm420_vm2, %v1211_v36  ;;  %v2512_v37 = vpop.f32.mrb[10].mxu0  ;;  %v1630_v34 = vld [vmem:[%s3410_s24 + $0x98] sm:$0xff] }
 0x1cf   : > { %1317 = vst.msk [vmem:[%s3410_s24 + $0x58] sm:$0xff] %vm420_vm2, %v2512_v37  ;;  %v1214_v39 = vpop.f32.mrb[11].mxu0  ;;  %v1628_v37 = vld [vmem:[%s3410_s24 + $0x88] sm:$0xff] }
 0x1d0   : > { %1315 = vst.msk [vmem:[%s3410_s24 + $0x48] sm:$0xff] %vm420_vm2, %v1214_v39  ;;  %v2543_v40 = vpop.f32.mrb[20].mxu1 }
 0x1d1   : > { %v1649_v56 = vadd.f32 %v2543_v40, %v1617_v43  ;;  %v1500_v62 = vpop.f32.mrb[21].mxu1 }
 0x1d2   : > { %v1647_v41 = vadd.f32 %v1615_v32, %v1500_v62  ;;  %v2544_v44 = vpop.f32.mrb[22].mxu1  ;;  %v1983_v8 = vld [vmem:[%s3410_s24 + $0x10] sm:$0xff] }
 0x1d3   : > { %1681 = vst.msk [vmem:[%s3410_s24 + $0x30] sm:$0xff] %vm420_vm2, %v1649_v56  ;;  %v1650_v48 = vadd.f32 %v2544_v44, %v1618_v46  ;;  %v1503_v10 = vpop.f32.mrb[23].mxu1  ;;  %v1981_v11 = vld [vmem:[%s3410_s24] sm:$0xff] }
 0x1d4   : > { %1679 = vst.msk [vmem:[%s3410_s24 + $0x20] sm:$0xff] %vm420_vm2, %v1647_v41  ;;  %v1648_v49 = vadd.f32 %v1616_v17, %v1503_v10  ;;  %v1621_v45 = vld [vmem:[%s3410_s24 + $0x50] sm:$0xff]  ;;  %v1984_v1 = vld [vmem:[%s3410_s24 + $0x18] sm:$0xff] }
 0x1d5   : > { %1682 = vst.msk [vmem:[%s3410_s24 + $0x38] sm:$0xff] %vm420_vm2, %v1650_v48  ;;  %v1619_v19 = vld [vmem:[%s3410_s24 + $0x40] sm:$0xff]  ;;  %v1982_v24 = vld [vmem:[%s3410_s24 + $0x8] sm:$0xff] }
 0x1d6   : > { %1680 = vst.msk [vmem:[%s3410_s24 + $0x28] sm:$0xff] %vm420_vm2, %v1648_v49  ;;  %v1622_v51 = vld [vmem:[%s3410_s24 + $0x58] sm:$0xff] }
 0x1d7   : > { %v1620_v22 = vld [vmem:[%s3410_s24 + $0x48] sm:$0xff] }
 0x1d8   : > { %v2547_v42 = vpop.f32.mrb[24].mxu1 }
 0x1d9   : > { %v1653_v13 = vadd.f32 %v2547_v42, %v1621_v45  ;;  %v1516_v18 = vpop.f32.mrb[25].mxu1 }
 0x1da   : > { %v1651_v25 = vadd.f32 %v1619_v19, %v1516_v18  ;;  %v2548_v50 = vpop.f32.mrb[26].mxu1  ;;  %v1987_v43 = vld [vmem:[%s3410_s24 + $0x30] sm:$0xff] }
 0x1db   : > { %1685 = vst.msk [vmem:[%s3410_s24 + $0x50] sm:$0xff] %vm420_vm2, %v1653_v13  ;;  %v1654_v52 = vadd.f32 %v2548_v50, %v1622_v51  ;;  %v1519_v12 = vpop.f32.mrb[27].mxu1  ;;  %v1985_v32 = vld [vmem:[%s3410_s24 + $0x20] sm:$0xff] }
 0x1dc   : > { %1683 = vst.msk [vmem:[%s3410_s24 + $0x40] sm:$0xff] %vm420_vm2, %v1651_v25  ;;  %v1652_v20 = vadd.f32 %v1620_v22, %v1519_v12  ;;  %v2515_v38 = vpop.f32.mrb[12].mxu0  ;;  %v1988_v48 = vld [vmem:[%s3410_s24 + $0x38] sm:$0xff]  ;;  %v1633_v25 = vld [vmem:[%s3410_s24 + $0xb0] sm:$0xff]  ;;  %v1631_v22 = vld [vmem:[%s3410_s24 + $0xa0] sm:$0xff] }
 0x1dd   : > { %1686 = vst.msk [vmem:[%s3410_s24 + $0x58] sm:$0xff] %vm420_vm2, %v1654_v52  ;;  %1320 = vst.msk [vmem:[%s3410_s24 + $0x70] sm:$0xff] %vm420_vm2, %v2515_v38  ;;  %v1227_v47 = vpop.f32.mrb[13].mxu0  ;;  %v1986_v42 = vld [vmem:[%s3410_s24 + $0x28] sm:$0xff] }
 0x1de   : > { %1684 = vst.msk [vmem:[%s3410_s24 + $0x48] sm:$0xff] %vm420_vm2, %v1652_v20  ;;  %1318 = vst.msk [vmem:[%s3410_s24 + $0x60] sm:$0xff] %vm420_vm2, %v1227_v47  ;;  %v2516_v54 = vpop.f32.mrb[14].mxu0 }
 0x1df   : > { %1321 = vst.msk [vmem:[%s3410_s24 + $0x78] sm:$0xff] %vm420_vm2, %v2516_v54  ;;  %v1230_v59 = vpop.f32.mrb[15].mxu0 }
 0x1e0   : > { %1319 = vst.msk [vmem:[%s3410_s24 + $0x68] sm:$0xff] %vm420_vm2, %v1230_v59  ;;  %v2551_v60 = vpop.f32.mrb[28].mxu1 }
 0x1e1   : > { %v1532_v61 = vpop.f32.mrb[29].mxu1 }
 0x1e2   : > { %v2552_v0 = vpop.f32.mrb[30].mxu1 }
 0x1e3   : > { %v1535_v63 = vpop.f32.mrb[31].mxu1 }
 0x1e4   : > { %v1625_v3 = vld [vmem:[%s3410_s24 + $0x70] sm:$0xff]  ;;  %v2575_v7 = vpop.f32.mrb[16].mxu0 }
 0x1e5   : > { %v1657_v6 = vadd.f32 %v2551_v60, %v1625_v3  ;;  %v1623_v5 = vld [vmem:[%s3410_s24 + $0x60] sm:$0xff]  ;;  %v2015_v16 = vadd.f32 %v2575_v7, %v1983_v8  ;;  %v1854_v9 = vpop.f32.mrb[17].mxu0  ;;  %v1634_v60 = vld [vmem:[%s3410_s24 + $0xb8] sm:$0xff]  ;;  %v1632_v7 = vld [vmem:[%s3410_s24 + $0xa8] sm:$0xff] }
 0x1e6   : > { %v1655_v53 = vadd.f32 %v1623_v5, %v1532_v61  ;;  %v1626_v55 = vld [vmem:[%s3410_s24 + $0x78] sm:$0xff]  ;;  %v2013_v57 = vadd.f32 %v1981_v11, %v1854_v9  ;;  %v2576_v21 = vpop.f32.mrb[18].mxu0  ;;  %v1991_v11 = vld [vmem:[%s3410_s24 + $0x50] sm:$0xff] }
 0x1e7   : > { %1689 = vst.msk [vmem:[%s3410_s24 + $0x70] sm:$0xff] %vm420_vm2, %v1657_v6  ;;  %v1658_v29 = vadd.f32 %v2552_v0, %v1626_v55  ;;  %v1624_v14 = vld [vmem:[%s3410_s24 + $0x68] sm:$0xff]  ;;  %2047 = vst.msk [vmem:[%s3410_s24 + $0x10] sm:$0xff] %vm420_vm2, %v2015_v16  ;;  %v2016_v15 = vadd.f32 %v2576_v21, %v1984_v1  ;;  %v1857_v23 = vpop.f32.mrb[19].mxu0  ;;  %v1989_v1 = vld [vmem:[%s3410_s24 + $0x40] sm:$0xff] }
 0x1e8   : > { %1687 = vst.msk [vmem:[%s3410_s24 + $0x60] sm:$0xff] %vm420_vm2, %v1655_v53  ;;  %v1656_v2 = vadd.f32 %v1624_v14, %v1535_v63  ;;  %2045 = vst.msk [vmem:[%s3410_s24] sm:$0xff] %vm420_vm2, %v2013_v57  ;;  %v2014_v26 = vadd.f32 %v1982_v24, %v1857_v23  ;;  %v2555_v27 = vpop.f32.mrb[32].mxu1 }
 0x1e9   : > { %1690 = vst.msk [vmem:[%s3410_s24 + $0x78] sm:$0xff] %vm420_vm2, %v1658_v29  ;;  %2048 = vst.msk [vmem:[%s3410_s24 + $0x18] sm:$0xff] %vm420_vm2, %v2016_v15  ;;  %v1661_v30 = vadd.f32 %v2555_v27, %v1629_v28  ;;  %v1548_v31 = vpop.f32.mrb[33].mxu1 }
 0x1ea   : > { %1688 = vst.msk [vmem:[%s3410_s24 + $0x68] sm:$0xff] %vm420_vm2, %v1656_v2  ;;  %2046 = vst.msk [vmem:[%s3410_s24 + $0x8] sm:$0xff] %vm420_vm2, %v2014_v26  ;;  %v1659_v4 = vadd.f32 %v1627_v58, %v1548_v31  ;;  %v2556_v33 = vpop.f32.mrb[34].mxu1  ;;  %v1990_v58 = vld [vmem:[%s3410_s24 + $0x48] sm:$0xff] }
 0x1eb   : > { %1693 = vst.msk [vmem:[%s3410_s24 + $0x90] sm:$0xff] %vm420_vm2, %v1661_v30  ;;  %v1662_v35 = vadd.f32 %v2556_v33, %v1630_v34  ;;  %v1551_v36 = vpop.f32.mrb[35].mxu1  ;;  %v1992_v30 = vld [vmem:[%s3410_s24 + $0x58] sm:$0xff] }
 0x1ec   : > { %1691 = vst.msk [vmem:[%s3410_s24 + $0x80] sm:$0xff] %vm420_vm2, %v1659_v4  ;;  %v1660_v39 = vadd.f32 %v1628_v37, %v1551_v36  ;;  %v2579_v40 = vpop.f32.mrb[20].mxu0 }
 0x1ed   : > { %1694 = vst.msk [vmem:[%s3410_s24 + $0x98] sm:$0xff] %vm420_vm2, %v1662_v35  ;;  %v2019_v56 = vadd.f32 %v2579_v40, %v1987_v43  ;;  %v1870_v62 = vpop.f32.mrb[21].mxu0 }
 0x1ee   : > { %v2079_v41 = vld [vmem:[%s3410_s24 + $0x10] sm:$0xff]  ;;  %1692 = vst.msk [vmem:[%s3410_s24 + $0x88] sm:$0xff] %vm420_vm2, %v1660_v39  ;;  %v2017_v44 = vadd.f32 %v1985_v32, %v1870_v62  ;;  %v2580_v46 = vpop.f32.mrb[22].mxu0 }
 0x1ef   : > { %v2077_v10 = vld [vmem:[%s3410_s24] sm:$0xff]  ;;  %2051 = vst.msk [vmem:[%s3410_s24 + $0x30] sm:$0xff] %vm420_vm2, %v2019_v56  ;;  %v2020_v17 = vadd.f32 %v2580_v46, %v1988_v48  ;;  %v1873_v49 = vpop.f32.mrb[23].mxu0  ;;  %v2181_v50 = vmul.f32 %v2079_v41, %v2079_v41  ;;  %v2112_v8 = vsel %vm420_vm2, %v2079_v41, 0.0  ;;  %v1637_v48 = vld [vmem:[%s3410_s24 + $0xd0] sm:$0xff] }
 0x1f0   : > { %v2179_v45 = vmul.f32 %v2077_v10, %v2077_v10  ;;  %v2080_v13 = vld [vmem:[%s3410_s24 + $0x18] sm:$0xff]  ;;  %2049 = vst.msk [vmem:[%s3410_s24 + $0x20] sm:$0xff] %vm420_vm2, %v2017_v44  ;;  %v2018_v18 = vadd.f32 %v1986_v42, %v1873_v49  ;;  %v2559_v19 = vpop.f32.mrb[36].mxu1  ;;  %v2109_v20 = vsel %vm420_vm2, %v2077_v10, 0.0  ;;  %v1635_v10 = vld [vmem:[%s3410_s24 + $0xc0] sm:$0xff] }
 0x1f1   : > { %v2078_v51 = vld [vmem:[%s3410_s24 + $0x8] sm:$0xff]  ;;  %2052 = vst.msk [vmem:[%s3410_s24 + $0x38] sm:$0xff] %vm420_vm2, %v2020_v17  ;;  %v1665_v52 = vadd.f32 %v2559_v19, %v1633_v25  ;;  %v1564_v12 = vpop.f32.mrb[37].mxu1  ;;  %v2182_v61 = vmul.f32 %v2080_v13, %v2080_v13  ;;  %v2214_v29 = vsel %vm420_vm2, %v2181_v50, 0.0  ;;  %v2114_v14 = vsel %vm420_vm2, %v2080_v13, 0.0 }
 0x1f2   : > { %v2110_v38 = vsel %vm420_vm2, %v2078_v51, 0.0  ;;  %v2180_v47 = vmul.f32 %v2078_v51, %v2078_v51  ;;  %2050 = vst.msk [vmem:[%s3410_s24 + $0x28] sm:$0xff] %vm420_vm2, %v2018_v18  ;;  %v1663_v54 = vadd.f32 %v1631_v22, %v1564_v12  ;;  %v2560_v59 = vpop.f32.mrb[38].mxu1  ;;  %v2211_v6 = vsel %vm420_vm2, %v2179_v45, 0.0  ;;  %v1638_v18 = vld [vmem:[%s3410_s24 + $0xd8] sm:$0xff]  ;;  %v1636_v25 = vld [vmem:[%s3410_s24 + $0xc8] sm:$0xff] }
 0x1f3   : > { %v2111_v0 = vadd.f32 %v2110_v38, %v2109_v20  ;;  %1697 = vst.msk [vmem:[%s3410_s24 + $0xb0] sm:$0xff] %vm420_vm2, %v1665_v52  ;;  %v1666_v63 = vadd.f32 %v2560_v59, %v1634_v60  ;;  %v1567_v3 = vpop.f32.mrb[39].mxu1  ;;  %v2216_v2 = vsel %vm420_vm2, %v2182_v61, 0.0  ;;  %v1995_v20 = vld [vmem:[%s3410_s24 + $0x70] sm:$0xff]  ;;  %v1993_v60 = vld [vmem:[%s3410_s24 + $0x60] sm:$0xff] }
 0x1f4   : > { %v2212_v5 = vsel %vm420_vm2, %v2180_v47, 0.0  ;;  %1695 = vst.msk [vmem:[%s3410_s24 + $0xa0] sm:$0xff] %vm420_vm2, %v1663_v54  ;;  %v1664_v16 = vadd.f32 %v1632_v7, %v1567_v3  ;;  %v2583_v9 = vpop.f32.mrb[24].mxu0  ;;  %v1996_v7 = vld [vmem:[%s3410_s24 + $0x78] sm:$0xff] }
 0x1f5   : > { %v2113_v53 = vadd.f32 %v2112_v8, %v2111_v0  ;;  %v2213_v55 = vadd.f32 %v2212_v5, %v2211_v6  ;;  %1698 = vst.msk [vmem:[%s3410_s24 + $0xb8] sm:$0xff] %vm420_vm2, %v1666_v63  ;;  %v2023_v57 = vadd.f32 %v2583_v9, %v1991_v11  ;;  %v1886_v21 = vpop.f32.mrb[25].mxu0 }
 0x1f6   : > { %v2083_v15 = vld [vmem:[%s3410_s24 + $0x30] sm:$0xff]  ;;  %1696 = vst.msk [vmem:[%s3410_s24 + $0xa8] sm:$0xff] %vm420_vm2, %v1664_v16  ;;  %v2021_v23 = vadd.f32 %v1989_v1, %v1886_v21  ;;  %v2584_v24 = vpop.f32.mrb[26].mxu0 }
 0x1f7   : > { %v2215_v26 = vadd.f32 %v2214_v29, %v2213_v55  ;;  %v2081_v27 = vld [vmem:[%s3410_s24 + $0x20] sm:$0xff]  ;;  %v2115_v28 = vadd.f32 %v2114_v14, %v2113_v53  ;;  %2055 = vst.msk [vmem:[%s3410_s24 + $0x50] sm:$0xff] %vm420_vm2, %v2023_v57  ;;  %v1889_v31 = vpop.f32.mrb[27].mxu0  ;;  %v2024_v35 = vadd.f32 %v2584_v24, %v1992_v30  ;;  %v2185_v39 = vmul.f32 %v2083_v15, %v2083_v15  ;;  %v1994_v53 = vld [vmem:[%s3410_s24 + $0x68] sm:$0xff]  ;;  %v1641_v14 = vld [vmem:[%s3410_s24 + $0xf0] sm:$0xff] }
 0x1f8   : > { %v2116_v4 = vsel %vm420_vm2, %v2081_v27, 0.0  ;;  %v2183_v33 = vmul.f32 %v2081_v27, %v2081_v27  ;;  %v2084_v34 = vld [vmem:[%s3410_s24 + $0x38] sm:$0xff]  ;;  %2053 = vst.msk [vmem:[%s3410_s24 + $0x40] sm:$0xff] %vm420_vm2, %v2021_v23  ;;  %v2022_v36 = vadd.f32 %v1990_v58, %v1889_v31  ;;  %v2563_v37 = vpop.f32.mrb[40].mxu1  ;;  %v2120_v50 = vsel %vm420_vm2, %v2083_v15, 0.0  ;;  %v1639_v58 = vld [vmem:[%s3410_s24 + $0xe0] sm:$0xff] }
 0x1f9   : > { %v2117_v40 = vadd.f32 %v2116_v4, %v2115_v28  ;;  %v2217_v43 = vadd.f32 %v2216_v2, %v2215_v26  ;;  %v2082_v56 = vld [vmem:[%s3410_s24 + $0x28] sm:$0xff]  ;;  %v1580_v62 = vpop.f32.mrb[41].mxu1  ;;  %v2186_v41 = vmul.f32 %v2084_v34, %v2084_v34  ;;  %2056 = vst.msk [vmem:[%s3410_s24 + $0x58] sm:$0xff] %vm420_vm2, %v2024_v35  ;;  %v1669_v45 = vadd.f32 %v2563_v37, %v1637_v48  ;;  %v1642_v37 = vld [vmem:[%s3410_s24 + $0xf8] sm:$0xff] }
 0x1fa   : > { %v2218_v32 = vsel %vm420_vm2, %v2183_v33, 0.0  ;;  %v2118_v44 = vsel %vm420_vm2, %v2082_v56, 0.0  ;;  %v2184_v46 = vmul.f32 %v2082_v56, %v2082_v56  ;;  %2054 = vst.msk [vmem:[%s3410_s24 + $0x48] sm:$0xff] %vm420_vm2, %v2022_v36  ;;  %v2564_v17 = vpop.f32.mrb[42].mxu1  ;;  %v1667_v13 = vadd.f32 %v1635_v10, %v1580_v62 }
 0x1fb   : > { %v2219_v49 = vadd.f32 %v2218_v32, %v2217_v43  ;;  %v2119_v42 = vadd.f32 %v2118_v44, %v2117_v40  ;;  %v1583_v19 = vpop.f32.mrb[43].mxu1  ;;  %v1670_v52 = vadd.f32 %v2564_v17, %v1638_v18  ;;  %1701 = vst.msk [vmem:[%s3410_s24 + $0xd0] sm:$0xff] %vm420_vm2, %v1669_v45  ;;  %v2222_v61 = vsel %vm420_vm2, %v2185_v39, 0.0  ;;  %v1640_v40 = vld [vmem:[%s3410_s24 + $0xe8] sm:$0xff] }
 0x1fc   : > { %v2220_v51 = vsel %vm420_vm2, %v2184_v46, 0.0  ;;  %v1668_v12 = vadd.f32 %v1636_v25, %v1583_v19  ;;  %v2587_v22 = vpop.f32.mrb[28].mxu0  ;;  %1699 = vst.msk [vmem:[%s3410_s24 + $0xc0] sm:$0xff] %vm420_vm2, %v1667_v13  ;;  %v2122_v0 = vsel %vm420_vm2, %v2084_v34, 0.0  ;;  %v2224_v8 = vsel %vm420_vm2, %v2186_v41, 0.0  ;;  %v1999_v41 = vld [vmem:[%s3410_s24 + $0x90] sm:$0xff] }
 0x1fd   : > { %v2121_v38 = vadd.f32 %v2120_v50, %v2119_v42  ;;  %v2221_v47 = vadd.f32 %v2220_v51, %v2219_v49  ;;  %v2027_v54 = vadd.f32 %v2587_v22, %v1995_v20  ;;  %v1902_v59 = vpop.f32.mrb[29].mxu0  ;;  %1702 = vst.msk [vmem:[%s3410_s24 + $0xd8] sm:$0xff] %vm420_vm2, %v1670_v52  ;;  %v1997_v49 = vld [vmem:[%s3410_s24 + $0x80] sm:$0xff]  ;;  %v2000_v19 = vld [vmem:[%s3410_s24 + $0x98] sm:$0xff]  ;;  %v1998_v22 = vld [vmem:[%s3410_s24 + $0x88] sm:$0xff] }
 0x1fe   : > { %1700 = vst.msk [vmem:[%s3410_s24 + $0xc8] sm:$0xff] %vm420_vm2, %v1668_v12  ;;  %v2025_v63 = vadd.f32 %v1993_v60, %v1902_v59  ;;  %v2588_v3 = vpop.f32.mrb[30].mxu0  ;;  %v2087_v5 = vld [vmem:[%s3410_s24 + $0x50] sm:$0xff] }
 0x1ff   : > { %v2223_v6 = vadd.f32 %v2222_v61, %v2221_v47  ;;  %v2085_v16 = vld [vmem:[%s3410_s24 + $0x40] sm:$0xff]  ;;  %v2123_v9 = vadd.f32 %v2122_v0, %v2121_v38  ;;  %2059 = vst.msk [vmem:[%s3410_s24 + $0x70] sm:$0xff] %vm420_vm2, %v2027_v54  ;;  %v1905_v11 = vpop.f32.mrb[31].mxu0  ;;  %v2028_v21 = vadd.f32 %v2588_v3, %v1996_v7  ;;  %v2189_v27 = vmul.f32 %v2087_v5, %v2087_v5 }
 0x200   : > { %v2124_v55 = vsel %vm420_vm2, %v2085_v16, 0.0  ;;  %v2187_v57 = vmul.f32 %v2085_v16, %v2085_v16  ;;  %2057 = vst.msk [vmem:[%s3410_s24 + $0x60] sm:$0xff] %vm420_vm2, %v2025_v63  ;;  %v2026_v1 = vadd.f32 %v1994_v53, %v1905_v11  ;;  %v2567_v29 = vpop.f32.mrb[44].mxu1  ;;  %v2088_v30 = vld [vmem:[%s3410_s24 + $0x58] sm:$0xff]  ;;  %v2128_v43 = vsel %vm420_vm2, %v2087_v5, 0.0  ;;  %v2003_v53 = vld [vmem:[%s3410_s24 + $0xb0] sm:$0xff] }
 0x201   : > { %v2125_v15 = vadd.f32 %v2124_v55, %v2123_v9  ;;  %v2225_v23 = vadd.f32 %v2224_v8, %v2223_v6  ;;  %v2086_v24 = vld [vmem:[%s3410_s24 + $0x48] sm:$0xff]  ;;  %v1673_v2 = vadd.f32 %v2567_v29, %v1641_v14  ;;  %v1596_v26 = vpop.f32.mrb[45].mxu1  ;;  %2060 = vst.msk [vmem:[%s3410_s24 + $0x78] sm:$0xff] %vm420_vm2, %v2028_v21  ;;  %v2190_v44 = vmul.f32 %v2088_v30, %v2088_v30  ;;  %v2001_v14 = vld [vmem:[%s3410_s24 + $0xa0] sm:$0xff] }
 0x202   : > { %v2226_v28 = vsel %vm420_vm2, %v2187_v57, 0.0  ;;  %v2126_v31 = vsel %vm420_vm2, %v2086_v24, 0.0  ;;  %2058 = vst.msk [vmem:[%s3410_s24 + $0x68] sm:$0xff] %vm420_vm2, %v2026_v1  ;;  %v2568_v4 = vpop.f32.mrb[46].mxu1  ;;  %v2188_v35 = vmul.f32 %v2086_v24, %v2086_v24  ;;  %v1671_v36 = vadd.f32 %v1639_v58, %v1596_v26  ;;  %v2004_v26 = vld [vmem:[%s3410_s24 + $0xb8] sm:$0xff] }
 0x203   : > { %v2227_v33 = vadd.f32 %v2226_v28, %v2225_v23  ;;  %v2127_v34 = vadd.f32 %v2126_v31, %v2125_v15  ;;  %1705 = vst.msk [vmem:[%s3410_s24 + $0xf0] sm:$0xff] %vm420_vm2, %v1673_v2  ;;  %v1599_v39 = vpop.f32.mrb[47].mxu1  ;;  %v1674_v56 = vadd.f32 %v2568_v4, %v1642_v37  ;;  %v2130_v42 = vsel %vm420_vm2, %v2088_v30, 0.0  ;;  %v2002_v37 = vld [vmem:[%s3410_s24 + $0xa8] sm:$0xff] }
 0x204   : > { %v1672_v62 = vadd.f32 %v1640_v40, %v1599_v39  ;;  %v2591_v32 = vpop.f32.mrb[32].mxu0  ;;  %v2228_v48 = vsel %vm420_vm2, %v2188_v35, 0.0  ;;  %1703 = vst.msk [vmem:[%s3410_s24 + $0xe0] sm:$0xff] %vm420_vm2, %v1671_v36  ;;  %v2230_v25 = vsel %vm420_vm2, %v2189_v27, 0.0  ;;  %v2232_v60 = vsel %vm420_vm2, %v2190_v44, 0.0 }
 0x205   : > { %v2129_v46 = vadd.f32 %v2128_v43, %v2127_v34  ;;  %v2031_v10 = vadd.f32 %v2591_v32, %v1999_v41  ;;  %v1918_v17 = vpop.f32.mrb[33].mxu0  ;;  %v2229_v45 = vadd.f32 %v2228_v48, %v2227_v33  ;;  %1706 = vst.msk [vmem:[%s3410_s24 + $0xf8] sm:$0xff] %vm420_vm2, %v1674_v56 }
 0x206   : > { %1704 = vst.msk [vmem:[%s3410_s24 + $0xe8] sm:$0xff] %vm420_vm2, %v1672_v62  ;;  %v2029_v13 = vadd.f32 %v1997_v49, %v1918_v17  ;;  %v2592_v18 = vpop.f32.mrb[34].mxu0  ;;  %v2091_v38 = vld [vmem:[%s3410_s24 + $0x70] sm:$0xff] }
 0x207   : > { %v2089_v50 = vld [vmem:[%s3410_s24 + $0x60] sm:$0xff]  ;;  %v2131_v51 = vadd.f32 %v2130_v42, %v2129_v46  ;;  %2063 = vst.msk [vmem:[%s3410_s24 + $0x90] sm:$0xff] %vm420_vm2, %v2031_v10  ;;  %v2032_v52 = vadd.f32 %v2592_v18, %v2000_v19  ;;  %v1921_v12 = vpop.f32.mrb[35].mxu0  ;;  %v2231_v20 = vadd.f32 %v2230_v25, %v2229_v45  ;;  %v2193_v8 = vmul.f32 %v2091_v38, %v2091_v38  ;;  %v2007_v42 = vld [vmem:[%s3410_s24 + $0xd0] sm:$0xff] }
 0x208   : > { %v2132_v47 = vsel %vm420_vm2, %v2089_v50, 0.0  ;;  %v2191_v54 = vmul.f32 %v2089_v50, %v2089_v50  ;;  %2061 = vst.msk [vmem:[%s3410_s24 + $0x80] sm:$0xff] %vm420_vm2, %v2029_v13  ;;  %v2030_v59 = vadd.f32 %v1998_v22, %v1921_v12  ;;  %v2092_v7 = vld [vmem:[%s3410_s24 + $0x78] sm:$0xff]  ;;  %v2136_v55 = vsel %vm420_vm2, %v2091_v38, 0.0  ;;  %v2005_v50 = vld [vmem:[%s3410_s24 + $0xc0] sm:$0xff] }
 0x209   : > { %v2133_v61 = vadd.f32 %v2132_v47, %v2131_v51  ;;  %v2090_v0 = vld [vmem:[%s3410_s24 + $0x68] sm:$0xff]  ;;  %2064 = vst.msk [vmem:[%s3410_s24 + $0x98] sm:$0xff] %vm420_vm2, %v2032_v52  ;;  %v2233_v63 = vadd.f32 %v2232_v60, %v2231_v20  ;;  %v2194_v57 = vmul.f32 %v2092_v7, %v2092_v7  ;;  %v2238_v27 = vsel %vm420_vm2, %v2193_v8, 0.0  ;;  %v2008_v20 = vld [vmem:[%s3410_s24 + $0xd8] sm:$0xff] }
 0x20a   : > { %v2234_v3 = vsel %vm420_vm2, %v2191_v54, 0.0  ;;  %2062 = vst.msk [vmem:[%s3410_s24 + $0x88] sm:$0xff] %vm420_vm2, %v2030_v59  ;;  %v2134_v6 = vsel %vm420_vm2, %v2090_v0, 0.0  ;;  %v2192_v5 = vmul.f32 %v2090_v0, %v2090_v0  ;;  %v2138_v28 = vsel %vm420_vm2, %v2092_v7, 0.0  ;;  %v2006_v8 = vld [vmem:[%s3410_s24 + $0xc8] sm:$0xff] }
 0x20b   : > { %v2235_v16 = vadd.f32 %v2234_v3, %v2233_v63  ;;  %v2135_v9 = vadd.f32 %v2134_v6, %v2133_v61  ;;  %v2240_v39 = vsel %vm420_vm2, %v2194_v57, 0.0 }
 0x20c   : > { %v2595_v11 = vpop.f32.mrb[36].mxu0  ;;  %v2236_v21 = vsel %vm420_vm2, %v2192_v5, 0.0 }
 0x20d   : > { %v2035_v1 = vadd.f32 %v2595_v11, %v2003_v53  ;;  %v1934_v29 = vpop.f32.mrb[37].mxu0  ;;  %v2137_v15 = vadd.f32 %v2136_v55, %v2135_v9  ;;  %v2237_v23 = vadd.f32 %v2236_v21, %v2235_v16 }
 0x20e   : > { %v2033_v24 = vadd.f32 %v2001_v14, %v1934_v29  ;;  %v2596_v2 = vpop.f32.mrb[38].mxu0  ;;  %v2095_v33 = vld [vmem:[%s3410_s24 + $0x90] sm:$0xff] }
 0x20f   : > { %v2093_v30 = vld [vmem:[%s3410_s24 + $0x80] sm:$0xff]  ;;  %2067 = vst.msk [vmem:[%s3410_s24 + $0xb0] sm:$0xff] %vm420_vm2, %v2035_v1  ;;  %v2036_v31 = vadd.f32 %v2596_v2, %v2004_v26  ;;  %v1937_v58 = vpop.f32.mrb[39].mxu0  ;;  %v2239_v4 = vadd.f32 %v2238_v27, %v2237_v23  ;;  %v2139_v34 = vadd.f32 %v2138_v28, %v2137_v15  ;;  %v2197_v46 = vmul.f32 %v2095_v33, %v2095_v33  ;;  %v2011_v23 = vld [vmem:[%s3410_s24 + $0xf0] sm:$0xff] }
 0x210   : > { %v2140_v35 = vsel %vm420_vm2, %v2093_v30, 0.0  ;;  %v2195_v36 = vmul.f32 %v2093_v30, %v2093_v30  ;;  %2065 = vst.msk [vmem:[%s3410_s24 + $0xa0] sm:$0xff] %vm420_vm2, %v2033_v24  ;;  %v2034_v43 = vadd.f32 %v2002_v37, %v1937_v58  ;;  %v2096_v41 = vld [vmem:[%s3410_s24 + $0x98] sm:$0xff]  ;;  %v2144_v45 = vsel %vm420_vm2, %v2095_v33, 0.0  ;;  %v2009_v30 = vld [vmem:[%s3410_s24 + $0xe0] sm:$0xff] }
 0x211   : > { %v2094_v40 = vld [vmem:[%s3410_s24 + $0x88] sm:$0xff]  ;;  %2068 = vst.msk [vmem:[%s3410_s24 + $0xb8] sm:$0xff] %vm420_vm2, %v2036_v31  ;;  %v2141_v56 = vadd.f32 %v2140_v35, %v2139_v34  ;;  %v2241_v62 = vadd.f32 %v2240_v39, %v2239_v4  ;;  %v2198_v13 = vmul.f32 %v2096_v41, %v2096_v41  ;;  %v2246_v38 = vsel %vm420_vm2, %v2197_v46, 0.0  ;;  %v2012_v34 = vld [vmem:[%s3410_s24 + $0xf8] sm:$0xff] }
 0x212   : > { %v2242_v32 = vsel %vm420_vm2, %v2195_v36, 0.0  ;;  %v2142_v44 = vsel %vm420_vm2, %v2094_v40, 0.0  ;;  %v2196_v48 = vmul.f32 %v2094_v40, %v2094_v40  ;;  %2066 = vst.msk [vmem:[%s3410_s24 + $0xa8] sm:$0xff] %vm420_vm2, %v2034_v43  ;;  %v2146_v47 = vsel %vm420_vm2, %v2096_v41, 0.0 }
 0x213   : > { %v2243_v10 = vadd.f32 %v2242_v32, %v2241_v62  ;;  %v2143_v17 = vadd.f32 %v2142_v44, %v2141_v56  ;;  %v2248_v6 = vsel %vm420_vm2, %v2198_v13, 0.0  ;;  %v2010_v44 = vld [vmem:[%s3410_s24 + $0xe8] sm:$0xff] }
 0x214   : > { %v2599_v49 = vpop.f32.mrb[40].mxu0  ;;  %v2244_v18 = vsel %vm420_vm2, %v2196_v48, 0.0 }
 0x215   : > { %v2039_v19 = vadd.f32 %v2599_v49, %v2007_v42  ;;  %v1950_v25 = vpop.f32.mrb[41].mxu0  ;;  %v2145_v51 = vadd.f32 %v2144_v45, %v2143_v17  ;;  %v2245_v52 = vadd.f32 %v2244_v18, %v2243_v10 }
 0x216   : > { %v2037_v12 = vadd.f32 %v2005_v50, %v1950_v25  ;;  %v2600_v22 = vpop.f32.mrb[42].mxu0  ;;  %v2099_v0 = vld [vmem:[%s3410_s24 + $0xb0] sm:$0xff] }
 0x217   : > { %v2097_v54 = vld [vmem:[%s3410_s24 + $0xa0] sm:$0xff]  ;;  %2071 = vst.msk [vmem:[%s3410_s24 + $0xd0] sm:$0xff] %vm420_vm2, %v2039_v19  ;;  %v2040_v59 = vadd.f32 %v2600_v22, %v2008_v20  ;;  %v1953_v60 = vpop.f32.mrb[43].mxu0  ;;  %v2247_v61 = vadd.f32 %v2246_v38, %v2245_v52  ;;  %v2147_v63 = vadd.f32 %v2146_v47, %v2145_v51  ;;  %v2201_v57 = vmul.f32 %v2099_v0, %v2099_v0 }
 0x218   : > { %v2148_v3 = vsel %vm420_vm2, %v2097_v54, 0.0  ;;  %v2199_v7 = vmul.f32 %v2097_v54, %v2097_v54  ;;  %2069 = vst.msk [vmem:[%s3410_s24 + $0xc0] sm:$0xff] %vm420_vm2, %v2037_v12  ;;  %v2038_v5 = vadd.f32 %v2006_v8, %v1953_v60  ;;  %v2100_v53 = vld [vmem:[%s3410_s24 + $0xb8] sm:$0xff]  ;;  %v2152_v24 = vsel %vm420_vm2, %v2099_v0, 0.0 }
 0x219   : > { %2072 = vst.msk [vmem:[%s3410_s24 + $0xd8] sm:$0xff] %vm420_vm2, %v2040_v59  ;;  %v2149_v16 = vadd.f32 %v2148_v3, %v2147_v63  ;;  %v2249_v9 = vadd.f32 %v2248_v6, %v2247_v61  ;;  %v2098_v55 = vld [vmem:[%s3410_s24 + $0xa8] sm:$0xff]  ;;  %v2202_v2 = vmul.f32 %v2100_v53, %v2100_v53  ;;  %v2254_v35 = vsel %vm420_vm2, %v2201_v57, 0.0 }
 0x21a   : > { %v2250_v11 = vsel %vm420_vm2, %v2199_v7, 0.0  ;;  %v2150_v21 = vsel %vm420_vm2, %v2098_v55, 0.0  ;;  %v2200_v1 = vmul.f32 %v2098_v55, %v2098_v55  ;;  %2070 = vst.msk [vmem:[%s3410_s24 + $0xc8] sm:$0xff] %vm420_vm2, %v2038_v5  ;;  %v2154_v36 = vsel %vm420_vm2, %v2100_v53, 0.0 }
 0x21b   : > { %v2251_v29 = vadd.f32 %v2250_v11, %v2249_v9  ;;  %v2151_v14 = vadd.f32 %v2150_v21, %v2149_v16  ;;  %v2256_v46 = vsel %vm420_vm2, %v2202_v2, 0.0 }
 0x21c   : > { %v2603_v15 = vpop.f32.mrb[44].mxu0  ;;  %v2252_v26 = vsel %vm420_vm2, %v2200_v1, 0.0 }
 0x21d   : > { %v2043_v27 = vadd.f32 %v2603_v15, %v2011_v23  ;;  %v1966_v28 = vpop.f32.mrb[45].mxu0  ;;  %v2153_v31 = vadd.f32 %v2152_v24, %v2151_v14  ;;  %v2253_v58 = vadd.f32 %v2252_v26, %v2251_v29 }
 0x21e   : > { %v2041_v4 = vadd.f32 %v2009_v30, %v1966_v28  ;;  %v2604_v33 = vpop.f32.mrb[46].mxu0  ;;  %v2103_v56 = vld [vmem:[%s3410_s24 + $0xd0] sm:$0xff] }
 0x21f   : > { %v2101_v37 = vld [vmem:[%s3410_s24 + $0xc0] sm:$0xff]  ;;  %2075 = vst.msk [vmem:[%s3410_s24 + $0xf0] sm:$0xff] %vm420_vm2, %v2043_v27  ;;  %v2044_v39 = vadd.f32 %v2604_v33, %v2012_v34  ;;  %v1969_v40 = vpop.f32.mrb[47].mxu0  ;;  %v2255_v43 = vadd.f32 %v2254_v35, %v2253_v58  ;;  %v2155_v62 = vadd.f32 %v2154_v36, %v2153_v31  ;;  %v2205_v13 = vmul.f32 %v2103_v56, %v2103_v56 }
 0x220   : > { %v2156_v32 = vsel %vm420_vm2, %v2101_v37, 0.0  ;;  %v2203_v41 = vmul.f32 %v2101_v37, %v2101_v37  ;;  %2073 = vst.msk [vmem:[%s3410_s24 + $0xe0] sm:$0xff] %vm420_vm2, %v2041_v4  ;;  %v2042_v48 = vadd.f32 %v2010_v44, %v1969_v40  ;;  %v2104_v42 = vld [vmem:[%s3410_s24 + $0xd8] sm:$0xff]  ;;  %v2160_v51 = vsel %vm420_vm2, %v2103_v56, 0.0 }
 0x221   : > { %2076 = vst.msk [vmem:[%s3410_s24 + $0xf8] sm:$0xff] %vm420_vm2, %v2044_v39  ;;  %v2157_v10 = vadd.f32 %v2156_v32, %v2155_v62  ;;  %v2257_v17 = vadd.f32 %v2256_v46, %v2255_v43  ;;  %v2102_v45 = vld [vmem:[%s3410_s24 + $0xc8] sm:$0xff]  ;;  %v2206_v52 = vmul.f32 %v2104_v42, %v2104_v42  ;;  %v2262_v38 = vsel %vm420_vm2, %v2205_v13, 0.0 }
 0x222   : > { %v2258_v49 = vsel %vm420_vm2, %v2203_v41, 0.0  ;;  %v2158_v18 = vsel %vm420_vm2, %v2102_v45, 0.0  ;;  %v2204_v19 = vmul.f32 %v2102_v45, %v2102_v45  ;;  %2074 = vst.msk [vmem:[%s3410_s24 + $0xe8] sm:$0xff] %vm420_vm2, %v2042_v48  ;;  %v2162_v47 = vsel %vm420_vm2, %v2104_v42, 0.0 }
 0x223   : > { %v2259_v25 = vadd.f32 %v2258_v49, %v2257_v17  ;;  %v2159_v50 = vadd.f32 %v2158_v18, %v2157_v10  ;;  %v2264_v3 = vsel %vm420_vm2, %v2206_v52, 0.0 }
 0x224   : > { %v2260_v12 = vsel %vm420_vm2, %v2204_v19, 0.0 }
 0x225   : > { %v2161_v22 = vadd.f32 %v2160_v51, %v2159_v50  ;;  %v2261_v20 = vadd.f32 %v2260_v12, %v2259_v25 }
 0x226   : > { %v2107_v60 = vld [vmem:[%s3410_s24 + $0xf0] sm:$0xff] }
 0x227   : > { %v2105_v54 = vld [vmem:[%s3410_s24 + $0xe0] sm:$0xff]  ;;  %v2263_v59 = vadd.f32 %v2262_v38, %v2261_v20  ;;  %v2163_v61 = vadd.f32 %v2162_v47, %v2161_v22  ;;  %v2209_v9 = vmul.f32 %v2107_v60, %v2107_v60  ;;  %v2168_v21 = vsel %vm420_vm2, %v2107_v60, 0.0 }
 0x228   : > { %v2164_v0 = vsel %vm420_vm2, %v2105_v54, 0.0  ;;  %v2207_v63 = vmul.f32 %v2105_v54, %v2105_v54  ;;  %v2108_v5 = vld [vmem:[%s3410_s24 + $0xf8] sm:$0xff] }
 0x229   : > { %v2165_v7 = vadd.f32 %v2164_v0, %v2163_v61  ;;  %v2265_v8 = vadd.f32 %v2264_v3, %v2263_v59  ;;  %v2106_v16 = vld [vmem:[%s3410_s24 + $0xe8] sm:$0xff]  ;;  %v2210_v1 = vmul.f32 %v2108_v5, %v2108_v5  ;;  %v2270_v23 = vsel %vm420_vm2, %v2209_v9, 0.0 }
 0x22a   : > { %v2266_v6 = vsel %vm420_vm2, %v2207_v63, 0.0  ;;  %v2166_v11 = vsel %vm420_vm2, %v2106_v16, 0.0  ;;  %v2208_v53 = vmul.f32 %v2106_v16, %v2106_v16  ;;  %v2170_v24 = vsel %vm420_vm2, %v2108_v5, 0.0 }
 0x22b   : > { %v2267_v55 = vadd.f32 %v2266_v6, %v2265_v8  ;;  %v2167_v57 = vadd.f32 %v2166_v11, %v2165_v7  ;;  %v2272_v27 = vsel %vm420_vm2, %v2210_v1, 0.0 }
 0x22c   : > { %v2268_v29 = vsel %vm420_vm2, %v2208_v53, 0.0 }
 0x22d   : > { %v2169_v14 = vadd.f32 %v2168_v21, %v2167_v57  ;;  %v2269_v15 = vadd.f32 %v2268_v29, %v2267_v55 }
 0x22f   : > { %v2171_v2 = vadd.f32 %v2170_v24, %v2169_v14  ;;  %v2271_v26 = vadd.f32 %v2270_v23, %v2269_v15 }
 0x231   : > { %v2172_v28 = vrot.slane %v2171_v2, 4  ;;  %v2273_v30 = vadd.f32 %v2272_v27, %v2271_v26 }
 0x233   : > { %v2173_v31 = vadd.f32 %v2172_v28, %v2171_v2  ;;  %v2274_v58 = vrot.slane %v2273_v30, 4 }
 0x235   : > { %v2174_v4 = vrot.slane %v2173_v31, 2  ;;  %v2275_v33 = vadd.f32 %v2274_v58, %v2273_v30 }
 0x237   : > { %v2175_v34 = vadd.f32 %v2174_v4, %v2173_v31  ;;  %v2276_v35 = vrot.slane %v2275_v33, 2 }
 0x239   : > { %v2176_v36 = vrot.slane %v2175_v34, 1  ;;  %v2277_v37 = vadd.f32 %v2276_v35, %v2275_v33 }
 0x23b   : > { %v2177_v39 = vadd.f32 %v2176_v36, %v2175_v34  ;;  %v2278_v40 = vrot.slane %v2277_v37, 1 }
 0x23d   : > { %2178 = vst.msk [vmem:[%s235_s27] sm:$0x1] %vm246_vm0, %v2177_v39  ;;  %v2279_v43 = vadd.f32 %v2278_v40, %v2277_v37 }
 0x23f   : > { %2280 = vst.msk [vmem:[%s235_s27 + $0x1] sm:$0x1] %vm246_vm0, %v2279_v43 }
 0x240 PF: > { %s16_s18 = sadd.s32 1, %s2637_s18  }
 0x241   : > { %p13_p4 = scmp.ge.s32.totalorder %s16_s18, 4  }
 0x243   :  { %15 = sbr.rel (!%p13_p4) target bundleno = 1 (0x1), region = 83 }

</bundles_post_ra>
